<compile_context>
chip_gen: v7x
topology: tpu7x:2x2x1
jax: 0.10.0
libtpu: 0.0.40
codegen_flags: <defaults>
</compile_context>

<pallas_src>
import functools

import jax
import jax.numpy as jnp
from jax import lax
from jax.experimental import pallas as pl
from jax.experimental.pallas import tpu as pltpu

C_FEAT = 16      # num_feature_channels
H_HYPER = 16     # hidden width of the hypernetwork inside hyperlayers.Linear
STEPS = 10       # forward() hard-codes self.steps = 10
RADIUS = 1.5     # self.radius
F32 = jnp.float32

# packed-parameter layout: cols 0:16 = weight matrix, col 16 = bias column
_R_W1, _R_HW1, _R_HW2, _R_HW3, _R_HWO = 0, 16, 32, 48, 64
_P_ROWS, _P_COLS = 81, 17


def raymarcher_kernel(
    scal_ref,        # scalar-prefetch SMEM (B, 20):
                     #   [fx, fy, cx, cy,  c2w[0:3,0:4] row-major (12),  row2 of c2w^-1 (4)]
    pts_ref,         # (1, 4, TN): rows [uv_x, uv_y, init_depth, jitter]
    pp_ref,          # (81, 17)   packed phi + (w2/b2-folded) hypernet parameters
    world_ref,       # out (1, 3, TN) world coords
    depth_ref,       # out (1, 1, TN) depth
):
    b = pl.program_id(0)

    fx = scal_ref[b, 0]; fy = scal_ref[b, 1]
    cx = scal_ref[b, 2]; cy = scal_ref[b, 3]
    r00 = scal_ref[b, 4];  r01 = scal_ref[b, 5];  r02 = scal_ref[b, 6];  t0 = scal_ref[b, 7]
    r10 = scal_ref[b, 8];  r11 = scal_ref[b, 9];  r12 = scal_ref[b, 10]; t1 = scal_ref[b, 11]
    r20 = scal_ref[b, 12]; r21 = scal_ref[b, 13]; r22 = scal_ref[b, 14]; t2 = scal_ref[b, 15]
    di0 = scal_ref[b, 16]; di1 = scal_ref[b, 17]; di2 = scal_ref[b, 18]; di3 = scal_ref[b, 19]

    inv_fx = 1.0 / fx
    inv_fy = 1.0 / fy

    upix = pts_ref[0, 0:1, :]                     # (1, TN)
    vpix = pts_ref[0, 1:2, :]
    z0 = pts_ref[0, 2:3, :]                       # initial depth ~ N(0.05, 0.001)*dpt_scale
    jit = pts_ref[0, 3:4, :]                      # depth_init jitter ~ N(0, 0.01)

    xn = (upix - cx) * inv_fx                     # lifted x at depth 1
    yn = (vpix - cy) * inv_fy

    # ---- geometry.get_ray_directions: normalize(R @ [xn, yn, 1]) -------------
    rdx = r00 * xn + r01 * yn + r02
    rdy = r10 * xn + r11 * yn + r12
    rdz = r20 * xn + r21 * yn + r22
    inv_rd = lax.rsqrt(jnp.maximum(rdx * rdx + rdy * rdy + rdz * rdz, 1e-24))
    rdx = rdx * inv_rd
    rdy = rdy * inv_rd
    rdz = rdz * inv_rd

    # ---- geometry.world_from_xy_depth at the random initial depth ------------
    xl = xn * z0
    yl = yn * z0
    wx = r00 * xl + r01 * yl + r02 * z0 + t0
    wy = r10 * xl + r11 * yl + r12 * z0 + t1
    wz = r20 * xl + r21 * yl + r22 * z0 + t2

    # ---- depth_init: analytic sphere intersection + jitter (word_center = 0) -
    d2c_sq = wx * wx + wy * wy + wz * wz
    inv_len = lax.rsqrt(jnp.maximum(d2c_sq, 1e-24))
    d2c_len = d2c_sq * inv_len
    cos_t = -(wx * rdx + wy * rdy + wz * rdz) * inv_len
    sin_t = jnp.sqrt(1.0 - cos_t * cos_t + 1e-6)      # same epsilon placement as reference
    sin_len = sin_t * d2c_len
    cos_len = cos_t * d2c_len
    wx = wx + rdx * cos_len
    wy = wy + rdy * cos_len
    wz = wz + rdz * cos_len
    hit = sin_len < RADIUS                            # reference masks on sin_len only
    # clamp: non-hit lanes would otherwise produce NaN (masked but VJP-poisonous)
    back = jnp.sqrt(jnp.maximum(RADIUS * RADIUS - sin_len * sin_len, 0.0) + 1e-6)
    wx = jnp.where(hit, wx - rdx * back, wx)
    wy = jnp.where(hit, wy - rdy * back, wy)
    wz = jnp.where(hit, wz - rdz * back, wz)
    wx = wx + rdx * jit
    wy = wy + rdy * jit
    wz = wz + rdz * jit

    # ---- unpack parameters (static slices of the single packed block) --------
    pp = pp_ref[...]
    w1 = pp[_R_W1:_R_W1 + C_FEAT, 0:3]
    b1 = pp[_R_W1:_R_W1 + C_FEAT, 16:17]
    hw1 = pp[_R_HW1:_R_HW1 + H_HYPER, 0:3]
    hb1 = pp[_R_HW1:_R_HW1 + H_HYPER, 16:17]
    hw2 = pp[_R_HW2:_R_HW2 + H_HYPER, 0:H_HYPER]
    hb2 = pp[_R_HW2:_R_HW2 + H_HYPER, 16:17]
    hw3 = pp[_R_HW3:_R_HW3 + H_HYPER, 0:H_HYPER]
    hb3 = pp[_R_HW3:_R_HW3 + H_HYPER, 16:17]
    hwo = pp[_R_HWO:_R_HWO + C_FEAT + 1, 0:H_HYPER]   # phi layer-2 pre-folded at pack time
    hbo = pp[_R_HWO:_R_HWO + C_FEAT + 1, 16:17]

    # ---- self.lstm = hyperlayers.Linear: hypernet on ray_dirs (constant across
    # steps -> hoisted).  Layer 1 uses scalar-column broadcast FMAs (no (3,TN)
    # stacking); layers 2/3/out are one-time MXU matmuls.
    h = jnp.maximum(hw1[:, 0:1] * rdx + hw1[:, 1:2] * rdy + hw1[:, 2:3] * rdz + hb1, 0.0)
    h = jnp.maximum(jnp.dot(hw2, h, preferred_element_type=F32) + hb2, 0.0)
    h = jnp.maximum(jnp.dot(hw3, h, preferred_element_type=F32) + hb3, 0.0)
    lin = jnp.dot(hwo, h, preferred_element_type=F32) + hbo      # (C_FEAT+1, TN)
    weff = lin[0:C_FEAT, :]                 # effective per-point linear weight (w2 folded)
    beff = lin[C_FEAT:C_FEAT + 1, :]        # effective per-point bias (b2 folded)

    # ---- carry the phi layer-1 pre-activation instead of world (exact rewrite):
    #   a_k = w1 @ world_k + b1,   a_{k+1} = a_k + (w1 @ ray_dirs) * sd_k
    #   world_final = world_0 + ray_dirs * sum_k sd_k
    g = w1[:, 0:1] * rdx + w1[:, 1:2] * rdy + w1[:, 2:3] * rdz            # (16, TN)
    a0 = w1[:, 0:1] * wx + w1[:, 1:2] * wy + w1[:, 2:3] * wz + b1         # (16, TN)

    def step(_, carry):
        a, sd_tot = carry
        u = jnp.maximum(a, 0.0)                                 # phi layer-1 activation
        sd = jnp.sum(weff * u, axis=0, keepdims=True) + beff    # lstm(v, ray_dirs)
        return a + g * sd, sd_tot + sd

    _, sd_tot = lax.fori_loop(0, STEPS, step, (a0, jnp.zeros_like(beff)), unroll=True)

    wx = wx + rdx * sd_tot
    wy = wy + rdy * sd_tot
    wz = wz + rdz * sd_tot

    # ---- geometry.depth_from_world: only row 2 of the rigid inverse is needed -
    depth = di0 * wx + di1 * wy + di2 * wz + di3

    # direct sub-row stores (no sublane concatenates)
    world_ref[0, 0:1, :] = wx
    world_ref[0, 1:2, :] = wy
    world_ref[0, 2:3, :] = wz
    depth_ref[0, 0:1, :] = depth


def init_params(key):
    """Deterministic synthetic weights for phi and the hyperlayers.Linear hypernet."""
    ks = jax.random.split(key, 8)
    w1 = 0.3 * jax.random.normal(ks[0], (C_FEAT, 3), F32)
    b1 = jnp.zeros((C_FEAT, 1), F32)
    w2 = (0.3 / jnp.sqrt(C_FEAT)) * jax.random.normal(ks[1], (C_FEAT, C_FEAT), F32)
    b2 = jnp.zeros((C_FEAT, 1), F32)
    hw1 = 0.3 * jax.random.normal(ks[2], (H_HYPER, 3), F32)
    hb1 = jnp.zeros((H_HYPER, 1), F32)
    hw2 = (0.3 / jnp.sqrt(H_HYPER)) * jax.random.normal(ks[3], (H_HYPER, H_HYPER), F32)
    hb2 = jnp.zeros((H_HYPER, 1), F32)
    hw3 = (0.3 / jnp.sqrt(H_HYPER)) * jax.random.normal(ks[4], (H_HYPER, H_HYPER), F32)
    hb3 = jnp.zeros((H_HYPER, 1), F32)
    hwo = 0.02 * jax.random.normal(ks[5], (C_FEAT + 1, H_HYPER), F32)
    hbo = jnp.zeros((C_FEAT + 1, 1), F32)
    return (w1, b1, w2, b2, hw1, hb1, hw2, hb2, hw3, hb3, hwo, hbo)


def pack_params(params):
    """Pack into one (81, 17) f32 block (cols 0:16 = W, col 16 = b).

    phi layer-2 (w2, b2) is folded into the hypernet output head:
      sd = w_lin . (w2 u + b2) + b_lin  ==  (w2^T w_lin) . u + (b2 . w_lin + b_lin)
    so the per-step loop only needs the effective (weff, beff)."""
    (w1, b1, w2, b2, hw1, hb1, hw2, hb2, hw3, hb3, hwo, hbo) = params
    hwo_w, hwo_b = hwo[0:C_FEAT, :], hwo[C_FEAT:C_FEAT + 1, :]     # (16,16), (1,16)
    hbo_w, hbo_b = hbo[0:C_FEAT, :], hbo[C_FEAT:C_FEAT + 1, :]     # (16,1), (1,1)
    hwo_eff = jnp.concatenate([w2.T @ hwo_w, hwo_b + b2.T @ hwo_w], axis=0)  # (17,16)
    hbo_eff = jnp.concatenate([w2.T @ hbo_w, hbo_b + b2.T @ hbo_w], axis=0)  # (17,1)

    P = jnp.zeros((_P_ROWS, _P_COLS), F32)
    P = P.at[_R_W1:_R_W1 + C_FEAT, 0:3].set(w1).at[_R_W1:_R_W1 + C_FEAT, 16:17].set(b1)
    P = P.at[_R_HW1:_R_HW1 + H_HYPER, 0:3].set(hw1).at[_R_HW1:_R_HW1 + H_HYPER, 16:17].set(hb1)
    P = P.at[_R_HW2:_R_HW2 + H_HYPER, 0:H_HYPER].set(hw2).at[_R_HW2:_R_HW2 + H_HYPER, 16:17].set(hb2)
    P = P.at[_R_HW3:_R_HW3 + H_HYPER, 0:H_HYPER].set(hw3).at[_R_HW3:_R_HW3 + H_HYPER, 16:17].set(hb3)
    P = P.at[_R_HWO:_R_HWO + C_FEAT + 1, 0:H_HYPER].set(hwo_eff)
    P = P.at[_R_HWO:_R_HWO + C_FEAT + 1, 16:17].set(hbo_eff)
    return P


def _pick_tn(n):
    # big lane tiles amortize per-grid-step overhead; cap at 8K (v5e scoped VMEM)
    for t in (8192, 4096, 2048, 1024, 512, 256, 128):
        if n % t == 0:
            return t
    raise ValueError("N must be a multiple of 128")


@functools.partial(jax.jit, static_argnames=("tn",))
def raymarcher_forward_cn(cam2world, pts_cn, intrinsics, params_packed, *, tn=None):
    """Channel-first fast path (no boundary HBM transposes).

    Args:
      cam2world     (B, 4, 4)  rigid transform
      pts_cn        (B, 4, N)  rows [uv_x, uv_y, init_depth, jitter]
      intrinsics    (B, 4, 4)
      params_packed (81, 17)   from pack_params()
    Returns (world_coords (B, 3, N), depth (B, 1, N)).
    """
    B, _, N = pts_cn.shape
    if tn is None:
        tn = _pick_tn(N)
    assert tn % 128 == 0 and N % tn == 0

    c2w = cam2world.astype(F32)
    fx = intrinsics[:, 0, 0].astype(F32)
    fy = intrinsics[:, 1, 1].astype(F32)
    cx = intrinsics[:, 0, 2].astype(F32)
    cy = intrinsics[:, 1, 2].astype(F32)

    # analytic rigid inverse of cam2world; only row 2 is needed for depth_from_world
    R = c2w[:, 0:3, 0:3]
    t = c2w[:, 0:3, 3]
    drow_xyz = R[:, :, 2]                                       # (B, 3) = (R^T)[2, :]
    drow_w = -jnp.sum(drow_xyz * t, axis=1, keepdims=True)      # (B, 1)

    scal = jnp.concatenate(
        [jnp.stack([fx, fy, cx, cy], axis=-1),
         c2w[:, 0:3, 0:4].reshape(B, 12),
         drow_xyz, drow_w], axis=-1).astype(F32)                # (B, 20) -> SMEM prefetch

    grid = (B, N // tn)
    in_specs = [
        pl.BlockSpec((1, 4, tn), lambda b, n, scal: (b, 0, n)),
        pl.BlockSpec((_P_ROWS, _P_COLS), lambda b, n, scal: (0, 0)),
    ]
    out_specs = [
        pl.BlockSpec((1, 3, tn), lambda b, n, scal: (b, 0, n)),
        pl.BlockSpec((1, 1, tn), lambda b, n, scal: (b, 0, n)),
    ]
    out_shape = (jax.ShapeDtypeStruct((B, 3, N), F32),
                 jax.ShapeDtypeStruct((B, 1, N), F32))

    world_cn, depth_cn = pl.pallas_call(
        raymarcher_kernel,
        out_shape=out_shape,
        grid_spec=pltpu.PrefetchScalarGridSpec(
            num_scalar_prefetch=1,
            grid=grid,
            in_specs=in_specs,
            out_specs=out_specs,
        ),
        compiler_params=pltpu.CompilerParams(
            dimension_semantics=("parallel", "parallel")),
    )(scal, pts_cn.astype(F32), params_packed.astype(F32))
    return world_cn, depth_cn


def raymarcher_forward(cam2world, uv, intrinsics, init_depth, jitter, params_packed, *, tn=None):
    """PyTorch-layout (B, N, C) compatibility wrapper for the dpt=None branch.

    NOTE: the boundary transposes here move more HBM bytes than the kernel itself;
    prefer raymarcher_forward_cn with channel-first inputs in production.
    """
    pts = jnp.concatenate([uv, init_depth, jitter], axis=-1)            # (B, N, 4)
    pts_cn = jnp.transpose(pts, (0, 2, 1)).astype(F32)                  # (B, 4, N)
    world_cn, depth_cn = raymarcher_forward_cn(
        cam2world, pts_cn, intrinsics, params_packed, tn=tn)
    return jnp.transpose(world_cn, (0, 2, 1)), jnp.transpose(depth_cn, (0, 2, 1))


def raymarcher_reference(cam2world, uv, intrinsics, init_depth, jitter, params):
    """Pure-JAX (B, N, C) reference mirroring the PyTorch forward (dpt=None branch)."""
    (w1, b1, w2, b2, hw1, hb1, hw2, hb2, hw3, hb3, hwo, hbo) = params
    fx = intrinsics[:, 0, 0][:, None, None]; fy = intrinsics[:, 1, 1][:, None, None]
    cx = intrinsics[:, 0, 2][:, None, None]; cy = intrinsics[:, 1, 2][:, None, None]
    xn = (uv[..., 0:1] - cx) / fx
    yn = (uv[..., 1:2] - cy) / fy
    R = cam2world[:, 0:3, 0:3]; t = cam2world[:, 0:3, 3]
    cam = jnp.concatenate([xn, yn, jnp.ones_like(xn)], axis=-1)          # (B, N, 3)
    ray_dirs = jnp.einsum('bij,bnj->bni', R, cam)
    ray_dirs = ray_dirs / jnp.linalg.norm(ray_dirs, axis=-1, keepdims=True)
    world = jnp.einsum('bij,bnj->bni', R, cam * init_depth) + t[:, None, :]
    d2c = -world                                                         # word_center = 0
    d2c_len = jnp.linalg.norm(d2c, axis=-1, keepdims=True)
    cos_t = jnp.sum((d2c / d2c_len) * ray_dirs, axis=-1, keepdims=True)
    sin_t = jnp.sqrt(1.0 - cos_t ** 2 + 1e-6)
    sin_len, cos_len = sin_t * d2c_len, cos_t * d2c_len
    world = world + ray_dirs * cos_len
    back = jnp.sqrt(jnp.maximum(RADIUS ** 2 - sin_len ** 2, 0.0) + 1e-6)
    world = jnp.where(sin_len < RADIUS, world - ray_dirs * back, world)
    world = world + ray_dirs * jitter
    h = jnp.maximum(ray_dirs @ hw1.T + hb1.T, 0.0)
    h = jnp.maximum(h @ hw2.T + hb2.T, 0.0)
    h = jnp.maximum(h @ hw3.T + hb3.T, 0.0)
    lin = h @ hwo.T + hbo.T
    w_lin, b_lin = lin[..., 0:C_FEAT], lin[..., C_FEAT:C_FEAT + 1]
    for _ in range(STEPS):
        v = jnp.maximum(world @ w1.T + b1.T, 0.0)
        v = v @ w2.T + b2.T
        sd = jnp.sum(w_lin * v, axis=-1, keepdims=True) + b_lin
        world = world + ray_dirs * sd
    cam_pts = jnp.einsum('bji,bnj->bni', R, world - t[:, None, :])       # R^T (world - t)
    return world, cam_pts[..., 2:3]


if __name__ == "__main__":
    key = jax.random.PRNGKey(0)
    k_param, k_d0, k_jit = jax.random.split(key, 3)

    B, H, W = 2, 32, 32
    N = H * W                                                   # 1024 rays per camera

    # pixel-grid uv coordinates, built directly in channel-first layout (B, 2, N)
    xs, ys = jnp.meshgrid(jnp.arange(W, dtype=F32), jnp.arange(H, dtype=F32), indexing="xy")
    uv_cn = jnp.stack([xs.reshape(-1), ys.reshape(-1)], axis=0)
    uv_cn = jnp.tile(uv_cn[None], (B, 1, 1))

    # intrinsics (B, 4, 4): fx = fy = 40, cx = cy = 16
    intr44 = jnp.array([[40.0, 0.0, 16.0, 0.0],
                        [0.0, 40.0, 16.0, 0.0],
                        [0.0, 0.0, 1.0, 0.0],
                        [0.0, 0.0, 0.0, 1.0]], F32)
    intrinsics = jnp.tile(intr44[None], (B, 1, 1))

    # cam2world (B, 4, 4): two cameras looking roughly at the origin (rigid transforms)
    c0 = jnp.array([[1.0, 0.0, 0.0, 0.1],
                    [0.0, 1.0, 0.0, -0.2],
                    [0.0, 0.0, 1.0, 2.5],
                    [0.0, 0.0, 0.0, 1.0]], F32)
    c1 = jnp.array([[0.8660254, 0.0, 0.5, -0.3],
                    [0.0, 1.0, 0.0, 0.1],
                    [-0.5, 0.0, 0.8660254, 2.0],
                    [0.0, 0.0, 0.0, 1.0]], F32)
    cam2world = jnp.stack([c0, c1], axis=0)

    dpt_scale = 1.0
    init_depth_cn = (0.05 + 0.001 * jax.random.normal(k_d0, (B, 1, N), F32)) * dpt_scale
    jitter_cn = 0.01 * jax.random.normal(k_jit, (B, 1, N), F32)
    pts_cn = jnp.concatenate([uv_cn, init_depth_cn, jitter_cn], axis=1)  # (B, 4, N)

    params = init_params(k_param)
    params_packed = pack_params(params)

    world_cn, depth_cn = raymarcher_forward_cn(cam2world, pts_cn, intrinsics, params_packed)
    world_cn = jax.block_until_ready(world_cn)
    depth_cn = jax.block_until_ready(depth_cn)

    # cross-check against a pure-JAX reference (unfused math, PyTorch layout)
    uv = jnp.transpose(uv_cn, (0, 2, 1))
    world_ref, depth_ref = raymarcher_reference(
        cam2world, uv, intrinsics,
        jnp.transpose(init_depth_cn, (0, 2, 1)),
        jnp.transpose(jitter_cn, (0, 2, 1)), params)
    world_k = jnp.transpose(world_cn, (0, 2, 1))
    depth_k = jnp.transpose(depth_cn, (0, 2, 1))

    # log entries of the reference forward (scalar min/max of the final depth)
    log = [("scalar", "dmin_final", float(depth_k.min()), 10),
           ("scalar", "dmax_final", float(depth_k.max()), 10)]

    assert world_cn.shape == (B, 3, N) and depth_cn.shape == (B, 1, N)
    assert bool(jnp.all(jnp.isfinite(world_cn))) and bool(jnp.all(jnp.isfinite(depth_cn)))
    assert bool(jnp.allclose(world_k, world_ref, rtol=3e-3, atol=3e-3)), \
        float(jnp.max(jnp.abs(world_k - world_ref)))
    assert bool(jnp.allclose(depth_k, depth_ref, rtol=3e-3, atol=3e-3)), \
        float(jnp.max(jnp.abs(depth_k - depth_ref)))
    print("KERNEL_OK")
</pallas_src>

<mosaic_0001>
module attributes {stable_mosaic.version = 11 : i64} {
  func.func @raymarcher_kernel(%arg0: i32, %arg1: i32, %arg2: memref<2x20xf32, #tpu.memory_space<smem>>, %arg3: memref<1x4x1024xf32, #tpu.memory_space<vmem>>, %arg4: memref<81x17xf32, #tpu.memory_space<vmem>>, %arg5: memref<1x3x1024xf32, #tpu.memory_space<vmem>>, %arg6: memref<1x1x1024xf32, #tpu.memory_space<vmem>>) attributes {dimension_semantics = [#tpu.dimension_semantics<parallel>, #tpu.dimension_semantics<parallel>], iteration_bounds = array<i64: 2, 1>, scalar_prefetch = 1 : i64, scratch_operands = 0 : i64, tpu.core_type = #tpu.core_type<tc>, window_params = [{transform_indices = @transform_0, window_bounds = array<i64: 1, 4, 1024>}, {pipeline_mode = #tpu.pipeline_mode<synchronous>, transform_indices = @transform_1, window_bounds = array<i64: 81, 17>}, {transform_indices = @transform_2, window_bounds = array<i64: 1, 3, 1024>}, {transform_indices = @transform_3, window_bounds = array<i64: 1, 1, 1024>}]} {
    %0 = arith.index_cast %arg0 : i32 to index
    %c0 = arith.constant 0 : index
    %1 = memref.load %arg2[%0, %c0] : memref<2x20xf32, #tpu.memory_space<smem>>
    %2 = arith.index_cast %arg0 : i32 to index
    %c1 = arith.constant 1 : index
    %3 = memref.load %arg2[%2, %c1] : memref<2x20xf32, #tpu.memory_space<smem>>
    %4 = arith.index_cast %arg0 : i32 to index
    %c2 = arith.constant 2 : index
    %5 = memref.load %arg2[%4, %c2] : memref<2x20xf32, #tpu.memory_space<smem>>
    %6 = arith.index_cast %arg0 : i32 to index
    %c3 = arith.constant 3 : index
    %7 = memref.load %arg2[%6, %c3] : memref<2x20xf32, #tpu.memory_space<smem>>
    %8 = arith.index_cast %arg0 : i32 to index
    %c4 = arith.constant 4 : index
    %9 = memref.load %arg2[%8, %c4] : memref<2x20xf32, #tpu.memory_space<smem>>
    %10 = arith.index_cast %arg0 : i32 to index
    %c5 = arith.constant 5 : index
    %11 = memref.load %arg2[%10, %c5] : memref<2x20xf32, #tpu.memory_space<smem>>
    %12 = arith.index_cast %arg0 : i32 to index
    %c6 = arith.constant 6 : index
    %13 = memref.load %arg2[%12, %c6] : memref<2x20xf32, #tpu.memory_space<smem>>
    %14 = arith.index_cast %arg0 : i32 to index
    %c7 = arith.constant 7 : index
    %15 = memref.load %arg2[%14, %c7] : memref<2x20xf32, #tpu.memory_space<smem>>
    %16 = arith.index_cast %arg0 : i32 to index
    %c8 = arith.constant 8 : index
    %17 = memref.load %arg2[%16, %c8] : memref<2x20xf32, #tpu.memory_space<smem>>
    %18 = arith.index_cast %arg0 : i32 to index
    %c9 = arith.constant 9 : index
    %19 = memref.load %arg2[%18, %c9] : memref<2x20xf32, #tpu.memory_space<smem>>
    %20 = arith.index_cast %arg0 : i32 to index
    %c10 = arith.constant 10 : index
    %21 = memref.load %arg2[%20, %c10] : memref<2x20xf32, #tpu.memory_space<smem>>
    %22 = arith.index_cast %arg0 : i32 to index
    %c11 = arith.constant 11 : index
    %23 = memref.load %arg2[%22, %c11] : memref<2x20xf32, #tpu.memory_space<smem>>
    %24 = arith.index_cast %arg0 : i32 to index
    %c12 = arith.constant 12 : index
    %25 = memref.load %arg2[%24, %c12] : memref<2x20xf32, #tpu.memory_space<smem>>
    %26 = arith.index_cast %arg0 : i32 to index
    %c13 = arith.constant 13 : index
    %27 = memref.load %arg2[%26, %c13] : memref<2x20xf32, #tpu.memory_space<smem>>
    %28 = arith.index_cast %arg0 : i32 to index
    %c14 = arith.constant 14 : index
    %29 = memref.load %arg2[%28, %c14] : memref<2x20xf32, #tpu.memory_space<smem>>
    %30 = arith.index_cast %arg0 : i32 to index
    %c15 = arith.constant 15 : index
    %31 = memref.load %arg2[%30, %c15] : memref<2x20xf32, #tpu.memory_space<smem>>
    %32 = arith.index_cast %arg0 : i32 to index
    %c16 = arith.constant 16 : index
    %33 = memref.load %arg2[%32, %c16] : memref<2x20xf32, #tpu.memory_space<smem>>
    %34 = arith.index_cast %arg0 : i32 to index
    %c17 = arith.constant 17 : index
    %35 = memref.load %arg2[%34, %c17] : memref<2x20xf32, #tpu.memory_space<smem>>
    %36 = arith.index_cast %arg0 : i32 to index
    %c18 = arith.constant 18 : index
    %37 = memref.load %arg2[%36, %c18] : memref<2x20xf32, #tpu.memory_space<smem>>
    %38 = arith.index_cast %arg0 : i32 to index
    %c19 = arith.constant 19 : index
    %39 = memref.load %arg2[%38, %c19] : memref<2x20xf32, #tpu.memory_space<smem>>
    %cst = arith.constant 1.000000e+00 : f32
    %40 = arith.divf %cst, %1 : f32
    %cst_0 = arith.constant 1.000000e+00 : f32
    %41 = arith.divf %cst_0, %3 : f32
    %c0_1 = arith.constant 0 : index
    %c0_2 = arith.constant 0 : index
    %c0_3 = arith.constant 0 : index
    %42 = vector.load %arg3[%c0_1, %c0_2, %c0_3] : memref<1x4x1024xf32, #tpu.memory_space<vmem>>, vector<1x1x1024xf32>
    %43 = vector.shape_cast %42 : vector<1x1x1024xf32> to vector<1x1024xf32>
    %c0_4 = arith.constant 0 : index
    %c1_5 = arith.constant 1 : index
    %c0_6 = arith.constant 0 : index
    %44 = vector.load %arg3[%c0_4, %c1_5, %c0_6] : memref<1x4x1024xf32, #tpu.memory_space<vmem>>, vector<1x1x1024xf32>
    %45 = vector.shape_cast %44 : vector<1x1x1024xf32> to vector<1x1024xf32>
    %c0_7 = arith.constant 0 : index
    %c2_8 = arith.constant 2 : index
    %c0_9 = arith.constant 0 : index
    %46 = vector.load %arg3[%c0_7, %c2_8, %c0_9] : memref<1x4x1024xf32, #tpu.memory_space<vmem>>, vector<1x1x1024xf32>
    %47 = vector.shape_cast %46 : vector<1x1x1024xf32> to vector<1x1024xf32>
    %c0_10 = arith.constant 0 : index
    %c3_11 = arith.constant 3 : index
    %c0_12 = arith.constant 0 : index
    %48 = vector.load %arg3[%c0_10, %c3_11, %c0_12] : memref<1x4x1024xf32, #tpu.memory_space<vmem>>, vector<1x1x1024xf32>
    %49 = vector.shape_cast %48 : vector<1x1x1024xf32> to vector<1x1024xf32>
    %50 = vector.broadcast %5 : f32 to vector<1x1024xf32>
    %51 = arith.subf %43, %50 : vector<1x1024xf32>
    %52 = vector.broadcast %40 : f32 to vector<1x1024xf32>
    %53 = arith.mulf %51, %52 : vector<1x1024xf32>
    %54 = vector.broadcast %7 : f32 to vector<1x1024xf32>
    %55 = arith.subf %45, %54 : vector<1x1024xf32>
    %56 = vector.broadcast %41 : f32 to vector<1x1024xf32>
    %57 = arith.mulf %55, %56 : vector<1x1024xf32>
    %58 = vector.broadcast %9 : f32 to vector<1x1024xf32>
    %59 = arith.mulf %58, %53 : vector<1x1024xf32>
    %60 = vector.broadcast %11 : f32 to vector<1x1024xf32>
    %61 = arith.mulf %60, %57 : vector<1x1024xf32>
    %62 = arith.addf %59, %61 : vector<1x1024xf32>
    %63 = vector.broadcast %13 : f32 to vector<1x1024xf32>
    %64 = arith.addf %62, %63 : vector<1x1024xf32>
    %65 = vector.broadcast %17 : f32 to vector<1x1024xf32>
    %66 = arith.mulf %65, %53 : vector<1x1024xf32>
    %67 = vector.broadcast %19 : f32 to vector<1x1024xf32>
    %68 = arith.mulf %67, %57 : vector<1x1024xf32>
    %69 = arith.addf %66, %68 : vector<1x1024xf32>
    %70 = vector.broadcast %21 : f32 to vector<1x1024xf32>
    %71 = arith.addf %69, %70 : vector<1x1024xf32>
    %72 = vector.broadcast %25 : f32 to vector<1x1024xf32>
    %73 = arith.mulf %72, %53 : vector<1x1024xf32>
    %74 = vector.broadcast %27 : f32 to vector<1x1024xf32>
    %75 = arith.mulf %74, %57 : vector<1x1024xf32>
    %76 = arith.addf %73, %75 : vector<1x1024xf32>
    %77 = vector.broadcast %29 : f32 to vector<1x1024xf32>
    %78 = arith.addf %76, %77 : vector<1x1024xf32>
    %79 = arith.mulf %64, %64 : vector<1x1024xf32>
    %80 = arith.mulf %71, %71 : vector<1x1024xf32>
    %81 = arith.addf %79, %80 : vector<1x1024xf32>
    %82 = arith.mulf %78, %78 : vector<1x1024xf32>
    %83 = arith.addf %81, %82 : vector<1x1024xf32>
    %cst_13 = arith.constant 1.000000e-24 : f32
    %84 = vector.broadcast %cst_13 : f32 to vector<1x1024xf32>
    %85 = arith.maximumf %83, %84 : vector<1x1024xf32>
    %86 = math.rsqrt %85 : vector<1x1024xf32>
    %87 = arith.mulf %64, %86 : vector<1x1024xf32>
    %88 = arith.mulf %71, %86 : vector<1x1024xf32>
    %89 = arith.mulf %78, %86 : vector<1x1024xf32>
    %90 = arith.mulf %53, %47 : vector<1x1024xf32>
    %91 = arith.mulf %57, %47 : vector<1x1024xf32>
    %92 = vector.broadcast %9 : f32 to vector<1x1024xf32>
    %93 = arith.mulf %92, %90 : vector<1x1024xf32>
    %94 = vector.broadcast %11 : f32 to vector<1x1024xf32>
    %95 = arith.mulf %94, %91 : vector<1x1024xf32>
    %96 = arith.addf %93, %95 : vector<1x1024xf32>
    %97 = vector.broadcast %13 : f32 to vector<1x1024xf32>
    %98 = arith.mulf %97, %47 : vector<1x1024xf32>
    %99 = arith.addf %96, %98 : vector<1x1024xf32>
    %100 = vector.broadcast %15 : f32 to vector<1x1024xf32>
    %101 = arith.addf %99, %100 : vector<1x1024xf32>
    %102 = vector.broadcast %17 : f32 to vector<1x1024xf32>
    %103 = arith.mulf %102, %90 : vector<1x1024xf32>
    %104 = vector.broadcast %19 : f32 to vector<1x1024xf32>
    %105 = arith.mulf %104, %91 : vector<1x1024xf32>
    %106 = arith.addf %103, %105 : vector<1x1024xf32>
    %107 = vector.broadcast %21 : f32 to vector<1x1024xf32>
    %108 = arith.mulf %107, %47 : vector<1x1024xf32>
    %109 = arith.addf %106, %108 : vector<1x1024xf32>
    %110 = vector.broadcast %23 : f32 to vector<1x1024xf32>
    %111 = arith.addf %109, %110 : vector<1x1024xf32>
    %112 = vector.broadcast %25 : f32 to vector<1x1024xf32>
    %113 = arith.mulf %112, %90 : vector<1x1024xf32>
    %114 = vector.broadcast %27 : f32 to vector<1x1024xf32>
    %115 = arith.mulf %114, %91 : vector<1x1024xf32>
    %116 = arith.addf %113, %115 : vector<1x1024xf32>
    %117 = vector.broadcast %29 : f32 to vector<1x1024xf32>
    %118 = arith.mulf %117, %47 : vector<1x1024xf32>
    %119 = arith.addf %116, %118 : vector<1x1024xf32>
    %120 = vector.broadcast %31 : f32 to vector<1x1024xf32>
    %121 = arith.addf %119, %120 : vector<1x1024xf32>
    %122 = arith.mulf %101, %101 : vector<1x1024xf32>
    %123 = arith.mulf %111, %111 : vector<1x1024xf32>
    %124 = arith.addf %122, %123 : vector<1x1024xf32>
    %125 = arith.mulf %121, %121 : vector<1x1024xf32>
    %126 = arith.addf %124, %125 : vector<1x1024xf32>
    %cst_14 = arith.constant 1.000000e-24 : f32
    %127 = vector.broadcast %cst_14 : f32 to vector<1x1024xf32>
    %128 = arith.maximumf %126, %127 : vector<1x1024xf32>
    %129 = math.rsqrt %128 : vector<1x1024xf32>
    %130 = arith.mulf %126, %129 : vector<1x1024xf32>
    %131 = arith.mulf %101, %87 : vector<1x1024xf32>
    %132 = arith.mulf %111, %88 : vector<1x1024xf32>
    %133 = arith.addf %131, %132 : vector<1x1024xf32>
    %134 = arith.mulf %121, %89 : vector<1x1024xf32>
    %135 = arith.addf %133, %134 : vector<1x1024xf32>
    %cst_15 = arith.constant 0.000000e+00 : f32
    %136 = vector.broadcast %cst_15 : f32 to vector<1x1024xf32>
    %137 = arith.subf %136, %135 : vector<1x1024xf32>
    %138 = arith.mulf %137, %129 : vector<1x1024xf32>
    %139 = arith.mulf %138, %138 : vector<1x1024xf32>
    %cst_16 = arith.constant 1.000000e+00 : f32
    %140 = vector.broadcast %cst_16 : f32 to vector<1x1024xf32>
    %141 = arith.subf %140, %139 : vector<1x1024xf32>
    %cst_17 = arith.constant 9.99999997E-7 : f32
    %142 = vector.broadcast %cst_17 : f32 to vector<1x1024xf32>
    %143 = arith.addf %141, %142 : vector<1x1024xf32>
    %144 = math.sqrt %143 : vector<1x1024xf32>
    %145 = arith.mulf %144, %130 : vector<1x1024xf32>
    %146 = arith.mulf %138, %130 : vector<1x1024xf32>
    %147 = arith.mulf %87, %146 : vector<1x1024xf32>
    %148 = arith.addf %101, %147 : vector<1x1024xf32>
    %149 = arith.mulf %88, %146 : vector<1x1024xf32>
    %150 = arith.addf %111, %149 : vector<1x1024xf32>
    %151 = arith.mulf %89, %146 : vector<1x1024xf32>
    %152 = arith.addf %121, %151 : vector<1x1024xf32>
    %cst_18 = arith.constant 1.500000e+00 : f32
    %153 = vector.broadcast %cst_18 : f32 to vector<1x1024xf32>
    %154 = arith.cmpf olt, %145, %153 : vector<1x1024xf32>
    %155 = arith.mulf %145, %145 : vector<1x1024xf32>
    %cst_19 = arith.constant 2.250000e+00 : f32
    %156 = vector.broadcast %cst_19 : f32 to vector<1x1024xf32>
    %157 = arith.subf %156, %155 : vector<1x1024xf32>
    %cst_20 = arith.constant 0.000000e+00 : f32
    %158 = vector.broadcast %cst_20 : f32 to vector<1x1024xf32>
    %159 = arith.maximumf %157, %158 : vector<1x1024xf32>
    %cst_21 = arith.constant 9.99999997E-7 : f32
    %160 = vector.broadcast %cst_21 : f32 to vector<1x1024xf32>
    %161 = arith.addf %159, %160 : vector<1x1024xf32>
    %162 = math.sqrt %161 : vector<1x1024xf32>
    %163 = arith.mulf %87, %162 : vector<1x1024xf32>
    %164 = arith.subf %148, %163 : vector<1x1024xf32>
    %165 = arith.select %154, %164, %148 : vector<1x1024xi1>, vector<1x1024xf32>
    %166 = arith.mulf %88, %162 : vector<1x1024xf32>
    %167 = arith.subf %150, %166 : vector<1x1024xf32>
    %168 = arith.select %154, %167, %150 : vector<1x1024xi1>, vector<1x1024xf32>
    %169 = arith.mulf %89, %162 : vector<1x1024xf32>
    %170 = arith.subf %152, %169 : vector<1x1024xf32>
    %171 = arith.select %154, %170, %152 : vector<1x1024xi1>, vector<1x1024xf32>
    %172 = arith.mulf %87, %49 : vector<1x1024xf32>
    %173 = arith.addf %165, %172 : vector<1x1024xf32>
    %174 = arith.mulf %88, %49 : vector<1x1024xf32>
    %175 = arith.addf %168, %174 : vector<1x1024xf32>
    %176 = arith.mulf %89, %49 : vector<1x1024xf32>
    %177 = arith.addf %171, %176 : vector<1x1024xf32>
    %c0_22 = arith.constant 0 : index
    %c0_23 = arith.constant 0 : index
    %178 = vector.load %arg4[%c0_22, %c0_23] : memref<81x17xf32, #tpu.memory_space<vmem>>, vector<81x17xf32>
    %179 = vector.extract_strided_slice %178 {offsets = [0, 0], sizes = [16, 3], strides = [1, 1]} : vector<81x17xf32> to vector<16x3xf32>
    %180 = vector.extract_strided_slice %178 {offsets = [0, 16], sizes = [16, 1], strides = [1, 1]} : vector<81x17xf32> to vector<16x1xf32>
    %181 = vector.extract_strided_slice %178 {offsets = [16, 0], sizes = [16, 3], strides = [1, 1]} : vector<81x17xf32> to vector<16x3xf32>
    %182 = vector.extract_strided_slice %178 {offsets = [16, 16], sizes = [16, 1], strides = [1, 1]} : vector<81x17xf32> to vector<16x1xf32>
    %183 = vector.extract_strided_slice %178 {offsets = [32, 0], sizes = [16, 16], strides = [1, 1]} : vector<81x17xf32> to vector<16x16xf32>
    %184 = vector.extract_strided_slice %178 {offsets = [32, 16], sizes = [16, 1], strides = [1, 1]} : vector<81x17xf32> to vector<16x1xf32>
    %185 = vector.extract_strided_slice %178 {offsets = [48, 0], sizes = [16, 16], strides = [1, 1]} : vector<81x17xf32> to vector<16x16xf32>
    %186 = vector.extract_strided_slice %178 {offsets = [48, 16], sizes = [16, 1], strides = [1, 1]} : vector<81x17xf32> to vector<16x1xf32>
    %187 = vector.extract_strided_slice %178 {offsets = [64, 0], sizes = [17, 16], strides = [1, 1]} : vector<81x17xf32> to vector<17x16xf32>
    %188 = vector.extract_strided_slice %178 {offsets = [64, 16], sizes = [17, 1], strides = [1, 1]} : vector<81x17xf32> to vector<17x1xf32>
    %189 = vector.extract_strided_slice %181 {offsets = [0, 0], sizes = [16, 1], strides = [1, 1]} : vector<16x3xf32> to vector<16x1xf32>
    %190 = vector.broadcast %189 : vector<16x1xf32> to vector<16x1024xf32>
    %191 = vector.broadcast %87 : vector<1x1024xf32> to vector<16x1024xf32>
    %192 = arith.mulf %190, %191 : vector<16x1024xf32>
    %193 = vector.extract_strided_slice %181 {offsets = [0, 1], sizes = [16, 1], strides = [1, 1]} : vector<16x3xf32> to vector<16x1xf32>
    %194 = vector.broadcast %193 : vector<16x1xf32> to vector<16x1024xf32>
    %195 = vector.broadcast %88 : vector<1x1024xf32> to vector<16x1024xf32>
    %196 = arith.mulf %194, %195 : vector<16x1024xf32>
    %197 = arith.addf %192, %196 : vector<16x1024xf32>
    %198 = vector.extract_strided_slice %181 {offsets = [0, 2], sizes = [16, 1], strides = [1, 1]} : vector<16x3xf32> to vector<16x1xf32>
    %199 = vector.broadcast %198 : vector<16x1xf32> to vector<16x1024xf32>
    %200 = vector.broadcast %89 : vector<1x1024xf32> to vector<16x1024xf32>
    %201 = arith.mulf %199, %200 : vector<16x1024xf32>
    %202 = arith.addf %197, %201 : vector<16x1024xf32>
    %203 = vector.broadcast %182 : vector<16x1xf32> to vector<16x1024xf32>
    %204 = arith.addf %202, %203 : vector<16x1024xf32>
    %cst_24 = arith.constant 0.000000e+00 : f32
    %205 = vector.broadcast %cst_24 : f32 to vector<16x1024xf32>
    %206 = arith.maximumf %204, %205 : vector<16x1024xf32>
    %cst_25 = arith.constant dense<0.000000e+00> : vector<16x1024xf32>
    %207 = tpu.matmul %183, %206, %cst_25 {dimension_numbers = #tpu.dot_dimension_numbers<[1], [0], [0], [1], [0, 0, 1, 1], [], []>} : vector<16x16xf32>, vector<16x1024xf32>, vector<16x1024xf32> -> vector<16x1024xf32>
    %208 = vector.broadcast %184 : vector<16x1xf32> to vector<16x1024xf32>
    %209 = arith.addf %207, %208 : vector<16x1024xf32>
    %cst_26 = arith.constant 0.000000e+00 : f32
    %210 = vector.broadcast %cst_26 : f32 to vector<16x1024xf32>
    %211 = arith.maximumf %209, %210 : vector<16x1024xf32>
    %cst_27 = arith.constant dense<0.000000e+00> : vector<16x1024xf32>
    %212 = tpu.matmul %185, %211, %cst_27 {dimension_numbers = #tpu.dot_dimension_numbers<[1], [0], [0], [1], [0, 0, 1, 1], [], []>} : vector<16x16xf32>, vector<16x1024xf32>, vector<16x1024xf32> -> vector<16x1024xf32>
    %213 = vector.broadcast %186 : vector<16x1xf32> to vector<16x1024xf32>
    %214 = arith.addf %212, %213 : vector<16x1024xf32>
    %cst_28 = arith.constant 0.000000e+00 : f32
    %215 = vector.broadcast %cst_28 : f32 to vector<16x1024xf32>
    %216 = arith.maximumf %214, %215 : vector<16x1024xf32>
    %cst_29 = arith.constant dense<0.000000e+00> : vector<17x1024xf32>
    %217 = tpu.matmul %187, %216, %cst_29 {dimension_numbers = #tpu.dot_dimension_numbers<[1], [0], [0], [1], [0, 0, 1, 1], [], []>} : vector<17x16xf32>, vector<16x1024xf32>, vector<17x1024xf32> -> vector<17x1024xf32>
    %218 = vector.broadcast %188 : vector<17x1xf32> to vector<17x1024xf32>
    %219 = arith.addf %217, %218 : vector<17x1024xf32>
    %220 = vector.extract_strided_slice %219 {offsets = [0, 0], sizes = [16, 1024], strides = [1, 1]} : vector<17x1024xf32> to vector<16x1024xf32>
    %221 = vector.extract_strided_slice %219 {offsets = [16, 0], sizes = [1, 1024], strides = [1, 1]} : vector<17x1024xf32> to vector<1x1024xf32>
    %222 = vector.extract_strided_slice %179 {offsets = [0, 0], sizes = [16, 1], strides = [1, 1]} : vector<16x3xf32> to vector<16x1xf32>
    %223 = vector.broadcast %222 : vector<16x1xf32> to vector<16x1024xf32>
    %224 = vector.broadcast %87 : vector<1x1024xf32> to vector<16x1024xf32>
    %225 = arith.mulf %223, %224 : vector<16x1024xf32>
    %226 = vector.extract_strided_slice %179 {offsets = [0, 1], sizes = [16, 1], strides = [1, 1]} : vector<16x3xf32> to vector<16x1xf32>
    %227 = vector.broadcast %226 : vector<16x1xf32> to vector<16x1024xf32>
    %228 = vector.broadcast %88 : vector<1x1024xf32> to vector<16x1024xf32>
    %229 = arith.mulf %227, %228 : vector<16x1024xf32>
    %230 = arith.addf %225, %229 : vector<16x1024xf32>
    %231 = vector.extract_strided_slice %179 {offsets = [0, 2], sizes = [16, 1], strides = [1, 1]} : vector<16x3xf32> to vector<16x1xf32>
    %232 = vector.broadcast %231 : vector<16x1xf32> to vector<16x1024xf32>
    %233 = vector.broadcast %89 : vector<1x1024xf32> to vector<16x1024xf32>
    %234 = arith.mulf %232, %233 : vector<16x1024xf32>
    %235 = arith.addf %230, %234 : vector<16x1024xf32>
    %236 = vector.extract_strided_slice %179 {offsets = [0, 0], sizes = [16, 1], strides = [1, 1]} : vector<16x3xf32> to vector<16x1xf32>
    %237 = vector.broadcast %236 : vector<16x1xf32> to vector<16x1024xf32>
    %238 = vector.broadcast %173 : vector<1x1024xf32> to vector<16x1024xf32>
    %239 = arith.mulf %237, %238 : vector<16x1024xf32>
    %240 = vector.extract_strided_slice %179 {offsets = [0, 1], sizes = [16, 1], strides = [1, 1]} : vector<16x3xf32> to vector<16x1xf32>
    %241 = vector.broadcast %240 : vector<16x1xf32> to vector<16x1024xf32>
    %242 = vector.broadcast %175 : vector<1x1024xf32> to vector<16x1024xf32>
    %243 = arith.mulf %241, %242 : vector<16x1024xf32>
    %244 = arith.addf %239, %243 : vector<16x1024xf32>
    %245 = vector.extract_strided_slice %179 {offsets = [0, 2], sizes = [16, 1], strides = [1, 1]} : vector<16x3xf32> to vector<16x1xf32>
    %246 = vector.broadcast %245 : vector<16x1xf32> to vector<16x1024xf32>
    %247 = vector.broadcast %177 : vector<1x1024xf32> to vector<16x1024xf32>
    %248 = arith.mulf %246, %247 : vector<16x1024xf32>
    %249 = arith.addf %244, %248 : vector<16x1024xf32>
    %250 = vector.broadcast %180 : vector<16x1xf32> to vector<16x1024xf32>
    %251 = arith.addf %249, %250 : vector<16x1024xf32>
    %cst_30 = arith.constant 0.000000e+00 : f32
    %252 = vector.broadcast %cst_30 : f32 to vector<1x1024xf32>
    %c0_i32 = arith.constant 0 : i32
    %cst_31 = arith.constant 0.000000e+00 : f32
    %253 = vector.broadcast %cst_31 : f32 to vector<16x1024xf32>
    %254 = arith.maximumf %251, %253 : vector<16x1024xf32>
    %255 = arith.mulf %220, %254 : vector<16x1024xf32>
    %cst_32 = arith.constant dense<0.000000e+00> : vector<1024xf32>
    %256 = vector.multi_reduction <add>, %255, %cst_32 [0] : vector<16x1024xf32> to vector<1024xf32>
    %257 = vector.shape_cast %256 : vector<1024xf32> to vector<1x1024xf32>
    %258 = arith.addf %257, %221 : vector<1x1024xf32>
    %259 = vector.broadcast %258 : vector<1x1024xf32> to vector<16x1024xf32>
    %260 = arith.mulf %235, %259 : vector<16x1024xf32>
    %261 = arith.addf %251, %260 : vector<16x1024xf32>
    %262 = arith.addf %252, %258 : vector<1x1024xf32>
    %c1_i32 = arith.constant 1 : i32
    %cst_33 = arith.constant 0.000000e+00 : f32
    %263 = vector.broadcast %cst_33 : f32 to vector<16x1024xf32>
    %264 = arith.maximumf %261, %263 : vector<16x1024xf32>
    %265 = arith.mulf %220, %264 : vector<16x1024xf32>
    %cst_34 = arith.constant dense<0.000000e+00> : vector<1024xf32>
    %266 = vector.multi_reduction <add>, %265, %cst_34 [0] : vector<16x1024xf32> to vector<1024xf32>
    %267 = vector.shape_cast %266 : vector<1024xf32> to vector<1x1024xf32>
    %268 = arith.addf %267, %221 : vector<1x1024xf32>
    %269 = vector.broadcast %268 : vector<1x1024xf32> to vector<16x1024xf32>
    %270 = arith.mulf %235, %269 : vector<16x1024xf32>
    %271 = arith.addf %261, %270 : vector<16x1024xf32>
    %272 = arith.addf %262, %268 : vector<1x1024xf32>
    %c2_i32 = arith.constant 2 : i32
    %cst_35 = arith.constant 0.000000e+00 : f32
    %273 = vector.broadcast %cst_35 : f32 to vector<16x1024xf32>
    %274 = arith.maximumf %271, %273 : vector<16x1024xf32>
    %275 = arith.mulf %220, %274 : vector<16x1024xf32>
    %cst_36 = arith.constant dense<0.000000e+00> : vector<1024xf32>
    %276 = vector.multi_reduction <add>, %275, %cst_36 [0] : vector<16x1024xf32> to vector<1024xf32>
    %277 = vector.shape_cast %276 : vector<1024xf32> to vector<1x1024xf32>
    %278 = arith.addf %277, %221 : vector<1x1024xf32>
    %279 = vector.broadcast %278 : vector<1x1024xf32> to vector<16x1024xf32>
    %280 = arith.mulf %235, %279 : vector<16x1024xf32>
    %281 = arith.addf %271, %280 : vector<16x1024xf32>
    %282 = arith.addf %272, %278 : vector<1x1024xf32>
    %c3_i32 = arith.constant 3 : i32
    %cst_37 = arith.constant 0.000000e+00 : f32
    %283 = vector.broadcast %cst_37 : f32 to vector<16x1024xf32>
    %284 = arith.maximumf %281, %283 : vector<16x1024xf32>
    %285 = arith.mulf %220, %284 : vector<16x1024xf32>
    %cst_38 = arith.constant dense<0.000000e+00> : vector<1024xf32>
    %286 = vector.multi_reduction <add>, %285, %cst_38 [0] : vector<16x1024xf32> to vector<1024xf32>
    %287 = vector.shape_cast %286 : vector<1024xf32> to vector<1x1024xf32>
    %288 = arith.addf %287, %221 : vector<1x1024xf32>
    %289 = vector.broadcast %288 : vector<1x1024xf32> to vector<16x1024xf32>
    %290 = arith.mulf %235, %289 : vector<16x1024xf32>
    %291 = arith.addf %281, %290 : vector<16x1024xf32>
    %292 = arith.addf %282, %288 : vector<1x1024xf32>
    %c4_i32 = arith.constant 4 : i32
    %cst_39 = arith.constant 0.000000e+00 : f32
    %293 = vector.broadcast %cst_39 : f32 to vector<16x1024xf32>
    %294 = arith.maximumf %291, %293 : vector<16x1024xf32>
    %295 = arith.mulf %220, %294 : vector<16x1024xf32>
    %cst_40 = arith.constant dense<0.000000e+00> : vector<1024xf32>
    %296 = vector.multi_reduction <add>, %295, %cst_40 [0] : vector<16x1024xf32> to vector<1024xf32>
    %297 = vector.shape_cast %296 : vector<1024xf32> to vector<1x1024xf32>
    %298 = arith.addf %297, %221 : vector<1x1024xf32>
    %299 = vector.broadcast %298 : vector<1x1024xf32> to vector<16x1024xf32>
    %300 = arith.mulf %235, %299 : vector<16x1024xf32>
    %301 = arith.addf %291, %300 : vector<16x1024xf32>
    %302 = arith.addf %292, %298 : vector<1x1024xf32>
    %c5_i32 = arith.constant 5 : i32
    %cst_41 = arith.constant 0.000000e+00 : f32
    %303 = vector.broadcast %cst_41 : f32 to vector<16x1024xf32>
    %304 = arith.maximumf %301, %303 : vector<16x1024xf32>
    %305 = arith.mulf %220, %304 : vector<16x1024xf32>
    %cst_42 = arith.constant dense<0.000000e+00> : vector<1024xf32>
    %306 = vector.multi_reduction <add>, %305, %cst_42 [0] : vector<16x1024xf32> to vector<1024xf32>
    %307 = vector.shape_cast %306 : vector<1024xf32> to vector<1x1024xf32>
    %308 = arith.addf %307, %221 : vector<1x1024xf32>
    %309 = vector.broadcast %308 : vector<1x1024xf32> to vector<16x1024xf32>
    %310 = arith.mulf %235, %309 : vector<16x1024xf32>
    %311 = arith.addf %301, %310 : vector<16x1024xf32>
    %312 = arith.addf %302, %308 : vector<1x1024xf32>
    %c6_i32 = arith.constant 6 : i32
    %cst_43 = arith.constant 0.000000e+00 : f32
    %313 = vector.broadcast %cst_43 : f32 to vector<16x1024xf32>
    %314 = arith.maximumf %311, %313 : vector<16x1024xf32>
    %315 = arith.mulf %220, %314 : vector<16x1024xf32>
    %cst_44 = arith.constant dense<0.000000e+00> : vector<1024xf32>
    %316 = vector.multi_reduction <add>, %315, %cst_44 [0] : vector<16x1024xf32> to vector<1024xf32>
    %317 = vector.shape_cast %316 : vector<1024xf32> to vector<1x1024xf32>
    %318 = arith.addf %317, %221 : vector<1x1024xf32>
    %319 = vector.broadcast %318 : vector<1x1024xf32> to vector<16x1024xf32>
    %320 = arith.mulf %235, %319 : vector<16x1024xf32>
    %321 = arith.addf %311, %320 : vector<16x1024xf32>
    %322 = arith.addf %312, %318 : vector<1x1024xf32>
    %c7_i32 = arith.constant 7 : i32
    %cst_45 = arith.constant 0.000000e+00 : f32
    %323 = vector.broadcast %cst_45 : f32 to vector<16x1024xf32>
    %324 = arith.maximumf %321, %323 : vector<16x1024xf32>
    %325 = arith.mulf %220, %324 : vector<16x1024xf32>
    %cst_46 = arith.constant dense<0.000000e+00> : vector<1024xf32>
    %326 = vector.multi_reduction <add>, %325, %cst_46 [0] : vector<16x1024xf32> to vector<1024xf32>
    %327 = vector.shape_cast %326 : vector<1024xf32> to vector<1x1024xf32>
    %328 = arith.addf %327, %221 : vector<1x1024xf32>
    %329 = vector.broadcast %328 : vector<1x1024xf32> to vector<16x1024xf32>
    %330 = arith.mulf %235, %329 : vector<16x1024xf32>
    %331 = arith.addf %321, %330 : vector<16x1024xf32>
    %332 = arith.addf %322, %328 : vector<1x1024xf32>
    %c8_i32 = arith.constant 8 : i32
    %cst_47 = arith.constant 0.000000e+00 : f32
    %333 = vector.broadcast %cst_47 : f32 to vector<16x1024xf32>
    %334 = arith.maximumf %331, %333 : vector<16x1024xf32>
    %335 = arith.mulf %220, %334 : vector<16x1024xf32>
    %cst_48 = arith.constant dense<0.000000e+00> : vector<1024xf32>
    %336 = vector.multi_reduction <add>, %335, %cst_48 [0] : vector<16x1024xf32> to vector<1024xf32>
    %337 = vector.shape_cast %336 : vector<1024xf32> to vector<1x1024xf32>
    %338 = arith.addf %337, %221 : vector<1x1024xf32>
    %339 = vector.broadcast %338 : vector<1x1024xf32> to vector<16x1024xf32>
    %340 = arith.mulf %235, %339 : vector<16x1024xf32>
    %341 = arith.addf %331, %340 : vector<16x1024xf32>
    %342 = arith.addf %332, %338 : vector<1x1024xf32>
    %c9_i32 = arith.constant 9 : i32
    %cst_49 = arith.constant 0.000000e+00 : f32
    %343 = vector.broadcast %cst_49 : f32 to vector<16x1024xf32>
    %344 = arith.maximumf %341, %343 : vector<16x1024xf32>
    %345 = arith.mulf %220, %344 : vector<16x1024xf32>
    %cst_50 = arith.constant dense<0.000000e+00> : vector<1024xf32>
    %346 = vector.multi_reduction <add>, %345, %cst_50 [0] : vector<16x1024xf32> to vector<1024xf32>
    %347 = vector.shape_cast %346 : vector<1024xf32> to vector<1x1024xf32>
    %348 = arith.addf %347, %221 : vector<1x1024xf32>
    %349 = vector.broadcast %348 : vector<1x1024xf32> to vector<16x1024xf32>
    %350 = arith.mulf %235, %349 : vector<16x1024xf32>
    %351 = arith.addf %341, %350 : vector<16x1024xf32>
    %352 = arith.addf %342, %348 : vector<1x1024xf32>
    %353 = arith.mulf %87, %352 : vector<1x1024xf32>
    %354 = arith.addf %173, %353 : vector<1x1024xf32>
    %355 = arith.mulf %88, %352 : vector<1x1024xf32>
    %356 = arith.addf %175, %355 : vector<1x1024xf32>
    %357 = arith.mulf %89, %352 : vector<1x1024xf32>
    %358 = arith.addf %177, %357 : vector<1x1024xf32>
    %359 = vector.broadcast %33 : f32 to vector<1x1024xf32>
    %360 = arith.mulf %359, %354 : vector<1x1024xf32>
    %361 = vector.broadcast %35 : f32 to vector<1x1024xf32>
    %362 = arith.mulf %361, %356 : vector<1x1024xf32>
    %363 = arith.addf %360, %362 : vector<1x1024xf32>
    %364 = vector.broadcast %37 : f32 to vector<1x1024xf32>
    %365 = arith.mulf %364, %358 : vector<1x1024xf32>
    %366 = arith.addf %363, %365 : vector<1x1024xf32>
    %367 = vector.broadcast %39 : f32 to vector<1x1024xf32>
    %368 = arith.addf %366, %367 : vector<1x1024xf32>
    %c0_51 = arith.constant 0 : index
    %c0_52 = arith.constant 0 : index
    %c0_53 = arith.constant 0 : index
    %369 = vector.load %arg5[%c0_51, %c0_52, %c0_53] : memref<1x3x1024xf32, #tpu.memory_space<vmem>>, vector<1x1x1024xf32>
    %370 = vector.shape_cast %369 : vector<1x1x1024xf32> to vector<1x1024xf32>
    %371 = vector.shape_cast %354 : vector<1x1024xf32> to vector<1x1x1024xf32>
    tpu.vector_store %arg5[%c0_51, %c0_52, %c0_53], %371 {strides = array<i32>} : memref<1x3x1024xf32, #tpu.memory_space<vmem>>, vector<1x1x1024xf32>,
    %c0_54 = arith.constant 0 : index
    %c1_55 = arith.constant 1 : index
    %c0_56 = arith.constant 0 : index
    %372 = vector.load %arg5[%c0_54, %c1_55, %c0_56] : memref<1x3x1024xf32, #tpu.memory_space<vmem>>, vector<1x1x1024xf32>
    %373 = vector.shape_cast %372 : vector<1x1x1024xf32> to vector<1x1024xf32>
    %374 = vector.shape_cast %356 : vector<1x1024xf32> to vector<1x1x1024xf32>
    tpu.vector_store %arg5[%c0_54, %c1_55, %c0_56], %374 {strides = array<i32>} : memref<1x3x1024xf32, #tpu.memory_space<vmem>>, vector<1x1x1024xf32>,
    %c0_57 = arith.constant 0 : index
    %c2_58 = arith.constant 2 : index
    %c0_59 = arith.constant 0 : index
    %375 = vector.load %arg5[%c0_57, %c2_58, %c0_59] : memref<1x3x1024xf32, #tpu.memory_space<vmem>>, vector<1x1x1024xf32>
    %376 = vector.shape_cast %375 : vector<1x1x1024xf32> to vector<1x1024xf32>
    %377 = vector.shape_cast %358 : vector<1x1024xf32> to vector<1x1x1024xf32>
    tpu.vector_store %arg5[%c0_57, %c2_58, %c0_59], %377 {strides = array<i32>} : memref<1x3x1024xf32, #tpu.memory_space<vmem>>, vector<1x1x1024xf32>,
    %c0_60 = arith.constant 0 : index
    %c0_61 = arith.constant 0 : index
    %c0_62 = arith.constant 0 : index
    %378 = vector.load %arg6[%c0_60, %c0_61, %c0_62] : memref<1x1x1024xf32, #tpu.memory_space<vmem>>, vector<1x1x1024xf32>
    %379 = vector.shape_cast %378 : vector<1x1x1024xf32> to vector<1x1024xf32>
    %380 = vector.shape_cast %368 : vector<1x1024xf32> to vector<1x1x1024xf32>
    tpu.vector_store %arg6[%c0_60, %c0_61, %c0_62], %380 {strides = array<i32>} : memref<1x1x1024xf32, #tpu.memory_space<vmem>>, vector<1x1x1024xf32>,
    return
  }
  func.func @transform_0(%arg0: i32, %arg1: i32, %arg2: memref<2x20xf32, #tpu.memory_space<smem>>) -> (i32, i32, i32) {
    %c0_i32 = arith.constant 0 : i32
    %c0_i32_0 = arith.constant 0 : i32
    return %arg0, %c0_i32, %arg1 : i32, i32, i32
  }
  func.func @transform_1(%arg0: i32, %arg1: i32, %arg2: memref<2x20xf32, #tpu.memory_space<smem>>) -> (i32, i32) {
    %c0_i32 = arith.constant 0 : i32
    %c0_i32_0 = arith.constant 0 : i32
    %c0_i32_1 = arith.constant 0 : i32
    return %c0_i32, %c0_i32_0 : i32, i32
  }
  func.func @transform_2(%arg0: i32, %arg1: i32, %arg2: memref<2x20xf32, #tpu.memory_space<smem>>) -> (i32, i32, i32) {
    %c0_i32 = arith.constant 0 : i32
    %c0_i32_0 = arith.constant 0 : i32
    return %arg0, %c0_i32, %arg1 : i32, i32, i32
  }
  func.func @transform_3(%arg0: i32, %arg1: i32, %arg2: memref<2x20xf32, #tpu.memory_space<smem>>) -> (i32, i32, i32) {
    %c0_i32 = arith.constant 0 : i32
    %c0_i32_0 = arith.constant 0 : i32
    return %arg0, %c0_i32, %arg1 : i32, i32, i32
  }
}

</mosaic_0001>

<bundles_post_ra>
// kernel: raymarcher_forward_cn.1
= control target key start
LH: loop header
LB: loop body
LE: loop exit
PB: predicated region body
PF: predicated region fallthrough
CT: control target
= control target key end

     0   :  { %s6610_s0 = inlined_call_operand.vmem [shape: f32[2,20], index: 0, kind: input, shape index: {}]   ;;  %s6611_s1 = inlined_call_operand.vmem [shape: f32[2,4,1024], index: 1, kind: input, shape index: {}]   ;;  %s6612_s2 = inlined_call_operand.vmem [shape: f32[81,17], index: 2, kind: input, shape index: {}]   ;;  %s6613_s3 = inlined_call_operand.vmem [shape: f32[2,3,1024], index: 3, kind: output, shape index: {0}]   ;;  %s6614_s4 = inlined_call_operand.hbm [shape: f32[2,1,1024], index: 4, kind: output, shape index: {1}]  }
   0x1   :  { %6836 = sst [smem:[#allocation57_spill]] %s6611_s1  ;;  %s10_s17 = sshll.u32 %s6610_s0, 4  ;;  %s11_s17 = int_to_ptr.vmem [resolvable:$true] %s10_s17 }
   0x2   :  { %s4081_s18 = scalar_lea.vmem %s11_s17, 32  ;;  %p4086_p1 = scmp.lt.s32.totalorder %s11_s17, %s11_s17 }
   0x3   :  { %p4082_p0 = scmp.ne.s32.totalorder %s11_s17, %s4081_s18  ;;  %p4087_p2 = scmp.lt.s32.totalorder %s4081_s18, %s4081_s18 }
   0x5   :  { %p4088_p3 = por %p4087_p2, %p4086_p1 }
   0x7   :  { %p4089_p4 = pnand %p4088_p3, %p4082_p0 }
   0x9   :  { %4092 = shalt.err (!%p4089_p4)  }
   0xa   :  { %s4175_s19 = smov [#allocation3]  }
   0xb   :  { %13 = dma.vmem_to_smem %s11_s17, 32, %s4175_s19, [#allocation2] }
   0xc   :  { %4145 = dma.done.wait [#allocation2], 32 }
   0xd   :  { %4146 = vsyncadd [#allocation2], 4294967264 }
   0xe   :  { %15 = sfence }
   0xf   :  { %16 = vsyncpa [#allocation5], 0 }
  0x10   :  { %18 = vsyncpa [#allocation5 + $0x1], 0  ;;  %s4211_s20 = smov 0   ;;  %s4213_s21 = smov 0  }
  0x11   :  { %s4215_s0 = smov 0   ;;  %s4217_s22 = smov 0  }
  0x12   :  { %s4219_s23 = smov 0   ;;  %s4221_s24 = smov 0  }
  0x13 LB: > { %6837 = sst [smem:[#allocation8_spill]] %s4169_s23  ;;  %s3888_s25 = sadd.s32 4294967295, %s4173_s24   ;;  %s4173_s24 = sphi %s4221_s24, %s24_s24   ;;  %s4169_s23 = sphi %s4219_s23, %s7409_s23   ;;  %s4165_s22 = sphi %s4217_s22, %s7408_s22   ;;  %s4161_s0 = sphi %s4215_s0, %s7412_s0   ;;  %s4157_s21 = sphi %s4213_s21, %s7411_s21   ;;  %s4153_s20 = sphi %s4211_s20, %s7410_s20  }
  0x14   : > { %s3889_s26 = sadd.s32 4294967294, %s4173_s24   ;;  %s36_s27 = sadd.s32 1, %s4169_s23 }
  0x15   : > { %s122_s28 = sadd.s32 1, %s4161_s0  ;;  %p38_p5 = scmp.ge.s32.totalorder %s36_s27, 2 }
  0x16   : > { %p132_p6 = scmp.ne.s32.totalorder %s4161_s0, %s4157_s21  ;;  %p133_p7 = scmp.eq.s32.totalorder %s3888_s25, 1 }
  0x17   : > { %p138_p8 = scmp.ne.s32.totalorder %s4157_s21, %s4153_s20  ;;  %s7414_s27 = smov (%p38_p5, %s36_s27), 0 }
  0x18   : > { %6838 = sst [smem:[#allocation9_spill]] %s7414_s27  ;;  %p4251_p9 = por %p133_p7, %p132_p6 }
  0x19   : > { %p139_p10 = scmp.eq.s32.totalorder %s3889_s26, 1  ;;  %s117_s30 = ssub.s32 %s4169_s23, %s7414_s27 }
  0x1a   : > { %p3892_p11 = scmp.ge.s32.totalorder %s4173_s24, 1  ;;  %p120_p12 = scmp.eq.s32.totalorder %s117_s30, 0 }
  0x1b   : > { %p4258_p13 = por %p139_p10, %p138_p8  ;;  %p173_p0 = scmp.lt.s32.totalorder %s4173_s24, 3 }
  0x1c   : > { %s4264_s6 = scalar_select %p120_p12, %s4161_s0, %s122_s28  }
  0x1d   : > { %p174_p1 = pnand %p3892_p11, %p173_p0 }
  0x1f   : > { %177 = sbr.rel (%p174_p1) target bundleno = 1273 (0x4f9), region = 28 }
  0x26   : > { %v408_v0 = vld [vmem:[%s6612_s2 + $0x10] sm:$0xff]  ;;  %v4176_v1 = vmov 1   ;;  %v4177_v2 = vmov 0   ;;  %s4271_s9 = sshll.u32 %s4165_s22, 7  ;;  %v409_v3 = vld [vmem:[%s6612_s2 + $0x18] sm:$0xff]  ;;  %p211_p2 = scmp.lt.s32.totalorder %s4165_s22, 1 }
  0x27   : > { %4055 = vset.pattern.permute.xlu1 %v4176_v1  ;;  %4054 = vset.pattern.permute.xlu0 %v4177_v2  ;;  %s232_s10 = sld [smem:[#allocation3 + %s4271_s9]]  ;;  %s233_s11 = sadd.s32 1, %s4271_s9  ;;  %v4178_v6 = vmov 2   ;;  %v4179_v7 = vmov 16   ;;  %v4292_v8 = vld [vmem:[%s6612_s2 + $0x20] sm:$0xff]  ;;  %v4297_v9 = vld [vmem:[%s6612_s2 + $0x30] sm:$0xff] }
  0x28   : > { %485 = vperm.xlu1 %4055, %v408_v0   ;;  %419 = vperm.xlu0 %4054, %v408_v0   ;;  %s234_s14 = sld [smem:[#allocation3 + %s233_s11]]  ;;  %s7416_s22 = smov (!%p211_p2, %s4165_s22), 1  ;;  %6841 = vst [vmem:[#allocation10_spill] sm:$0xff] %v4297_v9  ;;  %v4323_v15 = vld [vmem:[%s6612_s2 + $0x28] sm:$0xff]  ;;  %v406_v17 = vld [vmem:[%s6612_s2] sm:$0xff]  ;;  %v4338_v19 = vld [vmem:[%s6612_s2 + $0x38] sm:$0xff] }
  0x29   : > { %s243_s15 = sadd.s32 6, %s4271_s9  ;;  %s251_s17 = sadd.s32 10, %s4271_s9  ;;  %6843 = vst [vmem:[#allocation11_spill] sm:$0xff] %v4338_v19  ;;  %v407_v22 = vld [vmem:[%s6612_s2 + $0x8] sm:$0xff]  ;;  %v6618_v23 = vmov 0.0   ;;  %vm696_vm2 = vcmask 130048  }
  0x2a   : > { %s4283_s16 = sld [smem:[#allocation3 + %s243_s15]]  ;;  %s6615_s18 = sshll.u32 %s7416_s22, 5  ;;  %765 = vmatprep.mubr.f32.mxu0 %v6618_v23  ;;  %842 = vmatprep.mubr.f32.mxu1 %v6618_v23 }
  0x2b   : > { %s4287_s19 = sld [smem:[#allocation3 + %s251_s17]]  ;;  %s259_s11 = sadd.s32 14, %s4271_s9 }
  0x2c   : > { %489 = vperm.xlu1 %4055, %v409_v3   ;;  %424 = vperm.xlu0 %4054, %v409_v3   ;;  %s6842_s1 = sld [smem:[#allocation57_spill]]  ;;  %s235_s7 = sadd.s32 2, %s4271_s9 }
  0x2d   : > { %v271_v4 = vstv %s232_s10  ;;  %s4310_s12 = sld [smem:[#allocation3 + %s259_s11]]  ;;  %s237_s8 = sadd.s32 3, %s4271_s9 }
  0x2e   : > { %4067 = vrcp.f32 %v271_v4  ;;  %v274_v5 = vstv %s234_s14  ;;  %s236_s11 = sld [smem:[#allocation3 + %s235_s7]]  ;;  %s239_s14 = sadd.s32 4, %s4271_s9 }
  0x2f   : > { %4069 = vrcp.f32 %v274_v5  ;;  %s238_s13 = sld [smem:[#allocation3 + %s237_s8]]  ;;  %s247_s15 = sadd.s32 8, %s4271_s9 }
  0x30   : > { %4057 = vset.pattern.permute.xlu1 %v4178_v6  ;;  %4056 = vset.pattern.permute.xlu0 %v4178_v6  ;;  %v297_v12 = vstv %s4283_s16  ;;  %s255_s17 = sadd.s32 12, %s4271_s9  ;;  %s241_s25 = sadd.s32 5, %s4271_s9 }
  0x31   : > { %570 = vperm.xlu1 %4057, %v409_v3   ;;  %566 = vperm.xlu0 %4056, %v408_v0   ;;  %v304_v16 = vstv %s4287_s19  ;;  %s249_s26 = sadd.s32 9, %s4271_s9  ;;  %s257_s28 = sadd.s32 13, %s4271_s9 }
  0x32   : > { %s4304_s10 = scalar_lea.vmem %s6842_s1, %s6615_s18  ;;  %s4362_s30 = sld [smem:[#allocation3 + %s239_s14]] }
  0x33   : > { %v4308_v11 = vld [vmem:[%s4304_s10 + $0x2] ss:$4 sm:$0xff]  ;;  %v311_v20 = vstv %s4310_s12  ;;  %s4364_s18 = sld [smem:[#allocation3 + %s247_s15]]  ;;  %v277_v24 = vld [vmem:[%s4304_s10] ss:$4 sm:$0xff]  ;;  %s245_s14 = sadd.s32 7, %s4271_s9 }
  0x34   : > { %v4318_v14 = vmul.f32 %v4308_v11, %v297_v12  ;;  %v4332_v18 = vmul.f32 %v4308_v11, %v304_v16  ;;  %v4344_v21 = vmul.f32 %v4308_v11, %v311_v20  ;;  %s4366_s1 = sld [smem:[#allocation3 + %s255_s17]]  ;;  %v284_v25 = vstv %s236_s11  ;;  %v3899_v26 = vld [vmem:[%s4304_s10 + $0x1] ss:$4 sm:$0xff]  ;;  %s253_s15 = sadd.s32 11, %s4271_s9 }
  0x35   : > { %4058 = vset.pattern.permute.xlu1 %v4179_v7  ;;  %4059 = vset.pattern.permute.xlu0 %v4179_v7  ;;  %s4368_s27 = sld [smem:[#allocation3 + %s241_s25]]  ;;  %v288_v27 = vstv %s238_s13  ;;  %v285_v28 = vsub.f32 %v277_v24, %v284_v25  ;;  %s261_s17 = sadd.s32 15, %s4271_s9 }
  0x36   : > { %647 = vperm.xlu1 %4058, %v408_v0   ;;  %651 = vperm.xlu0 %4059, %v409_v3   ;;  %s4370_s7 = sld [smem:[#allocation3 + %s249_s26]]  ;;  %v289_v29 = vsub.f32 %v3899_v26, %v288_v27 }
  0x37   : > { %s4372_s8 = sld [smem:[#allocation3 + %s257_s28]]  ;;  %s6563_s28 = scalar_lea.hbm %s6614_s4, %s4271_s9 }
  0x38   : > { %v4068_v10 = vpop.eup %4067  ;;  %v292_v30 = vstv %s4362_s30  ;;  %s4380_s23 = sld [smem:[#allocation3 + %s245_s14]]  ;;  %s267_s14 = sadd.s32 18, %s4271_s9 }
  0x39   : > { %v4070_v13 = vpop.eup %4069  ;;  %3988 = vpush %v4068_v10  ;;  %v299_v32 = vstv %s4364_s18  ;;  %s4385_s11 = sld [smem:[#allocation3 + %s253_s15]] }
  0x3a   : > { %688 = vperm.xlu1 %4058, %v4292_v8   ;;  %1027 = vperm.xlu0 %4059, %v4297_v9   ;;  %3990 = vpush %v4070_v13  ;;  %v306_v33 = vstv %s4366_s1  ;;  %s4387_s13 = sld [smem:[#allocation3 + %s261_s17]]  ;;  %s7404_s1 = sshll.u32 %s7416_s22, 5 }
  0x3b   : > { %v294_v34 = vstv %s4368_s27  ;;  %s228_s16 = scalar_lea.vmem %s6613_s3, %s7404_s1 }
  0x3c   : > { %v301_v37 = vstv %s4370_s7  ;;  %s263_s7 = sadd.s32 16, %s4271_s9 }
  0x3d   : > { %v308_v38 = vstv %s4372_s8  ;;  %s265_s8 = sadd.s32 17, %s4271_s9  ;;  %s264_s15 = sld [smem:[#allocation3 + %s263_s7]] }
  0x3e   : > { %693 = vperm.xlu1 %4058, %v4323_v15   ;;  %4060 = vset.pattern.permute.xlu0 %v4177_v2  ;;  %v330_v55 = vstv %s4380_s23  ;;  %s266_s17 = sld [smem:[#allocation3 + %s265_s8]]  ;;  %s4182_s8 = smov [#allocation4]  }
  0x3f   : > { %1718 = vperm.xlu0 %4060, %v406_v17   ;;  %v337_v63 = vstv %s4385_s11  ;;  %s207_s11 = sand.u32 1, %s4157_s21  }
  0x40   : > { %s3893_s18 = sshll.u32 %s207_s11, 3  ;;  %s3755_s30 = scalar_lea.sflag [#allocation5], %s207_s11 }
  0x41   : > { %s209_s22 = scalar_lea.vmem [#allocation4], %s3893_s18 }
  0x42   : > { %1032 = vperm.xlu1 %4058, %v4338_v19   ;;  %s3775_s19 = sshll.u32 %s209_s22, 4  ;;  %s6565_s19 = int_to_ptr.vmem [resolvable:$true] %s3775_s19 }
  0x43   : > { %4063 = vset.pattern.permute.xlu0 %v4176_v1  ;;  %s4093_s7 = scalar_lea.vmem %s6565_s19, 128 }
  0x44   : > { %1747 = vperm.xlu0 %4063, %v407_v22   ;;  %p4094_p3 = scmp.ne.s32.totalorder %s6565_s19, %s4093_s7 }
  0x46   : > { %4061 = vset.pattern.permute.xlu1 %v4177_v2  ;;  %p4095_p4 = pnand %p4094_p3, %p4251_p9 }
  0x47   : > { %1723 = vperm.xlu1 %4061, %v407_v22  }
  0x48   : > { %4065 = vset.pattern.permute.xlu0 %v4179_v7  ;;  %p4096_p5 = pneg %p4095_p4 }
  0x49   : > { %2026 = vperm.xlu0 %4065, %v406_v17  }
  0x4b   : > { %4062 = vset.pattern.permute.xlu1 %v4176_v1  ;;  %v344_v1 = vstv %s4387_s13 }
  0x4c   : > { %1743 = vperm.xlu1 %4062, %v406_v17  }
  0x50   : > { %4064 = vset.pattern.permute.xlu1 %v4178_v6 }
  0x51   : > { %1783 = vperm.xlu1 %4064, %v406_v17  }
  0x55   : > { %1787 = vperm.xlu1 %4064, %v407_v22  }
  0x59   : > { %4066 = vset.pattern.permute.xlu1 %v4179_v7 }
  0x5a   : > { %2030 = vperm.xlu1 %4066, %v407_v22  }
  0x6a   : > { %s3989_s25 = spop %3988 }
  0x6b   : > { %v286_v31 = vstv %s3989_s25  ;;  %s3991_s26 = spop %3990  ;;  %s268_s25 = sld [smem:[#allocation3 + %s267_s14]] }
  0x6c   : > { %v287_v35 = vmul.f32 %v286_v31, %v285_v28  ;;  %v290_v36 = vstv %s3991_s26  ;;  %s269_s26 = sadd.s32 19, %s4271_s9  ;;  %s4097_s14 = sshll.u32 %s4182_s8, 4  ;;  %s4098_s14 = int_to_ptr.vmem [resolvable:$false] %s4097_s14 }
  0x6d   : > { %v291_v39 = vmul.f32 %v290_v36, %v289_v29  ;;  %s270_s13 = sld [smem:[#allocation3 + %s269_s26]]  ;;  %p4100_p6 = scmp.lt.s32.totalorder %s6565_s19, %s4098_s14 }
  0x6e   : > { %v293_v40 = vmul.f32 %v292_v30, %v287_v35  ;;  %v300_v41 = vmul.f32 %v299_v32, %v287_v35  ;;  %v307_v42 = vmul.f32 %v306_v33, %v287_v35  ;;  %v323_v43 = vmul.f32 %v4308_v11, %v287_v35 }
  0x6f   : > { %v295_v44 = vmul.f32 %v294_v34, %v291_v39  ;;  %v302_v45 = vmul.f32 %v301_v37, %v291_v39  ;;  %v309_v46 = vmul.f32 %v308_v38, %v291_v39  ;;  %v324_v47 = vmul.f32 %v4308_v11, %v291_v39 }
  0x70   : > { %v325_v48 = vmul.f32 %v323_v43, %v292_v30  ;;  %v332_v49 = vmul.f32 %v323_v43, %v299_v32  ;;  %v339_v50 = vmul.f32 %v323_v43, %v306_v33 }
  0x71   : > { %v296_v51 = vadd.f32 %v295_v44, %v293_v40  ;;  %v303_v52 = vadd.f32 %v302_v45, %v300_v41  ;;  %v310_v53 = vadd.f32 %v309_v46, %v307_v42  ;;  %v326_v54 = vmul.f32 %v324_v47, %v294_v34 }
  0x72   : > { %v333_v56 = vmul.f32 %v324_v47, %v301_v37  ;;  %v340_v57 = vmul.f32 %v324_v47, %v308_v38  ;;  %v428_v40 = vlaneseq }
  0x73   : > { %v298_v58 = vadd.f32 %v297_v12, %v296_v51  ;;  %v305_v59 = vadd.f32 %v304_v16, %v303_v52  ;;  %v312_v60 = vadd.f32 %v311_v20, %v310_v53  ;;  %v327_v61 = vadd.f32 %v326_v54, %v325_v48 }
  0x74   : > { %v334_v62 = vadd.f32 %v333_v56, %v332_v49  ;;  %v341_v0 = vadd.f32 %v340_v57, %v339_v50  ;;  %v4426_v49 = vshrl.u32 %v428_v40, 7  ;;  %v3901_v50 = vld [vmem:[%s4304_s10 + $0x3] ss:$4 sm:$0xff] }
  0x75   : > { %v313_v2 = vmul.f32 %v298_v58, %v298_v58  ;;  %v314_v3 = vmul.f32 %v305_v59, %v305_v59  ;;  %v316_v4 = vmul.f32 %v312_v60, %v312_v60  ;;  %v329_v5 = vadd.f32 %v4318_v14, %v327_v61 }
  0x76   : > { %v336_v6 = vadd.f32 %v4332_v18, %v334_v62  ;;  %v343_v7 = vadd.f32 %v4344_v21, %v341_v0  ;;  %6847 = vst [vmem:[#allocation15_spill] sm:$0xff] %v4426_v49  ;;  %v4430_v51 = vsub.s32 1, %v4426_v49  ;;  %v4433_v52 = vsub.s32 3, %v4426_v49 }
  0x77   : > { %v315_v10 = vadd.f32 %v314_v3, %v313_v2  ;;  %v331_v11 = vadd.f32 %v330_v55, %v329_v5  ;;  %v4436_v53 = vsub.s32 0, %v4426_v49  ;;  %v4439_v54 = vsub.s32 2, %v4426_v49 }
  0x78   : > { %v338_v12 = vadd.f32 %v337_v63, %v336_v6  ;;  %v345_v13 = vadd.f32 %v344_v1, %v343_v7  ;;  %6848 = vst [vmem:[#allocation16_spill] sm:$0xff] %v4430_v51  ;;  %6849 = vst [vmem:[#allocation17_spill] sm:$0xff] %v4433_v52  ;;  %v4442_v55 = vsub.s32 5, %v4426_v49  ;;  %v4445_v56 = vsub.s32 7, %v4426_v49 }
  0x79   : > { %v317_v16 = vadd.f32 %v316_v4, %v315_v10  ;;  %v346_v17 = vmul.f32 %v331_v11, %v331_v11  ;;  %6850 = vst [vmem:[#allocation18_spill] sm:$0xff] %v4436_v53  ;;  %6851 = vst [vmem:[#allocation19_spill] sm:$0xff] %v4439_v54  ;;  %v4448_v57 = vsub.s32 4, %v4426_v49  ;;  %v4460_v61 = vsub.s32 6, %v4426_v49 }
  0x7a   : > { %v347_v20 = vmul.f32 %v338_v12, %v338_v12  ;;  %v349_v22 = vmul.f32 %v345_v13, %v345_v13  ;;  %6852 = vst [vmem:[#allocation20_spill] sm:$0xff] %v4442_v55  ;;  %6853 = vst [vmem:[#allocation21_spill] sm:$0xff] %v4445_v56 }
  0x7b   : > { %v318_v24 = vmax.f32 %v317_v16, 1e-24  ;;  %6854 = vst [vmem:[#allocation22_spill] sm:$0xff] %v4448_v57  ;;  %6855 = vst [vmem:[#allocation23_spill] sm:$0xff] %v4460_v61 }
  0x7c   : > { %v348_v25 = vadd.f32 %v347_v20, %v346_v17 }
  0x7d   : > { %4071 = vrsqrt.f32 %v318_v24 }
  0x7e   : > { %v350_v26 = vadd.f32 %v349_v22, %v348_v25 }
  0x80   : > { %v351_v27 = vmax.f32 %v350_v26, 1e-24 }
  0x82   : > { %4073 = vrsqrt.f32 %v351_v27 }
  0x87   : > { %v4072_v28 = vpop.eup %4071 }
  0x88   : > { %v4405_v14 = vmul.f32 %v4072_v28, %v298_v58  ;;  %v4407_v18 = vmul.f32 %v4072_v28, %v305_v59  ;;  %v4409_v21 = vmul.f32 %v4072_v28, %v312_v60 }
  0x8a   : > { %6844 = vst [vmem:[#allocation12_spill] sm:$0xff] %v4405_v14  ;;  %6845 = vst [vmem:[#allocation13_spill] sm:$0xff] %v4407_v18  ;;  %v354_v29 = vmul.f32 %v331_v11, %v4405_v14  ;;  %v355_v30 = vmul.f32 %v338_v12, %v4407_v18  ;;  %v357_v31 = vmul.f32 %v345_v13, %v4409_v21 }
  0x8b   : > { %6846 = vst [vmem:[#allocation14_spill] sm:$0xff] %v4409_v21  ;;  %v4451_v58 = vmul.f32 %v3901_v50, %v4405_v14  ;;  %v4454_v59 = vmul.f32 %v3901_v50, %v4407_v18  ;;  %v4457_v60 = vmul.f32 %v3901_v50, %v4409_v21  ;;  %v4464_v62 = vrot.slane %v4405_v14, %v4430_v51 }
  0x8c   : > { %v356_v32 = vadd.f32 %v355_v30, %v354_v29  ;;  %v4074_v34 = vpop.eup %4073  ;;  %v4468_v63 = vrot.slane %v4407_v18, %v4430_v51  ;;  %v4472_v0 = vrot.slane %v4409_v21, %v4430_v51  ;;  %v4476_v1 = vrot.slane %v4405_v14, %v4433_v52 }
  0x8d   : > { %v4414_v35 = vmul.f32 %v4074_v34, %v350_v26  ;;  %v4480_v2 = vrot.slane %v4407_v18, %v4433_v52  ;;  %v4484_v3 = vrot.slane %v4409_v21, %v4433_v52  ;;  %v4488_v4 = vrot.slane %v4405_v14, %v4436_v53 }
  0x8e   : > { %v358_v33 = vadd.f32 %v357_v31, %v356_v32  ;;  %6856 = vst [vmem:[#allocation24_spill] sm:$0xff] %v4468_v63  ;;  %6857 = vst [vmem:[#allocation25_spill] sm:$0xff] %v4472_v0  ;;  %v4492_v5 = vrot.slane %v4407_v18, %v4436_v53  ;;  %v4496_v6 = vrot.slane %v4409_v21, %v4436_v53 }
  0x8f   : > { %6858 = vst [vmem:[#allocation26_spill] sm:$0xff] %v4480_v2  ;;  %6859 = vst [vmem:[#allocation27_spill] sm:$0xff] %v4484_v3  ;;  %v4500_v7 = vrot.slane %v4405_v14, %v4439_v54  ;;  %v4504_v10 = vrot.slane %v4407_v18, %v4439_v54  ;;  %v4512_v16 = vrot.slane %v4405_v14, %v4442_v55 }
  0x90   : > { %v359_v36 = vsub.f32 0.0, %v358_v33  ;;  %6860 = vst [vmem:[#allocation28_spill] sm:$0xff] %v4492_v5  ;;  %6861 = vst [vmem:[#allocation29_spill] sm:$0xff] %v4496_v6  ;;  %v4516_v17 = vrot.slane %v4407_v18, %v4442_v55  ;;  %v4520_v22 = vrot.slane %v4409_v21, %v4442_v55  ;;  %v4524_v24 = vrot.slane %v4405_v14, %v4445_v56 }
  0x91   : > { %6862 = vst [vmem:[#allocation30_spill] sm:$0xff] %v4504_v10  ;;  %v4532_v27 = vrot.slane %v4407_v18, %v4445_v56  ;;  %v4536_v28 = vrot.slane %v4409_v21, %v4445_v56  ;;  %v4540_v29 = vrot.slane %v4405_v14, %v4448_v57  ;;  %v4544_v30 = vrot.slane %v4407_v18, %v4448_v57 }
  0x92   : > { %v360_v37 = vmul.f32 %v4074_v34, %v359_v36 }
  0x94   : > { %v361_v38 = vmul.f32 %v360_v37, %v360_v37  ;;  %v372_v39 = vmul.f32 %v360_v37, %v4414_v35 }
  0x96   : > { %v362_v41 = vsub.f32 1.0, %v361_v38  ;;  %v373_v42 = vmul.f32 %v372_v39, %v4405_v14  ;;  %v375_v43 = vmul.f32 %v372_v39, %v4407_v18  ;;  %v377_v44 = vmul.f32 %v372_v39, %v4409_v21 }
  0x97   : > { %v4556_v38 = vrot.slane %v4409_v21, %v4448_v57  ;;  %v4560_v39 = vrot.slane %v4405_v14, %v4460_v61 }
  0x98   : > { %v363_v45 = vadd.f32 1e-06, %v362_v41  ;;  %v4420_v46 = vadd.f32 %v373_v42, %v331_v11  ;;  %v4422_v47 = vadd.f32 %v375_v43, %v338_v12  ;;  %v4424_v48 = vadd.f32 %v377_v44, %v345_v13 }
  0x99   : > { %v4508_v11 = vrot.slane %v4409_v21, %v4439_v54  ;;  %6863 = vst [vmem:[#allocation31_spill] sm:$0xff] %v4560_v39  ;;  %v4571_v43 = vrot.slane %v4407_v18, %v4460_v61 }
  0x9a   : > { %4075 = vrsqrt.f32 %v363_v45  ;;  %vm366_vm0 = vcmp.eq.f32.partialorder %v363_v45, inf  ;;  %v369_v13 = vand.u32 2147483648, %v363_v45  ;;  %vm368_vm1 = vcmp.eq.f32.partialorder %v363_v45, 0.0 }
  0x9b   : > { %6864 = vst [vmem:[#allocation32_spill] sm:$0xff] %v4571_v43 }
  0xa4   : > { %v4076_v12 = vpop.eup %4075 }
  0xa5   : > { %v365_v20 = vmul.f32 %v4076_v12, %v363_v45 }
  0xa7   : > { %v4526_v25 = vpop.permute.xlu1 %485  ;;  %v4528_v26 = vpop.permute.xlu0 %419  ;;  %v367_v31 = vsel %vm366_vm0, %v363_v45, %v365_v20 }
  0xa8   : > { %v469_v32 = vmul.f32 %v4464_v62, %v4528_v26  ;;  %v534_v33 = vmul.f32 %v4468_v63, %v4526_v25  ;;  %v471_v34 = vmul.f32 %v4476_v1, %v4528_v26  ;;  %v370_v36 = vsel %vm368_vm1, %v369_v13, %v367_v31 }
  0xa9   : > { %v536_v37 = vmul.f32 %v4480_v2, %v4526_v25  ;;  %v4563_v40 = vmul.f32 %v370_v36, %v4414_v35  ;;  %v468_v41 = vmul.f32 %v4488_v4, %v4528_v26  ;;  %v533_v42 = vmul.f32 %v4492_v5, %v4526_v25 }
  0xaa   : > { %v550_v50 = vadd.f32 %v534_v33, %v469_v32  ;;  %v470_v12 = vmul.f32 %v4500_v7, %v4528_v26  ;;  %v535_v35 = vmul.f32 %v4504_v10, %v4526_v25  ;;  %v4583_v13 = vrot.slane %v4409_v21, %v4460_v61 }
  0xab   : > { %v4573_v44 = vpop.permute.xlu1 %489  ;;  %v4575_v45 = vpop.permute.xlu0 %424  ;;  %v380_v20 = vmul.f32 %v4563_v40, %v4563_v40  ;;  %v552_v32 = vadd.f32 %v536_v37, %v471_v34  ;;  %v549_v55 = vadd.f32 %v533_v42, %v468_v41  ;;  %v473_v57 = vmul.f32 %v4512_v16, %v4528_v26 }
  0xac   : > { %6865 = vst [vmem:[#allocation33_spill] sm:$0xff] %v4583_v13  ;;  %v477_v31 = vmul.f32 %v4464_v62, %v4575_v45  ;;  %v542_v36 = vmul.f32 %v4468_v63, %v4573_v44  ;;  %v479_v33 = vmul.f32 %v4476_v1, %v4575_v45  ;;  %v544_v23 = vmul.f32 %v4480_v2, %v4573_v44 }
  0xad   : > { %v476_v49 = vmul.f32 %v4488_v4, %v4575_v45  ;;  %v541_v56 = vmul.f32 %v4492_v5, %v4573_v44  ;;  %v381_v61 = vsub.f32 2.25, %v380_v20  ;;  %v538_v34 = vmul.f32 %v4516_v17, %v4526_v25 }
  0xae   : > { %v558_v37 = vadd.f32 %v542_v36, %v477_v31  ;;  %v560_v52 = vadd.f32 %v544_v23, %v479_v33  ;;  %v478_v54 = vmul.f32 %v4500_v7, %v4575_v45  ;;  %v543_v51 = vmul.f32 %v4504_v10, %v4573_v44 }
  0xaf   : > { %v382_v53 = vmax.f32 %v381_v61, 0.0  ;;  %v557_v41 = vadd.f32 %v541_v56, %v476_v49  ;;  %v551_v42 = vadd.f32 %v535_v35, %v470_v12  ;;  %v481_v20 = vmul.f32 %v4512_v16, %v4575_v45 }
  0xb0   : > { %v4607_v19 = vpop.permute.xlu1 %570  ;;  %v4609_v9 = vpop.permute.xlu0 %566  ;;  %v559_v63 = vadd.f32 %v543_v51, %v478_v54  ;;  %vm379_vm5 = vcmp.lt.f32.partialorder %v4563_v40, 1.5 }
  0xb1   : > { %v615_v31 = vmul.f32 %v4472_v0, %v4609_v9  ;;  %v623_v23 = vmul.f32 %v4472_v0, %v4607_v19  ;;  %v617_v36 = vmul.f32 %v4484_v3, %v4609_v9  ;;  %v625_v61 = vmul.f32 %v4484_v3, %v4607_v19 }
  0xb2   : > { %v4621_v33 = vadd.f32 1e-06, %v382_v53  ;;  %v614_v49 = vmul.f32 %v4496_v6, %v4609_v9  ;;  %v622_v56 = vmul.f32 %v4496_v6, %v4607_v19  ;;  %v616_v12 = vmul.f32 %v4508_v11, %v4609_v9 }
  0xb3   : > { %v631_v35 = vadd.f32 %v615_v31, %v550_v50  ;;  %v639_v2 = vadd.f32 %v623_v23, %v558_v37  ;;  %v633_v0 = vadd.f32 %v617_v36, %v552_v32  ;;  %v641_v10 = vadd.f32 %v625_v61, %v560_v52 }
  0xb4   : > { %4077 = vrsqrt.f32 %v4621_v33  ;;  %v546_v53 = vmul.f32 %v4516_v17, %v4573_v44  ;;  %v554_v3 = vadd.f32 %v538_v34, %v473_v57  ;;  %v630_v43 = vadd.f32 %v614_v49, %v549_v55 }
  0xb5   : > { %v4632_v5 = vpop.permute.xlu1 %647  ;;  %v4634_v13 = vpop.permute.xlu0 %651  ;;  %v638_v6 = vadd.f32 %v622_v56, %v557_v41  ;;  %v624_v39 = vmul.f32 %v4508_v11, %v4607_v19  ;;  %v632_v50 = vadd.f32 %v616_v12, %v551_v42  ;;  %vm386_vm3 = vcmp.eq.f32.partialorder %v4621_v33, inf }
  0xb6   : > { %v655_v52 = vadd.f32 %v4632_v5, %v631_v35  ;;  %v663_v32 = vadd.f32 %v4634_v13, %v639_v2  ;;  %v657_v51 = vadd.f32 %v4632_v5, %v633_v0  ;;  %v665_v54 = vadd.f32 %v4634_v13, %v641_v10 }
  0xb7   : > { %v654_v57 = vadd.f32 %v4632_v5, %v630_v43  ;;  %v662_v34 = vadd.f32 %v4634_v13, %v638_v6  ;;  %v640_v37 = vadd.f32 %v624_v39, %v559_v63  ;;  %v656_v55 = vadd.f32 %v4632_v5, %v632_v50 }
  0xb8   : > { %v671_v41 = vmax.f32 %v655_v52, 0.0  ;;  %v679_v42 = vmax.f32 %v663_v32, 0.0  ;;  %v673_v31 = vmax.f32 %v657_v51, 0.0  ;;  %v681_v23 = vmax.f32 %v665_v54, 0.0 }
  0xb9   : > { %vm388_vm4 = vcmp.eq.f32.partialorder %v4621_v33, 0.0  ;;  %v4647_v2 = vpop.permute.xlu1 %688  ;;  %v4649_v0 = vpop.permute.xlu0 %1027  ;;  %v670_v10 = vmax.f32 %v654_v57, 0.0  ;;  %v678_v36 = vmax.f32 %v662_v34, 0.0  ;;  %v664_v43 = vadd.f32 %v4634_v13, %v640_v37 }
  0xba   : > { %v672_v6 = vmax.f32 %v656_v55, 0.0  ;;  %v3940_v63 = vpack.c.bf16 %v679_v42, %v671_v41  ;;  %v3944_v39 = vpack.c.bf16 %v681_v23, %v673_v31  ;;  %v562_v61 = vadd.f32 %v546_v53, %v481_v20 }
  0xbb   : > { %v619_v49 = vmul.f32 %v4520_v22, %v4609_v9  ;;  %v3942_v56 = vpack.c.bf16 %v678_v36, %v670_v10  ;;  %v680_v12 = vmax.f32 %v664_v43, 0.0  ;;  %v627_v35 = vmul.f32 %v4520_v22, %v4607_v19 }
  0xbc   : > { %v475_v50 = vmul.f32 %v4524_v24, %v4528_v26  ;;  %v389_v52 = vand.u32 2147483648, %v4621_v33  ;;  %3941 = vmatprep.subr.bf16.mxu0 %v3940_v63  ;;  %3945 = vmatprep.subr.bf16.mxu1 %v3944_v39  ;;  %v483_v51 = vmul.f32 %v4524_v24, %v4575_v45  ;;  %v540_v20 = vmul.f32 %v4532_v27, %v4526_v25 }
  0xbd   : > { %v635_v32 = vadd.f32 %v619_v49, %v554_v3  ;;  %v4663_v53 = vpop.permute.xlu1 %693  ;;  %3943 = vmatpush1.bf16.msra.mxu0 %v3942_v56  ;;  %v3946_v54 = vpack.c.bf16 %v680_v12, %v672_v6  ;;  %v643_v57 = vadd.f32 %v627_v35, %v562_v61  ;;  %v548_v34 = vmul.f32 %v4532_v27, %v4573_v44 }
  0xbe   : > { %v621_v37 = vmul.f32 %v4536_v28, %v4609_v9  ;;  %v4078_v55 = vpop.eup %4077  ;;  %v4670_v3 = vpop.permute.xlu0 %1718  ;;  %v556_v42 = vadd.f32 %v540_v20, %v475_v50  ;;  %v629_v31 = vmul.f32 %v4536_v28, %v4607_v19  ;;  %v472_v23 = vmul.f32 %v4540_v29, %v4528_v26 }
  0xbf   : > { %6866 = vst [vmem:[#allocation34_spill] sm:$0xff] %v4670_v3  ;;  %v659_v41 = vadd.f32 %v4632_v5, %v635_v32  ;;  %v385_v10 = vmul.f32 %v4078_v55, %v4621_v33  ;;  %3947 = vmatpush1.bf16.msra.mxu1 %v3946_v54  ;;  %v4680_v36 = vmul.f32 %v4670_v3, %v4488_v4  ;;  %v6867_v32 = vmov 0.0  }
  0xc0   : > { %v4684_v43 = vmul.f32 %v4670_v3, %v4464_v62  ;;  %v4688_v6 = vmul.f32 %v4670_v3, %v4500_v7  ;;  %v4692_v63 = vmul.f32 %v4670_v3, %v4476_v1  ;;  %v667_v39 = vadd.f32 %v4634_v13, %v643_v57  ;;  %3902 = vmatmul.mubr.msk.f32.vlgmr.msra.gmra.mrb[0].mxu0 %vm696_vm2, %v4292_v8 }
  0xc1   : > { %v675_v61 = vmax.f32 %v659_v41, 0.0  ;;  %v4697_v49 = vmul.f32 %v4670_v3, %v4512_v16  ;;  %v387_v56 = vsel %vm386_vm3, %v4621_v33, %v385_v10  ;;  %v564_v12 = vadd.f32 %v548_v34, %v483_v51  ;;  %771 = vmatprep.mubr.f32.mxu0 %v6867_v32  ;;  %v4713_v57 = vpop.permute.xlu1 %1032 }
  0xc2   : > { %v637_v35 = vadd.f32 %v621_v37, %v556_v42  ;;  %v4706_v50 = vmul.f32 %v4670_v3, %v4524_v24  ;;  %v390_v20 = vsel %vm388_vm4, %v389_v52, %v387_v56  ;;  %v683_v54 = vmax.f32 %v667_v39, 0.0  ;;  %3904 = vmatmul.mubr.msk.f32.vlgmr.msra.gmra.mrb[0].mxu1 %vm696_vm2, %v4292_v8 }
  0xc3   : > { %v480_v55 = vmul.f32 %v4540_v29, %v4575_v45  ;;  %v537_v51 = vmul.f32 %v4544_v30, %v4526_v25  ;;  %v391_v34 = vmul.f32 %v390_v20, %v4405_v14  ;;  %v394_v37 = vmul.f32 %v390_v20, %v4407_v18  ;;  %848 = vmatprep.mubr.f32.mxu1 %v6867_v32 }
  0xc4   : > { %v397_v41 = vmul.f32 %v390_v20, %v4409_v21  ;;  %v645_v33 = vadd.f32 %v629_v31, %v564_v12  ;;  %v3948_v52 = vpack.c.bf16 %v683_v54, %v675_v61  ;;  %v661_v42 = vadd.f32 %v4632_v5, %v637_v35  ;;  %3903 = vmatmul.mubr.msk.f32.gmra.mrb[2].mxu0 %vm696_vm2, %v4323_v15 }
  0xc5   : > { %v545_v10 = vmul.f32 %v4544_v30, %v4573_v44  ;;  %v553_v39 = vadd.f32 %v537_v51, %v472_v23  ;;  %v392_v56 = vsub.f32 %v4420_v46, %v391_v34  ;;  %v395_v14 = vsub.f32 %v4422_v47, %v394_v37  ;;  %919 = vmatprep.mubr.f32.mxu0 %v6867_v32 }
  0xc6   : > { %v398_v18 = vsub.f32 %v4424_v48, %v397_v41  ;;  %v669_v31 = vadd.f32 %v4634_v13, %v645_v33  ;;  %3949 = vmatprep.subr.bf16.mxu0 %v3948_v52  ;;  %v677_v61 = vmax.f32 %v661_v42, 0.0  ;;  %v618_v35 = vmul.f32 %v4556_v38, %v4609_v9  ;;  %3905 = vmatmul.mubr.msk.f32.gmra.mrb[2].mxu1 %vm696_vm2, %v4323_v15  ;;  %v4758_v33 = vpop.permute.xlu1 %1723  ;;  %v6873_v52 = vld [vmem:[#allocation32_spill] sm:$0xff] }
  0xc7   : > { %v561_v12 = vadd.f32 %v545_v10, %v480_v55  ;;  %v626_v23 = vmul.f32 %v4556_v38, %v4607_v19  ;;  %v393_v20 = vsel %vm379_vm5, %v392_v56, %v4420_v46  ;;  %v396_v54 = vsel %vm379_vm5, %v395_v14, %v4422_v47  ;;  %996 = vmatprep.mubr.f32.mxu1 %v6867_v32  ;;  %v6874_v56 = vld [vmem:[#allocation33_spill] sm:$0xff] }
  0xc8   : > { %v399_v55 = vsel %vm379_vm5, %v398_v18, %v4424_v48  ;;  %v685_v51 = vmax.f32 %v669_v31, 0.0  ;;  %v4750_v34 = vadd.f32 %v4451_v58, %v393_v20  ;;  %v4753_v37 = vadd.f32 %v4454_v59, %v396_v54  ;;  %v6871_v48 = vld [vmem:[#allocation31_spill] sm:$0xff]  ;;  %v4766_v58 = vpop.permute.xlu0 %1747 }
  0xc9   : > { %v4756_v41 = vadd.f32 %v4457_v60, %v399_v55  ;;  %v634_v46 = vadd.f32 %v618_v35, %v553_v39  ;;  %v642_v47 = vadd.f32 %v626_v23, %v561_v12  ;;  %v4762_v18 = vmul.f32 %v4670_v3, %v4540_v29  ;;  %6872 = vst [vmem:[#allocation31_spill] sm:$0xff] %v4766_v58  ;;  %v6875_v23 = vld [vmem:[#allocation28_spill] sm:$0xff]  ;;  %v6877_v55 = vld [vmem:[#allocation30_spill] sm:$0xff] }
  0xca   : > { %6868 = vst [vmem:[#allocation35_spill] sm:$0xff] %v4750_v34  ;;  %6869 = vst [vmem:[#allocation36_spill] sm:$0xff] %v4753_v37  ;;  %v3952_v14 = vpack.c.bf16 %v685_v51, %v677_v61  ;;  %v474_v40 = vmul.f32 %v6871_v48, %v4528_v26  ;;  %v482_v60 = vmul.f32 %v6871_v48, %v4575_v45 }
  0xcb   : > { %6870 = vst [vmem:[#allocation37_spill] sm:$0xff] %v4756_v41  ;;  %v658_v59 = vadd.f32 %v4632_v5, %v634_v46  ;;  %v539_v42 = vmul.f32 %v6873_v52, %v4526_v25  ;;  %v547_v10 = vmul.f32 %v6873_v52, %v4573_v44  ;;  %v666_v39 = vadd.f32 %v4634_v13, %v642_v47  ;;  %v6876_v44 = vld [vmem:[#allocation24_spill] sm:$0xff] }
  0xcc   : > { %3953 = vmatprep.subr.bf16.mxu1 %v3952_v14  ;;  %v620_v31 = vmul.f32 %v6874_v56, %v4609_v9  ;;  %v628_v26 = vmul.f32 %v6874_v56, %v4607_v19  ;;  %v1732_v61 = vmul.f32 %v4670_v3, %v6871_v48  ;;  %v1758_v25 = vmul.f32 %v4766_v58, %v6875_v23  ;;  %v6878_v9 = vld [vmem:[#allocation26_spill] sm:$0xff] }
  0xcd   : > { %v674_v12 = vmax.f32 %v658_v59, 0.0  ;;  %v555_v45 = vadd.f32 %v539_v42, %v474_v40  ;;  %v563_v35 = vadd.f32 %v547_v10, %v482_v60  ;;  %v682_v20 = vmax.f32 %v666_v39, 0.0  ;;  %v4794_v59 = vpop.permute.xlu1 %1743 }
  0xce   : > { %v1759_v54 = vmul.f32 %v4766_v58, %v6876_v44  ;;  %v1760_v51 = vmul.f32 %v4766_v58, %v6877_v55  ;;  %v1761_v46 = vmul.f32 %v4766_v58, %v6878_v9  ;;  %v1762_v47 = vmul.f32 %v4766_v58, %v4544_v30 }
  0xcf   : > { %v636_v19 = vadd.f32 %v620_v31, %v555_v45  ;;  %v644_v14 = vadd.f32 %v628_v26, %v563_v35  ;;  %v1763_v40 = vmul.f32 %v4766_v58, %v4516_v17  ;;  %v3950_v60 = vpack.c.bf16 %v682_v20, %v674_v12 }
  0xd0   : > { %v1764_v42 = vmul.f32 %v4766_v58, %v6873_v52  ;;  %v1765_v10 = vmul.f32 %v4766_v58, %v4532_v27  ;;  %v1734_v39 = vmul.f32 %v4758_v33, %v4488_v4  ;;  %v1735_v45 = vmul.f32 %v4758_v33, %v4464_v62 }
  0xd1   : > { %v660_v31 = vadd.f32 %v4632_v5, %v636_v19  ;;  %v668_v26 = vadd.f32 %v4634_v13, %v644_v14  ;;  %v1736_v35 = vmul.f32 %v4758_v33, %v4500_v7  ;;  %3951 = vmatpush1.bf16.msra.mxu0 %v3950_v60  ;;  %v1737_v12 = vmul.f32 %v4758_v33, %v4476_v1 }
  0xd2   : > { %v1738_v20 = vmul.f32 %v4758_v33, %v4540_v29  ;;  %v1739_v4 = vmul.f32 %v4758_v33, %v4512_v16  ;;  %v1740_v5 = vmul.f32 %v4758_v33, %v6871_v48  ;;  %v1741_v62 = vmul.f32 %v4758_v33, %v4524_v24  ;;  %v4820_v16 = vpop.permute.xlu1 %1783 }
  0xd3   : > { %v676_v13 = vmax.f32 %v660_v31, 0.0  ;;  %v684_v19 = vmax.f32 %v668_v26, 0.0  ;;  %v1774_v14 = vadd.f32 %v1758_v25, %v1734_v39  ;;  %v1775_v7 = vadd.f32 %v1759_v54, %v1735_v45 }
  0xd4   : > { %v1776_v60 = vadd.f32 %v1760_v51, %v1736_v35  ;;  %v1777_v21 = vadd.f32 %v1761_v46, %v1737_v12  ;;  %v1778_v58 = vadd.f32 %v1762_v47, %v1738_v20  ;;  %v1779_v41 = vadd.f32 %v1763_v40, %v1739_v4  ;;  %3906 = vmatmul.mubr.msk.f32.vlgmr.msra.gmra.mrb[4].mxu0 %vm696_vm2, %v4292_v8 }
  0xd5   : > { %v3954_v1 = vpack.c.bf16 %v684_v19, %v676_v13  ;;  %v1780_v3 = vadd.f32 %v1764_v42, %v1740_v5  ;;  %v1781_v29 = vadd.f32 %v1765_v10, %v1741_v62  ;;  %v1750_v48 = vmul.f32 %v4794_v59, %v6875_v23  ;;  %925 = vmatprep.mubr.f32.mxu0 %v6867_v32 }
  0xd6   : > { %v1751_v24 = vmul.f32 %v4794_v59, %v6876_v44  ;;  %v1752_v25 = vmul.f32 %v4794_v59, %v6877_v55  ;;  %v1753_v54 = vmul.f32 %v4794_v59, %v6878_v9  ;;  %v1754_v51 = vmul.f32 %v4794_v59, %v4544_v30  ;;  %v4867_v39 = vpop.permute.xlu1 %1787 }
  0xd7   : > { %3955 = vmatpush1.bf16.msra.mxu1 %v3954_v1  ;;  %v1755_v46 = vmul.f32 %v4794_v59, %v4516_v17  ;;  %v1756_v23 = vmul.f32 %v4794_v59, %v6873_v52  ;;  %v1757_v44 = vmul.f32 %v4794_v59, %v4532_v27  ;;  %v1766_v55 = vadd.f32 %v1750_v48, %v4680_v36  ;;  %v6879_v27 = vld [vmem:[#allocation29_spill] sm:$0xff] }
  0xd8   : > { %v1767_v47 = vadd.f32 %v1751_v24, %v4684_v43  ;;  %v1768_v9 = vadd.f32 %v1752_v25, %v4688_v6  ;;  %v1769_v40 = vadd.f32 %v1753_v54, %v4692_v63  ;;  %v1770_v42 = vadd.f32 %v1754_v51, %v4762_v18  ;;  %3907 = vmatmul.mubr.msk.f32.gmra.mrb[6].mxu0 %vm696_vm2, %v4323_v15  ;;  %v6880_v43 = vld [vmem:[#allocation25_spill] sm:$0xff]  ;;  %v6881_v18 = vld [vmem:[#allocation27_spill] sm:$0xff] }
  0xd9   : > { %v1771_v30 = vadd.f32 %v1755_v46, %v4697_v49  ;;  %v1772_v10 = vadd.f32 %v1756_v23, %v1732_v61  ;;  %v1773_v17 = vadd.f32 %v1757_v44, %v4706_v50  ;;  %v1790_v36 = vmul.f32 %v4820_v16, %v6879_v27  ;;  %1103 = vmatprep.mubr.f32.mxu0 %v6867_v32 }
  0xda   : > { %3908 = vmatmul.mubr.msk.f32.vlgmr.msra.gmra.mrb[4].mxu1 %vm696_vm2, %v4292_v8  ;;  %v1791_v6 = vmul.f32 %v4820_v16, %v6880_v43  ;;  %v1792_v63 = vmul.f32 %v4820_v16, %v4508_v11  ;;  %v1793_v49 = vmul.f32 %v4820_v16, %v6881_v18  ;;  %v1794_v50 = vmul.f32 %v4820_v16, %v4556_v38 }
  0xdb   : > { %1002 = vmatprep.mubr.f32.mxu1 %v6867_v32  ;;  %v1795_v8 = vmul.f32 %v4820_v16, %v4520_v22  ;;  %v1796_v52 = vmul.f32 %v4820_v16, %v6874_v56  ;;  %v1797_v61 = vmul.f32 %v4820_v16, %v4536_v28  ;;  %v4869_v31 = vadd.f32 %v1790_v36, %v1766_v55 }
  0xdc   : > { %v4871_v26 = vadd.f32 %v1791_v6, %v1767_v47  ;;  %v4873_v45 = vadd.f32 %v1792_v63, %v1768_v9  ;;  %v4875_v35 = vadd.f32 %v1793_v49, %v1769_v40  ;;  %v4878_v12 = vadd.f32 %v1794_v50, %v1770_v42 }
  0xdd   : > { %6882 = vst [vmem:[#allocation32_spill] sm:$0xff] %v4869_v31  ;;  %v4880_v20 = vadd.f32 %v1795_v8, %v1771_v30  ;;  %v4882_v4 = vadd.f32 %v1796_v52, %v1772_v10  ;;  %v4884_v5 = vadd.f32 %v1797_v61, %v1773_v17  ;;  %v1798_v13 = vmul.f32 %v4867_v39, %v6879_v27  ;;  %v6895_v61 = vld [vmem:[#allocation10_spill] sm:$0xff] }
  0xde   : > { %6883 = vst [vmem:[#allocation33_spill] sm:$0xff] %v4871_v26  ;;  %6884 = vst [vmem:[#allocation28_spill] sm:$0xff] %v4873_v45  ;;  %3909 = vmatmul.mubr.msk.f32.gmra.mrb[6].mxu1 %vm696_vm2, %v4323_v15  ;;  %v1799_v19 = vmul.f32 %v4867_v39, %v6880_v43  ;;  %v1800_v62 = vmul.f32 %v4867_v39, %v4508_v11  ;;  %v1801_v1 = vmul.f32 %v4867_v39, %v6881_v18 }
  0xdf   : > { %6885 = vst [vmem:[#allocation24_spill] sm:$0xff] %v4875_v35  ;;  %6886 = vst [vmem:[#allocation30_spill] sm:$0xff] %v4878_v12  ;;  %v1802_v48 = vmul.f32 %v4867_v39, %v4556_v38  ;;  %v1803_v24 = vmul.f32 %v4867_v39, %v4520_v22  ;;  %v1804_v15 = vmul.f32 %v4867_v39, %v6874_v56  ;;  %1180 = vmatprep.mubr.f32.mxu1 %v6867_v32 }
  0xe0   : > { %6887 = vst [vmem:[#allocation26_spill] sm:$0xff] %v4880_v20  ;;  %6888 = vst [vmem:[#allocation29_spill] sm:$0xff] %v4882_v4  ;;  %v1805_v25 = vmul.f32 %v4867_v39, %v4536_v28  ;;  %v4905_v54 = vadd.f32 %v1798_v13, %v1774_v14  ;;  %v4907_v11 = vadd.f32 %v1799_v19, %v1775_v7  ;;  %v6896_v19 = vld [vmem:[#allocation11_spill] sm:$0xff] }
  0xe1   : > { %6889 = vst [vmem:[#allocation25_spill] sm:$0xff] %v4884_v5  ;;  %v4909_v51 = vadd.f32 %v1800_v62, %v1776_v60  ;;  %v4911_v46 = vadd.f32 %v1801_v1, %v1777_v21  ;;  %v4913_v38 = vadd.f32 %v1802_v48, %v1778_v58  ;;  %v4915_v23 = vadd.f32 %v1803_v24, %v1779_v41 }
  0xe2   : > { %v4917_v22 = vadd.f32 %v1804_v15, %v1780_v3  ;;  %v4919_v56 = vadd.f32 %v1805_v25, %v1781_v29 }
  0xe3   : > { %6890 = vst [vmem:[#allocation27_spill] sm:$0xff] %v4911_v46  ;;  %6891 = vst [vmem:[#allocation38_spill] sm:$0xff] %v4913_v38 }
  0xe4   : > { %6892 = vst [vmem:[#allocation39_spill] sm:$0xff] %v4915_v23  ;;  %6893 = vst [vmem:[#allocation40_spill] sm:$0xff] %v4917_v22 }
  0xe5   : > { %6894 = vst [vmem:[#allocation41_spill] sm:$0xff] %v4919_v56 }
 0x193   : > { %v767_v44 = vpop.f32.mrb[0].mxu0 }
 0x194   : > { %v769_v28 = vpop.f32.mrb[1].mxu0  ;;  %v768_v14 = vadd.f32 %v767_v44, %v4647_v2 }
 0x195   : > { %v844_v55 = vpop.f32.mrb[0].mxu1  ;;  %v770_v7 = vadd.f32 %v769_v28, %v4647_v2 }
 0x196   : > { %v846_v47 = vpop.f32.mrb[1].mxu1  ;;  %v845_v21 = vadd.f32 %v844_v55, %v4647_v2  ;;  %v1009_v40 = vmax.f32 %v768_v14, 0.0 }
 0x197   : > { %v773_v60 = vpop.f32.mrb[2].mxu0  ;;  %v847_v41 = vadd.f32 %v846_v47, %v4647_v2  ;;  %v1010_v17 = vmax.f32 %v770_v7, 0.0 }
 0x198   : > { %v774_v58 = vadd.f32 %v773_v60, %v4663_v53  ;;  %v775_v9 = vpop.f32.mrb[3].mxu0  ;;  %v1011_v43 = vmax.f32 %v845_v21, 0.0 }
 0x199   : > { %v850_v3 = vpop.f32.mrb[2].mxu1  ;;  %v776_v29 = vadd.f32 %v775_v9, %v4663_v53  ;;  %v1012_v18 = vmax.f32 %v847_v41, 0.0 }
 0x19a   : > { %v1017_v42 = vmax.f32 %v774_v58, 0.0  ;;  %v851_v30 = vadd.f32 %v850_v3, %v4663_v53  ;;  %v852_v10 = vpop.f32.mrb[3].mxu1 }
 0x19b   : > { %v1018_v27 = vmax.f32 %v776_v29, 0.0  ;;  %v853_v36 = vadd.f32 %v852_v10, %v4663_v53 }
 0x19c   : > { %v3958_v6 = vpack.c.bf16 %v1017_v42, %v1009_v40  ;;  %v1019_v63 = vmax.f32 %v851_v30, 0.0 }
 0x19d   : > { %v3956_v49 = vpack.c.bf16 %v1018_v27, %v1010_v17  ;;  %v1020_v50 = vmax.f32 %v853_v36, 0.0 }
 0x19e   : > { %v3962_v8 = vpack.c.bf16 %v1019_v63, %v1011_v43  ;;  %v4971_v63 = vld [vmem:[%s6612_s2 + $0x48] sm:$0xff] }
 0x19f   : > { %v3960_v52 = vpack.c.bf16 %v1020_v50, %v1012_v18  ;;  %3957 = vmatprep.subr.bf16.mxu0 %v3956_v49  ;;  %1370 = vperm.xlu0 %4065, %v4971_v63   ;;  %v4978_v18 = vld [vmem:[%s6612_s2 + $0x50] sm:$0x1] }
 0x1a0   : > { %3959 = vmatpush1.bf16.msra.mxu0 %v3958_v6  ;;  %v4966_v6 = vld [vmem:[%s6612_s2 + $0x40] sm:$0xff] }
 0x1a1   : > { %3961 = vmatprep.subr.bf16.mxu1 %v3960_v52  ;;  %1365 = vperm.xlu1 %4066, %v4966_v6  }
 0x1a2   : > { %3963 = vmatpush1.bf16.msra.mxu1 %v3962_v8 }
 0x1a3   : > { %3910 = vmatmul.mubr.msk.f32.vlgmr.msra.gmra.mrb[8].mxu0 %vm696_vm2, %v6895_v61 }
 0x1a4   : > { %1109 = vmatprep.mubr.f32.mxu0 %v6867_v32 }
 0x1a5   : > { %3912 = vmatmul.mubr.msk.f32.vlgmr.msra.gmra.mrb[8].mxu1 %vm696_vm2, %v6895_v61  ;;  %1375 = vperm.xlu1 %4066, %v4978_v18  }
 0x1a6   : > { %1186 = vmatprep.mubr.f32.mxu1 %v6867_v32 }
 0x1a7   : > { %v921_v13 = vpop.f32.mrb[4].mxu0  ;;  %3911 = vmatmul.mubr.msk.f32.gmra.mrb[10].mxu0 %vm696_vm2, %v6896_v19 }
 0x1a8   : > { %v923_v62 = vpop.f32.mrb[5].mxu0  ;;  %1257 = vmatprep.mubr.f32.mxu0 %v6867_v32  ;;  %v922_v1 = vadd.f32 %v921_v13, %v4647_v2 }
 0x1a9   : > { %3913 = vmatmul.mubr.msk.f32.gmra.mrb[10].mxu1 %vm696_vm2, %v6896_v19  ;;  %v924_v48 = vadd.f32 %v923_v62, %v4647_v2 }
 0x1aa   : > { %1334 = vmatprep.mubr.f32.mxu1 %v6867_v32  ;;  %v1013_v14 = vmax.f32 %v922_v1, 0.0 }
 0x1ab   : > { %v927_v24 = vpop.f32.mrb[6].mxu0  ;;  %v1014_v60 = vmax.f32 %v924_v48, 0.0 }
 0x1ac   : > { %v928_v25 = vadd.f32 %v927_v24, %v4663_v53  ;;  %v929_v44 = vpop.f32.mrb[7].mxu0 }
 0x1ad   : > { %v998_v15 = vpop.f32.mrb[4].mxu1  ;;  %v930_v55 = vadd.f32 %v929_v44, %v4663_v53 }
 0x1ae   : > { %v1000_v28 = vpop.f32.mrb[5].mxu1  ;;  %v1021_v47 = vmax.f32 %v928_v25, 0.0  ;;  %v999_v7 = vadd.f32 %v998_v15, %v4647_v2 }
 0x1af   : > { %v1022_v21 = vmax.f32 %v930_v55, 0.0  ;;  %v1001_v58 = vadd.f32 %v1000_v28, %v4647_v2  ;;  %v4079_v2 = vld [vmem:[%s6612_s2 + $0x30] sm:$0xff] }
 0x1b0   : > { %v3966_v9 = vpack.c.bf16 %v1021_v47, %v1013_v14  ;;  %v1015_v30 = vmax.f32 %v999_v7, 0.0 }
 0x1b1   : > { %v1004_v41 = vpop.f32.mrb[6].mxu1  ;;  %v3964_v29 = vpack.c.bf16 %v1022_v21, %v1014_v60  ;;  %v1016_v17 = vmax.f32 %v1001_v58, 0.0 }
 0x1b2   : > { %v1005_v3 = vadd.f32 %v1004_v41, %v4663_v53  ;;  %v1006_v40 = vpop.f32.mrb[7].mxu1 }
 0x1b3   : > { %v1007_v42 = vadd.f32 %v1006_v40, %v4663_v53  ;;  %3965 = vmatprep.subr.bf16.mxu0 %v3964_v29  ;;  %v4080_v53 = vld [vmem:[%s6612_s2 + $0x38] sm:$0xff] }
 0x1b4   : > { %v1023_v10 = vmax.f32 %v1005_v3, 0.0  ;;  %3967 = vmatpush1.bf16.msra.mxu0 %v3966_v9 }
 0x1b5   : > { %v1024_v27 = vmax.f32 %v1007_v42, 0.0 }
 0x1b6   : > { %v3970_v36 = vpack.c.bf16 %v1023_v10, %v1015_v30 }
 0x1b7   : > { %v3968_v43 = vpack.c.bf16 %v1024_v27, %v1016_v17  ;;  %3914 = vmatmul.mubr.msk.f32.vlgmr.msra.gmra.mrb[12].mxu0 %vm696_vm2, %v4079_v2 }
 0x1b8   : > { %1263 = vmatprep.mubr.f32.mxu0 %v6867_v32 }
 0x1b9   : > { %3969 = vmatprep.subr.bf16.mxu1 %v3968_v43 }
 0x1ba   : > { %3971 = vmatpush1.bf16.msra.mxu1 %v3970_v36 }
 0x1bb   : > { %3915 = vmatmul.mubr.msk.f32.gmra.mrb[14].mxu0 %vm696_vm2, %v4080_v53 }
 0x1bc   : > { %1448 = vmatprep.mubr.f32.mxu0 %v6867_v32 }
 0x1bd   : > { %3916 = vmatmul.mubr.msk.f32.vlgmr.msra.gmra.mrb[12].mxu1 %vm696_vm2, %v4079_v2 }
 0x1be   : > { %1340 = vmatprep.mubr.f32.mxu1 %v6867_v32 }
 0x1c1   : > { %3917 = vmatmul.mubr.msk.f32.gmra.mrb[14].mxu1 %vm696_vm2, %v4080_v53 }
 0x1c2   : > { %1531 = vmatprep.mubr.f32.mxu1 %v6867_v32 }
 0x276   : > { %v1105_v49 = vpop.f32.mrb[8].mxu0 }
 0x277   : > { %v1107_v50 = vpop.f32.mrb[9].mxu0  ;;  %v1106_v52 = vadd.f32 %v1105_v49, %v4649_v0 }
 0x278   : > { %v1182_v8 = vpop.f32.mrb[8].mxu1  ;;  %v1108_v13 = vadd.f32 %v1107_v50, %v4649_v0 }
 0x279   : > { %v1184_v61 = vpop.f32.mrb[9].mxu1  ;;  %v1183_v62 = vadd.f32 %v1182_v8, %v4649_v0  ;;  %v1347_v44 = vmax.f32 %v1106_v52, 0.0 }
 0x27a   : > { %v1111_v19 = vpop.f32.mrb[10].mxu0  ;;  %v1185_v24 = vadd.f32 %v1184_v61, %v4649_v0  ;;  %v1348_v47 = vmax.f32 %v1108_v13, 0.0 }
 0x27b   : > { %v1112_v1 = vadd.f32 %v1111_v19, %v4713_v57  ;;  %v1113_v48 = vpop.f32.mrb[11].mxu0  ;;  %v1349_v21 = vmax.f32 %v1183_v62, 0.0 }
 0x27c   : > { %v1188_v15 = vpop.f32.mrb[10].mxu1  ;;  %v1114_v25 = vadd.f32 %v1113_v48, %v4713_v57  ;;  %v1350_v41 = vmax.f32 %v1185_v24, 0.0 }
 0x27d   : > { %v1355_v28 = vmax.f32 %v1112_v1, 0.0  ;;  %v1189_v55 = vadd.f32 %v1188_v15, %v4713_v57  ;;  %v1190_v14 = vpop.f32.mrb[11].mxu1 }
 0x27e   : > { %v1356_v7 = vmax.f32 %v1114_v25, 0.0  ;;  %v1191_v60 = vadd.f32 %v1190_v14, %v4713_v57 }
 0x27f   : > { %v3974_v58 = vpack.c.bf16 %v1355_v28, %v1347_v44  ;;  %v1357_v9 = vmax.f32 %v1189_v55, 0.0 }
 0x280   : > { %v3972_v3 = vpack.c.bf16 %v1356_v7, %v1348_v47  ;;  %v1358_v29 = vmax.f32 %v1191_v60, 0.0 }
 0x281   : > { %v3978_v40 = vpack.c.bf16 %v1357_v9, %v1349_v21  ;;  %v6898_v21 = vld [vmem:[#allocation16_spill] sm:$0xff] }
 0x282   : > { %v3976_v42 = vpack.c.bf16 %v1358_v29, %v1350_v41  ;;  %3973 = vmatprep.subr.bf16.mxu0 %v3972_v3  ;;  %v6900_v3 = vld [vmem:[#allocation17_spill] sm:$0xff]  ;;  %v6901_v29 = vld [vmem:[#allocation22_spill] sm:$0xff] }
 0x283   : > { %3975 = vmatpush1.bf16.msra.mxu0 %v3974_v58  ;;  %v6899_v58 = vld [vmem:[#allocation19_spill] sm:$0xff] }
 0x284   : > { %3977 = vmatprep.subr.bf16.mxu1 %v3976_v42  ;;  %v1834_v9 = vrot.slane %v4750_v34, %v6899_v58  ;;  %v1895_v42 = vrot.slane %v4753_v37, %v6900_v3 }
 0x285   : > { %3979 = vmatpush1.bf16.msra.mxu1 %v3978_v40  ;;  %v1891_v40 = vrot.slane %v4753_v37, %v6899_v58 }
 0x286   : > { %3918 = vmatmul.mubr.msk.f32.vlgmr.msra.gmra.mrb[16].mxu0 %vm696_vm2, %v4966_v6  ;;  %v1873_v38 = vmul.f32 %v1834_v9, %v4758_v33 }
 0x287   : > { %1454 = vmatprep.mubr.f32.mxu0 %v6867_v32 }
 0x288   : > { %3921 = vmatmul.mubr.msk.f32.vlgmr.msra.gmra.mrb[16].mxu1 %vm696_vm2, %v4966_v6 }
 0x289   : > { %1537 = vmatprep.mubr.f32.mxu1 %v6867_v32 }
 0x28a   : > { %v1259_v30 = vpop.f32.mrb[12].mxu0  ;;  %3919 = vmatmul.mubr.msk.f32.gmra.mrb[18].mxu0 %vm696_vm2, %v4971_v63 }
 0x28b   : > { %v1261_v10 = vpop.f32.mrb[13].mxu0  ;;  %1460 = vmatprep.mubr.f32.mxu0 %v6867_v32  ;;  %v1260_v17 = vadd.f32 %v1259_v30, %v4649_v0  ;;  %v6902_v30 = vld [vmem:[#allocation20_spill] sm:$0xff] }
 0x28c   : > { %3922 = vmatmul.mubr.msk.f32.gmra.mrb[18].mxu1 %vm696_vm2, %v4971_v63  ;;  %v1262_v27 = vadd.f32 %v1261_v10, %v4649_v0  ;;  %v5053_v10 = vrot.slane %v4750_v34, %v6902_v30 }
 0x28d   : > { %1543 = vmatprep.mubr.f32.mxu1 %v6867_v32  ;;  %v1351_v8 = vmax.f32 %v1260_v17, 0.0  ;;  %v6903_v17 = vld [vmem:[#allocation23_spill] sm:$0xff] }
 0x28e   : > { %v1265_v36 = vpop.f32.mrb[14].mxu0  ;;  %3920 = vmatmul.mubr.msk.f32.gmra.mrb[20].mxu0 %vm696_vm2, %v4978_v18  ;;  %v1352_v13 = vmax.f32 %v1262_v27, 0.0  ;;  %v5057_v27 = vrot.slane %v4750_v34, %v6903_v17 }
 0x28f   : > { %v1266_v2 = vadd.f32 %v1265_v36, %v4713_v57  ;;  %v1267_v53 = vpop.f32.mrb[15].mxu0  ;;  %1614 = vmatprep.mubr.f32.mxu0 %v6867_v32  ;;  %v6904_v36 = vld [vmem:[#allocation21_spill] sm:$0xff] }
 0x290   : > { %v1336_v43 = vpop.f32.mrb[12].mxu1  ;;  %v1268_v50 = vadd.f32 %v1267_v53, %v4713_v57  ;;  %3923 = vmatmul.mubr.msk.f32.gmra.mrb[20].mxu1 %vm696_vm2, %v4978_v18  ;;  %v6905_v53 = vld [vmem:[#allocation34_spill] sm:$0xff] }
 0x291   : > { %v1338_v49 = vpop.f32.mrb[13].mxu1  ;;  %v1359_v52 = vmax.f32 %v1266_v2, 0.0  ;;  %1697 = vmatprep.mubr.f32.mxu1 %v6867_v32  ;;  %v1337_v61 = vadd.f32 %v1336_v43, %v4649_v0  ;;  %v5061_v43 = vrot.slane %v4750_v34, %v6904_v36  ;;  %v5065_v2 = vrot.slane %v4753_v37, %v6901_v29 }
 0x292   : > { %v1360_v19 = vmax.f32 %v1268_v50, 0.0  ;;  %v1339_v62 = vadd.f32 %v1338_v49, %v4649_v0  ;;  %v6897_v0 = vld [vmem:[#allocation18_spill] sm:$0xff]  ;;  %v5070_v50 = vrot.slane %v4753_v37, %v6902_v30 }
 0x293   : > { %v3982_v1 = vpack.c.bf16 %v1359_v52, %v1351_v8  ;;  %v1353_v28 = vmax.f32 %v1337_v61, 0.0  ;;  %v1883_v41 = vrot.slane %v4753_v37, %v6897_v0  ;;  %v5074_v8 = vrot.slane %v4753_v37, %v6903_v17 }
 0x294   : > { %v1342_v48 = vpop.f32.mrb[14].mxu1  ;;  %v3980_v15 = vpack.c.bf16 %v1360_v19, %v1352_v13  ;;  %v1354_v14 = vmax.f32 %v1339_v62, 0.0  ;;  %v5078_v52 = vrot.slane %v4753_v37, %v6904_v36  ;;  %v1865_v13 = vmul.f32 %v1834_v9, %v6905_v53 }
 0x295   : > { %v1343_v24 = vadd.f32 %v1342_v48, %v4713_v57  ;;  %v1344_v25 = vpop.f32.mrb[15].mxu1  ;;  %v1920_v19 = vmul.f32 %v1883_v41, %v4794_v59 }
 0x296   : > { %v1345_v44 = vadd.f32 %v1344_v25, %v4713_v57  ;;  %3981 = vmatprep.subr.bf16.mxu0 %v3980_v15  ;;  %v1826_v57 = vrot.slane %v4750_v34, %v6897_v0  ;;  %v1923_v15 = vmul.f32 %v1895_v42, %v4794_v59  ;;  %v1868_v25 = vmul.f32 %v5053_v10, %v6905_v53 }
 0x297   : > { %v1361_v55 = vmax.f32 %v1343_v24, 0.0  ;;  %3983 = vmatpush1.bf16.msra.mxu0 %v3982_v1  ;;  %v1922_v24 = vmul.f32 %v1891_v40, %v4794_v59 }
 0x298   : > { %v1362_v47 = vmax.f32 %v1345_v44, 0.0  ;;  %v1863_v49 = vmul.f32 %v1826_v57, %v6905_v53  ;;  %v1869_v44 = vmul.f32 %v5057_v27, %v6905_v53 }
 0x299   : > { %v3986_v7 = vpack.c.bf16 %v1361_v55, %v1353_v28  ;;  %v1870_v28 = vmul.f32 %v5061_v43, %v6905_v53  ;;  %v1924_v55 = vmul.f32 %v5065_v2, %v4794_v59  ;;  %v1938_v22 = vadd.f32 %v1922_v24, %v1865_v13 }
 0x29a   : > { %v3984_v60 = vpack.c.bf16 %v1362_v47, %v1354_v14  ;;  %3924 = vmatmul.mubr.msk.f32.vlgmr.msra.gmra.mrb[22].mxu0 %vm696_vm2, %v4966_v6  ;;  %v1925_v14 = vmul.f32 %v5070_v50, %v4794_v59  ;;  %v1926_v47 = vmul.f32 %v5074_v8, %v4794_v59 }
 0x29b   : > { %1620 = vmatprep.mubr.f32.mxu0 %v6867_v32 }
 0x29c   : > { %3985 = vmatprep.subr.bf16.mxu1 %v3984_v60  ;;  %v6906_v60 = vld [vmem:[#allocation37_spill] sm:$0xff]  ;;  %v1941_v13 = vadd.f32 %v1925_v14, %v1868_v25 }
 0x29d   : > { %3987 = vmatpush1.bf16.msra.mxu1 %v3986_v7  ;;  %v1927_v7 = vmul.f32 %v5078_v52, %v4794_v59  ;;  %v1964_v5 = vrot.slane %v6906_v60, %v6899_v58  ;;  %v1968_v23 = vrot.slane %v6906_v60, %v6900_v3 }
 0x29e   : > { %3925 = vmatmul.mubr.msk.f32.gmra.mrb[24].mxu0 %vm696_vm2, %v4971_v63 }
 0x29f   : > { %1626 = vmatprep.mubr.f32.mxu0 %v6867_v32  ;;  %v2003_v9 = vmul.f32 %v1964_v5, %v4867_v39 }
 0x2a0   : > { %3927 = vmatmul.mubr.msk.f32.vlgmr.msra.gmra.mrb[22].mxu1 %vm696_vm2, %v4966_v6  ;;  %v1830_v6 = vrot.slane %v4750_v34, %v6898_v21 }
 0x2a1   : > { %1703 = vmatprep.mubr.f32.mxu1 %v6867_v32 }
 0x2a2   : > { %3926 = vmatmul.mubr.msk.f32.gmra.mrb[26].mxu0 %vm696_vm2, %v4978_v18  ;;  %v1864_v61 = vmul.f32 %v1830_v6, %v6905_v53 }
 0x2a4   : > { %3928 = vmatmul.mubr.msk.f32.gmra.mrb[24].mxu1 %vm696_vm2, %v4971_v63  ;;  %v1887_v63 = vrot.slane %v4753_v37, %v6898_v21  ;;  %v1956_v37 = vrot.slane %v6906_v60, %v6897_v0 }
 0x2a5   : > { %1709 = vmatprep.mubr.f32.mxu1 %v6867_v32  ;;  %v1838_v32 = vrot.slane %v4750_v34, %v6900_v3  ;;  %v1996_v3 = vmul.f32 %v1968_v23, %v4820_v16 }
 0x2a6   : > { %v1921_v62 = vmul.f32 %v1887_v63, %v4794_v59  ;;  %v1993_v20 = vmul.f32 %v1956_v37, %v4820_v16  ;;  %v5114_v59 = vrot.slane %v6906_v60, %v6901_v29  ;;  %v2001_v46 = vmul.f32 %v1956_v37, %v4867_v39  ;;  %v5158_v37 = vpop.permute.xlu1 %2030 }
 0x2a7   : > { %v1866_v1 = vmul.f32 %v1838_v32, %v6905_v53 }
 0x2a8   : > { %3929 = vmatmul.mubr.msk.f32.gmra.mrb[26].mxu1 %vm696_vm2, %v4978_v18  ;;  %v5045_v18 = vrot.slane %v4750_v34, %v6901_v29  ;;  %v1936_v34 = vadd.f32 %v1920_v19, %v1863_v49  ;;  %v1937_v56 = vadd.f32 %v1921_v62, %v1864_v61  ;;  %v5118_v49 = vrot.slane %v6906_v60, %v6902_v30 }
 0x2a9   : > { %v1939_v4 = vadd.f32 %v1923_v15, %v1866_v1  ;;  %v1995_v61 = vmul.f32 %v1964_v5, %v4820_v16  ;;  %v5124_v19 = vrot.slane %v6906_v60, %v6903_v17  ;;  %v1942_v62 = vadd.f32 %v1926_v47, %v1869_v44  ;;  %v6907_v15 = vld [vmem:[#allocation31_spill] sm:$0xff] }
 0x2aa   : > { %v1867_v48 = vmul.f32 %v5045_v18, %v6905_v53  ;;  %v1960_v53 = vrot.slane %v6906_v60, %v6898_v21  ;;  %v5129_v29 = vrot.slane %v6906_v60, %v6904_v36  ;;  %v1997_v30 = vmul.f32 %v5114_v59, %v4820_v16 }
 0x2ab   : > { %v1998_v1 = vmul.f32 %v5118_v49, %v4820_v16  ;;  %v2009_v24 = vadd.f32 %v1993_v20, %v1936_v34  ;;  %v1871_v17 = vmul.f32 %v1826_v57, %v4758_v33  ;;  %v1928_v25 = vmul.f32 %v1883_v41, %v6907_v15 }
 0x2ac   : > { %v1994_v21 = vmul.f32 %v1960_v53, %v4820_v16  ;;  %v1940_v58 = vadd.f32 %v1924_v55, %v1867_v48  ;;  %v1999_v48 = vmul.f32 %v5124_v19, %v4820_v16  ;;  %v5139_v55 = vpop.permute.xlu0 %2026  ;;  %v2011_v14 = vadd.f32 %v1995_v61, %v1938_v22 }
 0x2ad   : > { %v1872_v36 = vmul.f32 %v1830_v6, %v4758_v33  ;;  %v1929_v47 = vmul.f32 %v1887_v63, %v6907_v15  ;;  %v2012_v60 = vadd.f32 %v1996_v3, %v1939_v4  ;;  %v1930_v12 = vmul.f32 %v1891_v40, %v6907_v15 }
 0x2ae   : > { %v2010_v44 = vadd.f32 %v1994_v21, %v1937_v56  ;;  %v2000_v34 = vmul.f32 %v5129_v29, %v4820_v16  ;;  %v1874_v20 = vmul.f32 %v1838_v32, %v4758_v33  ;;  %v1931_v57 = vmul.f32 %v1895_v42, %v6907_v15 }
 0x2af   : > { %v2002_v22 = vmul.f32 %v1960_v53, %v4867_v39  ;;  %v2013_v56 = vadd.f32 %v1997_v30, %v1940_v58  ;;  %v5152_v6 = vadd.f32 %v5139_v55, %v2009_v24  ;;  %v1944_v4 = vadd.f32 %v1928_v25, %v1871_v17 }
 0x2b0   : > { %v1943_v41 = vadd.f32 %v1927_v7, %v1870_v28  ;;  %v5156_v63 = vadd.f32 %v5139_v55, %v2010_v44  ;;  %v1945_v16 = vadd.f32 %v1929_v47, %v1872_v36  ;;  %v2004_v32 = vmul.f32 %v1968_v23, %v4867_v39  ;;  %v5200_v47 = vpop.permute.xlu0 %1370 }
 0x2b1   : > { %v5162_v40 = vadd.f32 %v5139_v55, %v2011_v14  ;;  %v5165_v42 = vadd.f32 %v5139_v55, %v2012_v60  ;;  %v1946_v53 = vadd.f32 %v1930_v12, %v1873_v38  ;;  %v2017_v21 = vadd.f32 %v2001_v46, %v1944_v4  ;;  %v5182_v60 = vpop.permute.xlu1 %1365 }
 0x2b2   : > { %v5167_v61 = vadd.f32 %v1998_v1, %v1941_v13  ;;  %v5169_v5 = vadd.f32 %v1999_v48, %v1942_v62  ;;  %v1947_v28 = vadd.f32 %v1931_v57, %v1874_v20  ;;  %v2018_v7 = vadd.f32 %v2002_v22, %v1945_v16 }
 0x2b3   : > { %v5171_v58 = vadd.f32 %v2000_v34, %v1943_v41  ;;  %v5174_v3 = vadd.f32 %v5139_v55, %v2013_v56  ;;  %v2049_v23 = vmax.f32 %v5152_v6, 0.0  ;;  %v2019_v30 = vadd.f32 %v2003_v9, %v1946_v53 }
 0x2b4   : > { %v2050_v24 = vmax.f32 %v5156_v63, 0.0  ;;  %v1875_v12 = vmul.f32 %v5045_v18, %v4758_v33  ;;  %v1932_v46 = vmul.f32 %v5065_v2, %v6907_v15  ;;  %v2020_v38 = vadd.f32 %v2004_v32, %v1947_v28 }
 0x2b5   : > { %v2051_v62 = vmax.f32 %v5162_v40, 0.0  ;;  %v2052_v1 = vmax.f32 %v5165_v42, 0.0  ;;  %v1876_v48 = vmul.f32 %v5053_v10, %v4758_v33  ;;  %v5189_v17 = vadd.f32 %v5158_v37, %v2017_v21 }
 0x2b6   : > { %v1877_v18 = vmul.f32 %v5057_v27, %v4758_v33  ;;  %v1878_v2 = vmul.f32 %v5061_v43, %v4758_v33  ;;  %v1933_v44 = vmul.f32 %v5070_v50, %v6907_v15  ;;  %v5198_v14 = vadd.f32 %v5158_v37, %v2018_v7 }
 0x2b7   : > { %v1934_v10 = vmul.f32 %v5074_v8, %v6907_v15  ;;  %v1935_v34 = vmul.f32 %v5078_v52, %v6907_v15  ;;  %v5207_v27 = vadd.f32 %v5158_v37, %v2019_v30  ;;  %v1948_v50 = vadd.f32 %v1932_v46, %v1875_v12 }
 0x2b8   : > { %v2005_v20 = vmul.f32 %v5114_v59, %v4867_v39  ;;  %v5215_v57 = vadd.f32 %v5158_v37, %v2020_v38  ;;  %v2006_v52 = vmul.f32 %v5118_v49, %v4867_v39  ;;  %v2057_v15 = vmax.f32 %v5189_v17, 0.0 }
 0x2b9   : > { %v2007_v59 = vmul.f32 %v5124_v19, %v4867_v39  ;;  %v2058_v41 = vmax.f32 %v5198_v14, 0.0  ;;  %v2059_v53 = vmax.f32 %v5207_v27, 0.0 }
 0x2ba   : > { %v2060_v19 = vmax.f32 %v5215_v57, 0.0 }
 0x359   : > { %v1450_v13 = vpop.f32.mrb[16].mxu0 }
 0x35a   : > { %v1452_v25 = vpop.f32.mrb[17].mxu0  ;;  %v5210_v33 = vadd.f32 %v1450_v13, %v5182_v60 }
 0x35b   : > { %v1533_v36 = vpop.f32.mrb[16].mxu1  ;;  %v5218_v22 = vadd.f32 %v1452_v25, %v5182_v60  ;;  %v1949_v25 = vadd.f32 %v1933_v44, %v1876_v48 }
 0x35c   : > { %6908 = vst [vmem:[#allocation10_spill] sm:$0xff] %v5210_v33  ;;  %v1535_v43 = vpop.f32.mrb[17].mxu1  ;;  %v5224_v56 = vadd.f32 %v1533_v36, %v5182_v60  ;;  %v2065_v21 = vmul.f32 %v2049_v23, %v5210_v33 }
 0x35d   : > { %6909 = vst [vmem:[#allocation11_spill] sm:$0xff] %v5218_v22  ;;  %v1456_v8 = vpop.f32.mrb[18].mxu0  ;;  %v5233_v16 = vadd.f32 %v1535_v43, %v5182_v60  ;;  %v2066_v12 = vmul.f32 %v2050_v24, %v5218_v22  ;;  %v2022_v44 = vadd.f32 %v2006_v52, %v1949_v25 }
 0x35e   : > { %6910 = vst [vmem:[#allocation18_spill] sm:$0xff] %v5224_v56  ;;  %v5227_v4 = vadd.f32 %v1456_v8, %v5200_v47  ;;  %v1458_v9 = vpop.f32.mrb[19].mxu0  ;;  %v2067_v36 = vmul.f32 %v2051_v62, %v5224_v56 }
 0x35f   : > { %6912 = vst [vmem:[#allocation19_spill] sm:$0xff] %v5233_v16  ;;  %v1539_v32 = vpop.f32.mrb[18].mxu1  ;;  %v5236_v49 = vadd.f32 %v1458_v9, %v5200_v47  ;;  %v2068_v9 = vmul.f32 %v2052_v1, %v5233_v16  ;;  %v1951_v1 = vadd.f32 %v1935_v34, %v1878_v2  ;;  %v5272_v2 = vadd.f32 %v5158_v37, %v2022_v44 }
 0x360   : > { %6911 = vst [vmem:[#allocation16_spill] sm:$0xff] %v5227_v4  ;;  %v2073_v28 = vmul.f32 %v2057_v15, %v5227_v4  ;;  %v5242_v7 = vadd.f32 %v1539_v32, %v5200_v47  ;;  %v1541_v30 = vpop.f32.mrb[19].mxu1  ;;  %v1950_v15 = vadd.f32 %v1934_v10, %v1877_v18  ;;  %v5258_v18 = vadd.f32 %v5139_v55, %v5167_v61 }
 0x361   : > { %6913 = vst [vmem:[#allocation17_spill] sm:$0xff] %v5236_v49  ;;  %v2074_v46 = vmul.f32 %v2058_v41, %v5236_v49  ;;  %v5248_v38 = vadd.f32 %v1541_v30, %v5200_v47  ;;  %v1462_v13 = vpop.f32.mrb[20].mxu0  ;;  %v2008_v41 = vmul.f32 %v5129_v29, %v4867_v39  ;;  %v2021_v30 = vadd.f32 %v2005_v20, %v1948_v50 }
 0x362   : > { %6914 = vst [vmem:[#allocation22_spill] sm:$0xff] %v5242_v7  ;;  %v2081_v23 = vadd.f32 %v2073_v28, %v2065_v21  ;;  %v2075_v43 = vmul.f32 %v2059_v53, %v5242_v7  ;;  %v1464_v8 = vpop.f32.mrb[21].mxu0  ;;  %v2023_v62 = vadd.f32 %v2007_v59, %v1950_v15  ;;  %v5266_v39 = vadd.f32 %v5139_v55, %v5171_v58 }
 0x363   : > { %6915 = vst [vmem:[#allocation20_spill] sm:$0xff] %v5248_v38  ;;  %v2088_v32 = vadd.f32 %v2074_v46, %v2066_v12  ;;  %v2076_v4 = vmul.f32 %v2060_v19, %v5248_v38  ;;  %v1545_v24 = vpop.f32.mrb[20].mxu1  ;;  %v5262_v19 = vadd.f32 %v5139_v55, %v5169_v5  ;;  %v2024_v20 = vadd.f32 %v2008_v41, %v1951_v1 }
 0x364   : > { %v2095_v49 = vadd.f32 %v2075_v43, %v2067_v36  ;;  %v1547_v22 = vpop.f32.mrb[21].mxu1  ;;  %v2082_v48 = vrot.slane %v2081_v23, 4  ;;  %v5269_v52 = vadd.f32 %v5158_v37, %v2021_v30  ;;  %v5275_v34 = vadd.f32 %v5158_v37, %v2023_v62 }
 0x365   : > { %v2102_v21 = vadd.f32 %v2076_v4, %v2068_v9  ;;  %v2089_v28 = vrot.slane %v2088_v32, 4  ;;  %v2053_v12 = vmax.f32 %v5174_v3, 0.0  ;;  %v2054_v55 = vmax.f32 %v5258_v18, 0.0 }
 0x366   : > { %v2083_v10 = vadd.f32 %v2082_v48, %v2081_v23  ;;  %v2096_v53 = vrot.slane %v2095_v49, 4  ;;  %v2055_v25 = vmax.f32 %v5262_v19, 0.0  ;;  %v2056_v36 = vmax.f32 %v5266_v39, 0.0  ;;  %v5281_v23 = vpop.permute.xlu1 %1375 }
 0x367   : > { %v2090_v29 = vadd.f32 %v2089_v28, %v2088_v32  ;;  %v2103_v50 = vrot.slane %v2102_v21, 4  ;;  %v5284_v15 = vadd.f32 %v5158_v37, %v2024_v20  ;;  %v2061_v9 = vmax.f32 %v5269_v52, 0.0 }
 0x368   : > { %v2084_v4 = vrot.slane %v2083_v10, 2  ;;  %v2097_v61 = vadd.f32 %v2096_v53, %v2095_v49  ;;  %v2062_v30 = vmax.f32 %v5272_v2, 0.0  ;;  %v2063_v48 = vmax.f32 %v5275_v34, 0.0 }
 0x369   : > { %v2091_v5 = vrot.slane %v2090_v29, 2  ;;  %v2104_v59 = vadd.f32 %v2103_v50, %v2102_v21  ;;  %v5293_v1 = vadd.f32 %v1462_v13, %v5281_v23 }
 0x36a   : > { %v2085_v58 = vadd.f32 %v2084_v4, %v2083_v10  ;;  %v2098_v46 = vrot.slane %v2097_v61, 2 }
 0x36b   : > { %v2092_v49 = vadd.f32 %v2091_v5, %v2090_v29  ;;  %v2105_v43 = vrot.slane %v2104_v59, 2  ;;  %6917 = vst [vmem:[#allocation21_spill] sm:$0xff] %v5293_v1  ;;  %v5296_v29 = vadd.f32 %v1464_v8, %v5281_v23  ;;  %v5303_v5 = vadd.f32 %v1545_v24, %v5281_v23 }
 0x36c   : > { %v2086_v32 = vrot.slane %v2085_v58, 1  ;;  %v2099_v41 = vadd.f32 %v2098_v46, %v2097_v61  ;;  %v2064_v61 = vmax.f32 %v5284_v15, 0.0  ;;  %v5310_v46 = vadd.f32 %v1547_v22, %v5281_v23 }
 0x36d   : > { %v1616_v44 = vpop.f32.mrb[22].mxu0  ;;  %v2093_v62 = vrot.slane %v2092_v49, 1  ;;  %v2106_v21 = vadd.f32 %v2105_v43, %v2104_v59  ;;  %6918 = vst [vmem:[#allocation34_spill] sm:$0xff] %v5296_v29  ;;  %6920 = vst [vmem:[#allocation42_spill] sm:$0xff] %v5303_v5 }
 0x36e   : > { %v5290_v28 = vadd.f32 %v1616_v44, %v5182_v60  ;;  %v1618_v10 = vpop.f32.mrb[23].mxu0  ;;  %v2087_v37 = vadd.f32 %v2086_v32, %v2085_v58  ;;  %v2100_v53 = vrot.slane %v2099_v41, 1  ;;  %6922 = vst [vmem:[#allocation44_spill] sm:$0xff] %v5310_v46 }
 0x36f   : > { %v5299_v50 = vadd.f32 %v1618_v10, %v5182_v60  ;;  %v2094_v20 = vadd.f32 %v2093_v62, %v2092_v49  ;;  %v2107_v4 = vrot.slane %v2106_v21, 1 }
 0x370   : > { %6916 = vst [vmem:[#allocation23_spill] sm:$0xff] %v5290_v28  ;;  %v2101_v59 = vadd.f32 %v2100_v53, %v2099_v41  ;;  %v5306_v13 = vadd.f32 %v2087_v37, %v5293_v1  ;;  %v2069_v58 = vmul.f32 %v2053_v12, %v5290_v28 }
 0x371   : > { %6919 = vst [vmem:[#allocation31_spill] sm:$0xff] %v5299_v50  ;;  %v1622_v8 = vpop.f32.mrb[24].mxu0  ;;  %v2108_v43 = vadd.f32 %v2107_v4, %v2106_v21  ;;  %v5313_v32 = vadd.f32 %v2094_v20, %v5296_v29  ;;  %v2070_v44 = vmul.f32 %v2054_v55, %v5299_v50 }
 0x372   : > { %6921 = vst [vmem:[#allocation43_spill] sm:$0xff] %v5306_v13  ;;  %v5317_v24 = vadd.f32 %v1622_v8, %v5200_v47  ;;  %v1624_v41 = vpop.f32.mrb[25].mxu0  ;;  %v5320_v62 = vadd.f32 %v2101_v59, %v5303_v5  ;;  %v2148_v12 = vrot.slane %v5306_v13, %v6897_v0 }
 0x373   : > { %6923 = vst [vmem:[#allocation45_spill] sm:$0xff] %v5313_v32  ;;  %v1699_v49 = vpop.f32.mrb[22].mxu1  ;;  %v5328_v10 = vadd.f32 %v1624_v41, %v5200_v47  ;;  %v5331_v37 = vadd.f32 %v2108_v43, %v5310_v46  ;;  %v2152_v55 = vrot.slane %v5313_v32, %v6897_v0 }
 0x374   : > { %6924 = vst [vmem:[#allocation46_spill] sm:$0xff] %v5317_v24  ;;  %6925 = vst [vmem:[#allocation47_spill] sm:$0xff] %v5320_v62  ;;  %v5325_v22 = vadd.f32 %v1699_v49, %v5182_v60  ;;  %v1701_v21 = vpop.f32.mrb[23].mxu1  ;;  %v2077_v20 = vmul.f32 %v2061_v9, %v5317_v24  ;;  %v2156_v4 = vrot.slane %v5320_v62, %v6897_v0 }
 0x375   : > { %6927 = vst [vmem:[#allocation49_spill] sm:$0xff] %v5328_v10  ;;  %6928 = vst [vmem:[#allocation50_spill] sm:$0xff] %v5331_v37  ;;  %v5336_v53 = vadd.f32 %v1701_v21, %v5182_v60  ;;  %v2177_v59 = vmul.f32 %v2148_v12, %v4869_v31  ;;  %v2078_v49 = vmul.f32 %v2062_v30, %v5328_v10  ;;  %v1628_v41 = vpop.f32.mrb[26].mxu0 }
 0x376   : > { %6926 = vst [vmem:[#allocation48_spill] sm:$0xff] %v5325_v22  ;;  %v2071_v8 = vmul.f32 %v2055_v25, %v5325_v22  ;;  %v2160_v43 = vrot.slane %v5331_v37, %v6897_v0  ;;  %v2178_v32 = vmul.f32 %v2152_v55, %v4871_v26  ;;  %v2109_v21 = vadd.f32 %v2077_v20, %v2069_v58  ;;  %v1630_v62 = vpop.f32.mrb[27].mxu0 }
 0x377   : > { %6929 = vst [vmem:[#allocation51_spill] sm:$0xff] %v5336_v53  ;;  %v2072_v60 = vmul.f32 %v2056_v36, %v5336_v53  ;;  %v1705_v13 = vpop.f32.mrb[24].mxu1  ;;  %v5349_v9 = vadd.f32 %v1628_v41, %v5281_v23  ;;  %v2179_v46 = vmul.f32 %v2156_v4, %v4873_v45  ;;  %v2116_v30 = vadd.f32 %v2078_v49, %v2070_v44  ;;  %v6932_v44 = vld [vmem:[#allocation27_spill] sm:$0xff] }
 0x378   : > { %v5353_v25 = vadd.f32 %v1705_v13, %v5200_v47  ;;  %v1707_v5 = vpop.f32.mrb[25].mxu1  ;;  %v5356_v31 = vadd.f32 %v1630_v62, %v5281_v23  ;;  %v2180_v37 = vmul.f32 %v2160_v43, %v4875_v35  ;;  %v2110_v58 = vrot.slane %v2109_v21, 4 }
 0x379   : > { %v5360_v36 = vadd.f32 %v1707_v5, %v5200_v47  ;;  %v2185_v20 = vmul.f32 %v2148_v12, %v4905_v54  ;;  %v2186_v41 = vmul.f32 %v2152_v55, %v4907_v11  ;;  %v2117_v26 = vrot.slane %v2116_v30, 4 }
 0x37a   : > { %6930 = vst [vmem:[#allocation52_spill] sm:$0xff] %v5353_v25  ;;  %v2079_v45 = vmul.f32 %v2063_v48, %v5353_v25  ;;  %v2187_v13 = vmul.f32 %v2156_v4, %v4909_v51  ;;  %v2188_v49 = vmul.f32 %v2160_v43, %v6932_v44  ;;  %v2111_v1 = vadd.f32 %v2110_v58, %v2109_v21 }
 0x37b   : > { %6931 = vst [vmem:[#allocation53_spill] sm:$0xff] %v5360_v36  ;;  %v2080_v62 = vmul.f32 %v2064_v61, %v5360_v36  ;;  %v1711_v29 = vpop.f32.mrb[26].mxu1  ;;  %v5369_v35 = vadd.f32 %v2177_v59, %v5152_v6  ;;  %v5372_v47 = vadd.f32 %v2178_v32, %v5156_v63  ;;  %v2118_v55 = vadd.f32 %v2117_v26, %v2116_v30 }
 0x37c   : > { %v2123_v5 = vadd.f32 %v2079_v45, %v2071_v8  ;;  %v5375_v12 = vadd.f32 %v1711_v29, %v5281_v23  ;;  %v1713_v48 = vpop.f32.mrb[27].mxu1  ;;  %v5378_v4 = vadd.f32 %v2179_v46, %v5162_v40  ;;  %v2112_v21 = vrot.slane %v2111_v1, 2 }
 0x37d   : > { %v2130_v43 = vadd.f32 %v2080_v62, %v2072_v60  ;;  %v5381_v61 = vadd.f32 %v1713_v48, %v5281_v23  ;;  %v5384_v6 = vadd.f32 %v2180_v37, %v5165_v42  ;;  %v2119_v59 = vrot.slane %v2118_v55, 2 }
 0x37e   : > { %v2124_v63 = vrot.slane %v2123_v5, 4  ;;  %v5387_v45 = vadd.f32 %v2185_v20, %v5189_v17  ;;  %v5390_v29 = vadd.f32 %v2186_v41, %v5198_v14  ;;  %v2113_v26 = vadd.f32 %v2112_v21, %v2111_v1 }
 0x37f   : > { %v2131_v32 = vrot.slane %v2130_v43, 4  ;;  %v5393_v40 = vadd.f32 %v2187_v13, %v5207_v27  ;;  %v5396_v23 = vadd.f32 %v2188_v49, %v5215_v57  ;;  %v2120_v46 = vadd.f32 %v2119_v59, %v2118_v55  ;;  %v6935_v55 = vld [vmem:[#allocation11_spill] sm:$0xff] }
 0x380   : > { %v2125_v8 = vadd.f32 %v2124_v63, %v2123_v5  ;;  %v2217_v42 = vmax.f32 %v5369_v35, 0.0  ;;  %v2218_v37 = vmax.f32 %v5372_v47, 0.0  ;;  %v2114_v60 = vrot.slane %v2113_v26, 1 }
 0x381   : > { %6933 = vst [vmem:[#allocation27_spill] sm:$0xff] %v5393_v40  ;;  %6934 = vst [vmem:[#allocation54_spill] sm:$0xff] %v5396_v23  ;;  %v2132_v17 = vadd.f32 %v2131_v32, %v2130_v43  ;;  %v2219_v30 = vmax.f32 %v5378_v4, 0.0  ;;  %v2220_v14 = vmax.f32 %v5384_v6, 0.0  ;;  %v2121_v1 = vrot.slane %v2120_v46, 1 }
 0x382   : > { %v2126_v58 = vrot.slane %v2125_v8, 2  ;;  %v2225_v27 = vmax.f32 %v5387_v45, 0.0  ;;  %v2226_v20 = vmax.f32 %v5390_v29, 0.0  ;;  %v2115_v57 = vadd.f32 %v2114_v60, %v2113_v26 }
 0x383   : > { %v2133_v41 = vrot.slane %v2132_v17, 2  ;;  %v2227_v13 = vmax.f32 %v5393_v40, 0.0  ;;  %v2228_v49 = vmax.f32 %v5396_v23, 0.0  ;;  %v2122_v62 = vadd.f32 %v2121_v1, %v2120_v46  ;;  %v6938_v40 = vld [vmem:[#allocation16_spill] sm:$0xff]  ;;  %v6939_v46 = vld [vmem:[#allocation17_spill] sm:$0xff] }
 0x384   : > { %v2127_v5 = vadd.f32 %v2126_v58, %v2125_v8  ;;  %v2233_v48 = vmul.f32 %v2217_v42, %v5210_v33  ;;  %v2234_v43 = vmul.f32 %v2218_v37, %v6935_v55  ;;  %v5409_v59 = vadd.f32 %v2115_v57, %v5349_v9 }
 0x385   : > { %v2134_v21 = vadd.f32 %v2133_v41, %v2132_v17  ;;  %v2235_v63 = vmul.f32 %v2219_v30, %v5224_v56  ;;  %v2236_v32 = vmul.f32 %v2220_v14, %v5233_v16  ;;  %v5414_v60 = vadd.f32 %v2122_v62, %v5356_v31  ;;  %v6940_v62 = vld [vmem:[#allocation30_spill] sm:$0xff] }
 0x386   : > { %6936 = vst [vmem:[#allocation55_spill] sm:$0xff] %v5409_v59  ;;  %v2128_v26 = vrot.slane %v2127_v5, 1  ;;  %v2241_v23 = vmul.f32 %v2225_v27, %v6938_v40  ;;  %v2242_v8 = vmul.f32 %v2226_v20, %v6939_v46  ;;  %v2164_v42 = vrot.slane %v5409_v59, %v6897_v0  ;;  %v6941_v27 = vld [vmem:[#allocation38_spill] sm:$0xff] }
 0x387   : > { %6937 = vst [vmem:[#allocation56_spill] sm:$0xff] %v5414_v60  ;;  %v2135_v1 = vrot.slane %v2134_v21, 1  ;;  %v2243_v37 = vmul.f32 %v2227_v13, %v5242_v7  ;;  %v2244_v17 = vmul.f32 %v2228_v49, %v5248_v38  ;;  %v2168_v30 = vrot.slane %v5414_v60, %v6897_v0  ;;  %v6943_v56 = vld [vmem:[#allocation26_spill] sm:$0xff]  ;;  %v6944_v13 = vld [vmem:[#allocation39_spill] sm:$0xff] }
 0x388   : > { %v2129_v58 = vadd.f32 %v2128_v26, %v2127_v5  ;;  %v2249_v14 = vadd.f32 %v2241_v23, %v2233_v48  ;;  %v2256_v57 = vadd.f32 %v2242_v8, %v2234_v43  ;;  %v2181_v16 = vmul.f32 %v2164_v42, %v6940_v62 }
 0x389   : > { %v2136_v41 = vadd.f32 %v2135_v1, %v2134_v21  ;;  %v2189_v40 = vmul.f32 %v2164_v42, %v6941_v27  ;;  %v2263_v20 = vadd.f32 %v2243_v37, %v2235_v63  ;;  %v2182_v55 = vmul.f32 %v2168_v30, %v6943_v56  ;;  %v6947_v37 = vld [vmem:[#allocation40_spill] sm:$0xff] }
 0x38a   : > { %v5427_v46 = vadd.f32 %v2129_v58, %v5375_v12  ;;  %v2190_v7 = vmul.f32 %v2168_v30, %v6944_v13  ;;  %v2250_v49 = vrot.slane %v2249_v14, 4  ;;  %v5435_v23 = vadd.f32 %v2181_v16, %v5174_v3 }
 0x38b   : > { %v5432_v5 = vadd.f32 %v2136_v41, %v5381_v61  ;;  %v5438_v48 = vadd.f32 %v2189_v40, %v5269_v52  ;;  %v2257_v43 = vrot.slane %v2256_v57, 4  ;;  %v5443_v63 = vadd.f32 %v2182_v55, %v5258_v18  ;;  %v6946_v40 = vld [vmem:[#allocation29_spill] sm:$0xff] }
 0x38c   : > { %6942 = vst [vmem:[#allocation30_spill] sm:$0xff] %v5427_v46  ;;  %v2172_v21 = vrot.slane %v5427_v46, %v6897_v0  ;;  %v5446_v26 = vadd.f32 %v2190_v7, %v5272_v2  ;;  %v2251_v8 = vadd.f32 %v2250_v49, %v2249_v14  ;;  %v2221_v3 = vmax.f32 %v5435_v23, 0.0  ;;  %v6948_v55 = vld [vmem:[#allocation25_spill] sm:$0xff] }
 0x38d   : > { %6945 = vst [vmem:[#allocation38_spill] sm:$0xff] %v5432_v5  ;;  %v2176_v1 = vrot.slane %v5432_v5, %v6897_v0  ;;  %v2229_v16 = vmax.f32 %v5438_v48, 0.0  ;;  %v2258_v52 = vadd.f32 %v2257_v43, %v2256_v57  ;;  %v2222_v30 = vmax.f32 %v5443_v63, 0.0  ;;  %v6949_v2 = vld [vmem:[#allocation41_spill] sm:$0xff] }
 0x38e   : > { %v2183_v42 = vmul.f32 %v2172_v21, %v6946_v40  ;;  %v2191_v58 = vmul.f32 %v2172_v21, %v6947_v37  ;;  %v2230_v18 = vmax.f32 %v5446_v26, 0.0  ;;  %v2237_v41 = vmul.f32 %v2221_v3, %v5290_v28 }
 0x38f   : > { %v2184_v7 = vmul.f32 %v2176_v1, %v6948_v55  ;;  %v2192_v14 = vmul.f32 %v2176_v1, %v6949_v2  ;;  %v2245_v49 = vmul.f32 %v2229_v16, %v5317_v24  ;;  %v2238_v43 = vmul.f32 %v2222_v30, %v5299_v50 }
 0x390   : > { %v5461_v38 = vadd.f32 %v2183_v42, %v5262_v19  ;;  %v5464_v57 = vadd.f32 %v2191_v58, %v5275_v34  ;;  %v2246_v21 = vmul.f32 %v2230_v18, %v5328_v10  ;;  %v2252_v1 = vrot.slane %v2251_v8, 2 }
 0x391   : > { %v5469_v33 = vadd.f32 %v2184_v7, %v5266_v39  ;;  %v5472_v5 = vadd.f32 %v2192_v14, %v5284_v15  ;;  %v2259_v3 = vrot.slane %v2258_v52, 2  ;;  %v2264_v42 = vrot.slane %v2263_v20, 4 }
 0x392   : > { %6950 = vst [vmem:[#allocation26_spill] sm:$0xff] %v5464_v57  ;;  %v2223_v16 = vmax.f32 %v5461_v38, 0.0  ;;  %v2231_v19 = vmax.f32 %v5464_v57, 0.0  ;;  %v2270_v24 = vadd.f32 %v2244_v17, %v2236_v32  ;;  %v2253_v30 = vadd.f32 %v2252_v1, %v2251_v8 }
 0x393   : > { %6951 = vst [vmem:[#allocation29_spill] sm:$0xff] %v5472_v5  ;;  %v2224_v34 = vmax.f32 %v5469_v33, 0.0  ;;  %v2232_v58 = vmax.f32 %v5472_v5, 0.0  ;;  %v2260_v18 = vadd.f32 %v2259_v3, %v2258_v52  ;;  %v2265_v15 = vadd.f32 %v2264_v42, %v2263_v20 }
 0x394   : > { %v2239_v39 = vmul.f32 %v2223_v16, %v5325_v22  ;;  %v2247_v7 = vmul.f32 %v2231_v19, %v5353_v25  ;;  %v2271_v14 = vrot.slane %v2270_v24, 4  ;;  %v2254_v28 = vrot.slane %v2253_v30, 1  ;;  %v6952_v25 = vld [vmem:[#allocation21_spill] sm:$0xff] }
 0x395   : > { %v2240_v10 = vmul.f32 %v2224_v34, %v5336_v53  ;;  %v2248_v50 = vmul.f32 %v2232_v58, %v5360_v36  ;;  %v2261_v46 = vrot.slane %v2260_v18, 1  ;;  %v2266_v60 = vrot.slane %v2265_v15, 2  ;;  %v6953_v53 = vld [vmem:[#allocation34_spill] sm:$0xff] }
 0x396   : > { %v2272_v32 = vadd.f32 %v2271_v14, %v2270_v24  ;;  %v2277_v17 = vadd.f32 %v2245_v49, %v2237_v41  ;;  %v2284_v59 = vadd.f32 %v2246_v21, %v2238_v43  ;;  %v2255_v57 = vadd.f32 %v2254_v28, %v2253_v30 }
 0x397   : > { %v2262_v5 = vadd.f32 %v2261_v46, %v2260_v18  ;;  %v2291_v8 = vadd.f32 %v2247_v7, %v2239_v39  ;;  %v2298_v52 = vadd.f32 %v2248_v50, %v2240_v10  ;;  %v2267_v1 = vadd.f32 %v2266_v60, %v2265_v15  ;;  %v6954_v18 = vld [vmem:[#allocation32_spill] sm:$0xff]  ;;  %v6955_v39 = vld [vmem:[#allocation33_spill] sm:$0xff] }
 0x398   : > { %v2273_v3 = vrot.slane %v2272_v32, 2  ;;  %v2278_v16 = vrot.slane %v2277_v17, 4  ;;  %v2285_v19 = vrot.slane %v2284_v59, 4  ;;  %v2305_v34 = vadd.f32 %v2255_v57, %v6952_v25 }
 0x399   : > { %v2292_v20 = vrot.slane %v2291_v8, 4  ;;  %v2299_v42 = vrot.slane %v2298_v52, 4  ;;  %v5484_v58 = vadd.f32 %v2262_v5, %v6953_v53  ;;  %v2268_v36 = vrot.slane %v2267_v1, 1 }
 0x39a   : > { %v2274_v22 = vadd.f32 %v2273_v3, %v2272_v32  ;;  %v2279_v24 = vadd.f32 %v2278_v16, %v2277_v17  ;;  %v2286_v41 = vadd.f32 %v2285_v19, %v2284_v59  ;;  %v2316_v46 = vrot.slane %v2305_v34, %v6897_v0  ;;  %v6956_v32 = vld [vmem:[#allocation42_spill] sm:$0xff]  ;;  %v6957_v19 = vld [vmem:[#allocation44_spill] sm:$0xff] }
 0x39b   : > { %v2293_v49 = vadd.f32 %v2292_v20, %v2291_v8  ;;  %v2300_v28 = vadd.f32 %v2299_v42, %v2298_v52  ;;  %v2320_v50 = vrot.slane %v5484_v58, %v6897_v0  ;;  %v2269_v10 = vadd.f32 %v2268_v36, %v2267_v1 }
 0x39c   : > { %v2275_v60 = vrot.slane %v2274_v22, 1  ;;  %v2280_v43 = vrot.slane %v2279_v24, 2  ;;  %v2287_v21 = vrot.slane %v2286_v41, 2  ;;  %v2345_v5 = vmul.f32 %v2316_v46, %v6954_v18 }
 0x39d   : > { %v2294_v30 = vrot.slane %v2293_v49, 2  ;;  %v2301_v57 = vrot.slane %v2300_v28, 2  ;;  %v2346_v7 = vmul.f32 %v2320_v50, %v6955_v39  ;;  %v2307_v17 = vadd.f32 %v2269_v10, %v6956_v32 }
 0x39e   : > { %v2276_v15 = vadd.f32 %v2275_v60, %v2274_v22  ;;  %v2281_v14 = vadd.f32 %v2280_v43, %v2279_v24  ;;  %v2288_v59 = vadd.f32 %v2287_v21, %v2286_v41  ;;  %v2353_v3 = vmul.f32 %v2316_v46, %v4905_v54  ;;  %v6958_v46 = vld [vmem:[#allocation28_spill] sm:$0xff] }
 0x39f   : > { %v2295_v8 = vadd.f32 %v2294_v30, %v2293_v49  ;;  %v2302_v52 = vadd.f32 %v2301_v57, %v2300_v28  ;;  %v2354_v36 = vmul.f32 %v2320_v50, %v4907_v11  ;;  %v2324_v42 = vrot.slane %v2307_v17, %v6897_v0  ;;  %v6960_v57 = vld [vmem:[#allocation24_spill] sm:$0xff] }
 0x3a0   : > { %v2282_v1 = vrot.slane %v2281_v14, 1  ;;  %v2289_v16 = vrot.slane %v2288_v59, 1  ;;  %v2308_v20 = vadd.f32 %v2276_v15, %v6957_v19  ;;  %v5497_v22 = vadd.f32 %v2345_v5, %v5369_v35 }
 0x3a1   : > { %v2296_v18 = vrot.slane %v2295_v8, 1  ;;  %v2303_v53 = vrot.slane %v2302_v52, 1  ;;  %v5500_v24 = vadd.f32 %v2346_v7, %v5372_v47  ;;  %v2347_v50 = vmul.f32 %v2324_v42, %v6958_v46 }
 0x3a2   : > { %v2283_v41 = vadd.f32 %v2282_v1, %v2281_v14  ;;  %v2290_v49 = vadd.f32 %v2289_v16, %v2288_v59  ;;  %v2328_v28 = vrot.slane %v2308_v20, %v6897_v0  ;;  %v2355_v43 = vmul.f32 %v2324_v42, %v4909_v51  ;;  %v6964_v16 = vld [vmem:[#allocation54_spill] sm:$0xff]  ;;  %v6966_v42 = vld [vmem:[#allocation43_spill] sm:$0xff] }
 0x3a3   : > { %v2297_v10 = vadd.f32 %v2296_v18, %v2295_v8  ;;  %v2304_v60 = vadd.f32 %v2303_v53, %v2302_v52  ;;  %v5506_v21 = vadd.f32 %v2353_v3, %v5387_v45  ;;  %v5515_v18 = vadd.f32 %v2347_v50, %v5378_v4  ;;  %v6962_v8 = vld [vmem:[#allocation27_spill] sm:$0xff] }
 0x3a4   : > { %v2309_v30 = vadd.f32 %v2283_v41, %v5349_v9  ;;  %v2310_v35 = vadd.f32 %v2290_v49, %v5356_v31  ;;  %v2348_v47 = vmul.f32 %v2328_v28, %v6960_v57  ;;  %v2356_v5 = vmul.f32 %v2328_v28, %v6932_v44 }
 0x3a5   : > { %6959 = vst [vmem:[#allocation40_spill] sm:$0xff] %v5506_v21  ;;  %v2311_v7 = vadd.f32 %v2297_v10, %v5375_v12  ;;  %v2312_v15 = vadd.f32 %v2304_v60, %v5381_v61  ;;  %v5518_v53 = vadd.f32 %v2354_v36, %v5390_v29  ;;  %v5526_v52 = vadd.f32 %v2355_v43, %v6962_v8  ;;  %v6974_v8 = vld [vmem:[#allocation26_spill] sm:$0xff] }
 0x3a6   : > { %v2332_v45 = vrot.slane %v2309_v30, %v6897_v0  ;;  %v2336_v14 = vrot.slane %v2310_v35, %v6897_v0  ;;  %v5523_v59 = vadd.f32 %v2348_v47, %v5384_v6  ;;  %v5531_v4 = vadd.f32 %v2356_v5, %v6964_v16 }
 0x3a7   : > { %6961 = vst [vmem:[#allocation25_spill] sm:$0xff] %v5518_v53  ;;  %6963 = vst [vmem:[#allocation41_spill] sm:$0xff] %v5526_v52  ;;  %v2340_v3 = vrot.slane %v2311_v7, %v6897_v0  ;;  %v2344_v1 = vrot.slane %v2312_v15, %v6897_v0  ;;  %v5534_v29 = vadd.f32 %v2305_v34, %v6966_v42 }
 0x3a8   : > { %6965 = vst [vmem:[#allocation21_spill] sm:$0xff] %v5531_v4  ;;  %v2349_v36 = vmul.f32 %v2332_v45, %v6940_v62  ;;  %v2350_v41 = vmul.f32 %v2336_v14, %v6943_v56  ;;  %v2357_v6 = vmul.f32 %v2332_v45, %v6941_v27  ;;  %v2358_v49 = vmul.f32 %v2336_v14, %v6944_v13 }
 0x3a9   : > { %6967 = vst [vmem:[#allocation33_spill] sm:$0xff] %v5534_v29  ;;  %v2351_v28 = vmul.f32 %v2340_v3, %v6946_v40  ;;  %v2352_v50 = vmul.f32 %v2344_v1, %v6948_v55  ;;  %v2359_v10 = vmul.f32 %v2340_v3, %v6947_v37  ;;  %v2360_v60 = vmul.f32 %v2344_v1, %v6949_v2  ;;  %v6996_v29 = vld [vmem:[#allocation23_spill] sm:$0xff] }
 0x3aa   : > { %v5545_v43 = vadd.f32 %v2349_v36, %v5435_v23  ;;  %v5548_v34 = vadd.f32 %v2350_v41, %v5443_v63  ;;  %v5551_v47 = vadd.f32 %v2357_v6, %v5438_v48  ;;  %v5554_v5 = vadd.f32 %v2358_v49, %v5446_v26  ;;  %v6976_v23 = vld [vmem:[#allocation29_spill] sm:$0xff]  ;;  %v6980_v48 = vld [vmem:[#allocation47_spill] sm:$0xff]  ;;  %v6982_v26 = vld [vmem:[#allocation50_spill] sm:$0xff] }
 0x3ab   : > { %v5557_v45 = vadd.f32 %v2351_v28, %v5461_v38  ;;  %v5560_v14 = vadd.f32 %v2352_v50, %v5469_v33  ;;  %v5563_v3 = vadd.f32 %v2359_v10, %v6974_v8  ;;  %v5566_v1 = vadd.f32 %v2360_v60, %v6976_v23  ;;  %v6978_v63 = vld [vmem:[#allocation45_spill] sm:$0xff]  ;;  %v6984_v38 = vld [vmem:[#allocation55_spill] sm:$0xff]  ;;  %v6986_v33 = vld [vmem:[#allocation56_spill] sm:$0xff] }
 0x3ac   : > { %6968 = vst [vmem:[#allocation42_spill] sm:$0xff] %v5545_v43  ;;  %6969 = vst [vmem:[#allocation44_spill] sm:$0xff] %v5548_v34  ;;  %v5570_v16 = vadd.f32 %v5484_v58, %v6978_v63  ;;  %v5573_v42 = vadd.f32 %v2307_v17, %v6980_v48  ;;  %v5576_v36 = vadd.f32 %v2308_v20, %v6982_v26  ;;  %v6988_v49 = vld [vmem:[#allocation30_spill] sm:$0xff]  ;;  %v2385_v58 = vmax.f32 %v5497_v22, 0.0 }
 0x3ad   : > { %6970 = vst [vmem:[#allocation28_spill] sm:$0xff] %v5551_v47  ;;  %6971 = vst [vmem:[#allocation24_spill] sm:$0xff] %v5554_v5  ;;  %v5579_v41 = vadd.f32 %v2309_v30, %v6984_v38  ;;  %v5582_v6 = vadd.f32 %v2310_v35, %v6986_v33  ;;  %v5585_v28 = vadd.f32 %v2311_v7, %v6988_v49  ;;  %v6990_v50 = vld [vmem:[#allocation38_spill] sm:$0xff]  ;;  %v2386_v17 = vmax.f32 %v5500_v24, 0.0 }
 0x3ae   : > { %6972 = vst [vmem:[#allocation27_spill] sm:$0xff] %v5557_v45  ;;  %6973 = vst [vmem:[#allocation54_spill] sm:$0xff] %v5560_v14  ;;  %v5588_v10 = vadd.f32 %v2312_v15, %v6990_v50  ;;  %v2387_v60 = vmax.f32 %v5515_v18, 0.0  ;;  %v2388_v20 = vmax.f32 %v5523_v59, 0.0  ;;  %v2389_v30 = vmax.f32 %v5545_v43, 0.0  ;;  %v6992_v50 = vld [vmem:[#allocation10_spill] sm:$0xff] }
 0x3af   : > { %6975 = vst [vmem:[#allocation43_spill] sm:$0xff] %v5563_v3  ;;  %6977 = vst [vmem:[#allocation26_spill] sm:$0xff] %v5566_v1  ;;  %v2390_v8 = vmax.f32 %v5548_v34, 0.0  ;;  %v2391_v35 = vmax.f32 %v5557_v45, 0.0  ;;  %v2392_v7 = vmax.f32 %v5560_v14, 0.0  ;;  %v2393_v23 = vmax.f32 %v5506_v21, 0.0 }
 0x3b0   : > { %6979 = vst [vmem:[#allocation29_spill] sm:$0xff] %v5570_v16  ;;  %6981 = vst [vmem:[#allocation45_spill] sm:$0xff] %v5573_v42  ;;  %v2394_v15 = vmax.f32 %v5518_v53, 0.0  ;;  %v2395_v63 = vmax.f32 %v5526_v52, 0.0  ;;  %v2396_v48 = vmax.f32 %v5531_v4, 0.0  ;;  %v2397_v26 = vmax.f32 %v5551_v47, 0.0 }
 0x3b1   : > { %6983 = vst [vmem:[#allocation47_spill] sm:$0xff] %v5576_v36  ;;  %6985 = vst [vmem:[#allocation50_spill] sm:$0xff] %v5579_v41  ;;  %v2398_v38 = vmax.f32 %v5554_v5, 0.0  ;;  %v2399_v33 = vmax.f32 %v5563_v3, 0.0  ;;  %v2400_v49 = vmax.f32 %v5566_v1, 0.0  ;;  %v6994_v41 = vld [vmem:[#allocation18_spill] sm:$0xff]  ;;  %v2405_v52 = vmul.f32 %v2389_v30, %v6996_v29 }
 0x3b2   : > { %6987 = vst [vmem:[#allocation55_spill] sm:$0xff] %v5582_v6  ;;  %6989 = vst [vmem:[#allocation56_spill] sm:$0xff] %v5585_v28  ;;  %v6993_v28 = vld [vmem:[#allocation11_spill] sm:$0xff]  ;;  %v2403_v36 = vmul.f32 %v2387_v60, %v6994_v41  ;;  %v6998_v21 = vld [vmem:[#allocation48_spill] sm:$0xff] }
 0x3b3   : > { %6991 = vst [vmem:[#allocation30_spill] sm:$0xff] %v5588_v10  ;;  %v2401_v10 = vmul.f32 %v2385_v58, %v6992_v50  ;;  %v2402_v6 = vmul.f32 %v2386_v17, %v6993_v28  ;;  %v6995_v42 = vld [vmem:[#allocation19_spill] sm:$0xff]  ;;  %v2407_v47 = vmul.f32 %v2391_v35, %v6998_v21  ;;  %v7000_v45 = vld [vmem:[#allocation16_spill] sm:$0xff]  ;;  %v7001_v34 = vld [vmem:[#allocation17_spill] sm:$0xff] }
 0x3b4   : > { %v2404_v16 = vmul.f32 %v2388_v20, %v6995_v42  ;;  %v6997_v53 = vld [vmem:[#allocation31_spill] sm:$0xff]  ;;  %v2409_v3 = vmul.f32 %v2393_v23, %v7000_v45  ;;  %v2410_v1 = vmul.f32 %v2394_v15, %v7001_v34  ;;  %v7002_v43 = vld [vmem:[#allocation22_spill] sm:$0xff]  ;;  %v7003_v50 = vld [vmem:[#allocation20_spill] sm:$0xff] }
 0x3b5   : > { %v2406_v4 = vmul.f32 %v2390_v8, %v6997_v53  ;;  %v6999_v14 = vld [vmem:[#allocation51_spill] sm:$0xff]  ;;  %v2411_v58 = vmul.f32 %v2395_v63, %v7002_v43  ;;  %v2412_v17 = vmul.f32 %v2396_v48, %v7003_v50  ;;  %v7004_v28 = vld [vmem:[#allocation46_spill] sm:$0xff]  ;;  %v7005_v41 = vld [vmem:[#allocation49_spill] sm:$0xff] }
 0x3b6   : > { %v2408_v5 = vmul.f32 %v2392_v7, %v6999_v14  ;;  %v2413_v60 = vmul.f32 %v2397_v26, %v7004_v28  ;;  %v2414_v20 = vmul.f32 %v2398_v38, %v7005_v41  ;;  %v7006_v42 = vld [vmem:[#allocation52_spill] sm:$0xff]  ;;  %v7007_v29 = vld [vmem:[#allocation53_spill] sm:$0xff]  ;;  %v2417_v53 = vadd.f32 %v2409_v3, %v2401_v10 }
 0x3b7   : > { %v2415_v30 = vmul.f32 %v2399_v33, %v7006_v42  ;;  %v2416_v8 = vmul.f32 %v2400_v49, %v7007_v29  ;;  %v2424_v35 = vadd.f32 %v2410_v1, %v2402_v6  ;;  %v2431_v21 = vadd.f32 %v2411_v58, %v2403_v36 }
 0x3b8   : > { %v2438_v7 = vadd.f32 %v2412_v17, %v2404_v16  ;;  %v2445_v14 = vadd.f32 %v2413_v60, %v2405_v52  ;;  %v2418_v23 = vrot.slane %v2417_v53, 4  ;;  %v2452_v45 = vadd.f32 %v2414_v20, %v2406_v4 }
 0x3b9   : > { %v2459_v15 = vadd.f32 %v2415_v30, %v2407_v47  ;;  %v2466_v34 = vadd.f32 %v2416_v8, %v2408_v5  ;;  %v2425_v63 = vrot.slane %v2424_v35, 4  ;;  %v2432_v43 = vrot.slane %v2431_v21, 4 }
 0x3ba   : > { %v2439_v48 = vrot.slane %v2438_v7, 4  ;;  %v2446_v50 = vrot.slane %v2445_v14, 4  ;;  %v2419_v26 = vadd.f32 %v2418_v23, %v2417_v53  ;;  %v2453_v28 = vrot.slane %v2452_v45, 4 }
 0x3bb   : > { %v2460_v38 = vrot.slane %v2459_v15, 4  ;;  %v2467_v41 = vrot.slane %v2466_v34, 4  ;;  %v2426_v33 = vadd.f32 %v2425_v63, %v2424_v35  ;;  %v2433_v42 = vadd.f32 %v2432_v43, %v2431_v21 }
 0x3bc   : > { %v2440_v49 = vadd.f32 %v2439_v48, %v2438_v7  ;;  %v2447_v3 = vadd.f32 %v2446_v50, %v2445_v14  ;;  %v2420_v1 = vrot.slane %v2419_v26, 2  ;;  %v2454_v36 = vadd.f32 %v2453_v28, %v2452_v45 }
 0x3bd   : > { %v2461_v16 = vadd.f32 %v2460_v38, %v2459_v15  ;;  %v2468_v52 = vadd.f32 %v2467_v41, %v2466_v34  ;;  %v2427_v6 = vrot.slane %v2426_v33, 2  ;;  %v2434_v4 = vrot.slane %v2433_v42, 2 }
 0x3be   : > { %v2441_v47 = vrot.slane %v2440_v49, 2  ;;  %v2448_v5 = vrot.slane %v2447_v3, 2  ;;  %v2421_v10 = vadd.f32 %v2420_v1, %v2419_v26  ;;  %v2455_v58 = vrot.slane %v2454_v36, 2  ;;  %v7008_v1 = vld [vmem:[#allocation34_spill] sm:$0xff] }
 0x3bf   : > { %v2462_v17 = vrot.slane %v2461_v16, 2  ;;  %v2469_v60 = vrot.slane %v2468_v52, 2  ;;  %v2428_v53 = vadd.f32 %v2427_v6, %v2426_v33  ;;  %v2435_v20 = vadd.f32 %v2434_v4, %v2433_v42 }
 0x3c0   : > { %v2442_v30 = vadd.f32 %v2441_v47, %v2440_v49  ;;  %v2449_v8 = vadd.f32 %v2448_v5, %v2447_v3  ;;  %v2422_v35 = vrot.slane %v2421_v10, 1  ;;  %v2456_v21 = vadd.f32 %v2455_v58, %v2454_v36 }
 0x3c1   : > { %v2463_v43 = vadd.f32 %v2462_v17, %v2461_v16  ;;  %v2470_v14 = vadd.f32 %v2469_v60, %v2468_v52  ;;  %v2429_v50 = vrot.slane %v2428_v53, 1  ;;  %v2436_v45 = vrot.slane %v2435_v20, 1 }
 0x3c2   : > { %v2443_v28 = vrot.slane %v2442_v30, 1  ;;  %v2450_v34 = vrot.slane %v2449_v8, 1  ;;  %v2423_v41 = vadd.f32 %v2422_v35, %v2421_v10  ;;  %v2457_v7 = vrot.slane %v2456_v21, 1  ;;  %v7009_v35 = vld [vmem:[#allocation32_spill] sm:$0xff] }
 0x3c3   : > { %v2464_v23 = vrot.slane %v2463_v43, 1  ;;  %v2471_v15 = vrot.slane %v2470_v14, 1  ;;  %v2430_v63 = vadd.f32 %v2429_v50, %v2428_v53  ;;  %v2437_v48 = vadd.f32 %v2436_v45, %v2435_v20 }
 0x3c4   : > { %v2444_v26 = vadd.f32 %v2443_v28, %v2442_v30  ;;  %v2451_v38 = vadd.f32 %v2450_v34, %v2449_v8  ;;  %v2458_v33 = vadd.f32 %v2457_v7, %v2456_v21  ;;  %v2473_v3 = vadd.f32 %v2423_v41, %v6952_v25 }
 0x3c5   : > { %v2465_v42 = vadd.f32 %v2464_v23, %v2463_v43  ;;  %v2472_v49 = vadd.f32 %v2471_v15, %v2470_v14  ;;  %v2474_v36 = vadd.f32 %v2430_v63, %v7008_v1  ;;  %v2475_v16 = vadd.f32 %v2437_v48, %v6956_v32 }
 0x3c6   : > { %v2476_v52 = vadd.f32 %v2444_v26, %v6957_v19  ;;  %v2477_v6 = vadd.f32 %v2451_v38, %v5349_v9  ;;  %v2478_v4 = vadd.f32 %v2458_v33, %v5356_v31  ;;  %v2484_v10 = vrot.slane %v2473_v3, %v6897_v0 }
 0x3c7   : > { %v2479_v47 = vadd.f32 %v2465_v42, %v5375_v12  ;;  %v2480_v5 = vadd.f32 %v2472_v49, %v5381_v61  ;;  %v2488_v58 = vrot.slane %v2474_v36, %v6897_v0  ;;  %v2492_v17 = vrot.slane %v2475_v16, %v6897_v0 }
 0x3c8   : > { %v2496_v60 = vrot.slane %v2476_v52, %v6897_v0  ;;  %v2500_v53 = vrot.slane %v2477_v6, %v6897_v0  ;;  %v2504_v20 = vrot.slane %v2478_v4, %v6897_v0  ;;  %v2513_v21 = vmul.f32 %v2484_v10, %v7009_v35 }
 0x3c9   : > { %v2508_v30 = vrot.slane %v2479_v47, %v6897_v0  ;;  %v2512_v8 = vrot.slane %v2480_v5, %v6897_v0  ;;  %v2514_v43 = vmul.f32 %v2488_v58, %v6955_v39  ;;  %v2515_v14 = vmul.f32 %v2492_v17, %v6958_v46 }
 0x3ca   : > { %v2516_v50 = vmul.f32 %v2496_v60, %v6960_v57  ;;  %v2517_v45 = vmul.f32 %v2500_v53, %v6940_v62  ;;  %v2518_v28 = vmul.f32 %v2504_v20, %v6943_v56  ;;  %v2521_v7 = vmul.f32 %v2484_v10, %v4905_v54 }
 0x3cb   : > { %v2519_v34 = vmul.f32 %v2508_v30, %v6946_v40  ;;  %v2520_v41 = vmul.f32 %v2512_v8, %v6948_v55  ;;  %v2522_v23 = vmul.f32 %v2488_v58, %v4907_v11  ;;  %v2523_v15 = vmul.f32 %v2492_v17, %v4909_v51  ;;  %v7013_v17 = vld [vmem:[#allocation42_spill] sm:$0xff] }
 0x3cc   : > { %v2524_v63 = vmul.f32 %v2496_v60, %v6932_v44  ;;  %v2525_v48 = vmul.f32 %v2500_v53, %v6941_v27  ;;  %v2526_v26 = vmul.f32 %v2504_v20, %v6944_v13  ;;  %v2527_v38 = vmul.f32 %v2508_v30, %v6947_v37  ;;  %v7015_v53 = vld [vmem:[#allocation44_spill] sm:$0xff]  ;;  %v7017_v30 = vld [vmem:[#allocation27_spill] sm:$0xff] }
 0x3cd   : > { %v2528_v33 = vmul.f32 %v2512_v8, %v6949_v2  ;;  %v5655_v42 = vadd.f32 %v2513_v21, %v5497_v22  ;;  %v5658_v49 = vadd.f32 %v2514_v43, %v5500_v24  ;;  %v5661_v10 = vadd.f32 %v2515_v14, %v5515_v18  ;;  %v7019_v22 = vld [vmem:[#allocation54_spill] sm:$0xff]  ;;  %v7021_v24 = vld [vmem:[#allocation40_spill] sm:$0xff]  ;;  %v7023_v18 = vld [vmem:[#allocation25_spill] sm:$0xff] }
 0x3ce   : > { %v5664_v58 = vadd.f32 %v2516_v50, %v5523_v59  ;;  %v5667_v60 = vadd.f32 %v2517_v45, %v7013_v17  ;;  %v5670_v20 = vadd.f32 %v2518_v28, %v7015_v53  ;;  %v5673_v8 = vadd.f32 %v2519_v34, %v7017_v30  ;;  %v7025_v59 = vld [vmem:[#allocation41_spill] sm:$0xff]  ;;  %v7029_v28 = vld [vmem:[#allocation28_spill] sm:$0xff] }
 0x3cf   : > { %7010 = vst [vmem:[#allocation38_spill] sm:$0xff] %v5658_v49  ;;  %7011 = vst [vmem:[#allocation53_spill] sm:$0xff] %v5661_v10  ;;  %v5676_v21 = vadd.f32 %v2520_v41, %v7019_v22  ;;  %v5679_v43 = vadd.f32 %v2521_v7, %v7021_v24  ;;  %v5682_v14 = vadd.f32 %v2522_v23, %v7023_v18  ;;  %v7027_v45 = vld [vmem:[#allocation21_spill] sm:$0xff]  ;;  %v7031_v34 = vld [vmem:[#allocation24_spill] sm:$0xff] }
 0x3d0   : > { %7012 = vst [vmem:[#allocation34_spill] sm:$0xff] %v5664_v58  ;;  %7014 = vst [vmem:[#allocation32_spill] sm:$0xff] %v5667_v60  ;;  %v5685_v50 = vadd.f32 %v2523_v15, %v7025_v59  ;;  %v5688_v17 = vadd.f32 %v2524_v63, %v7027_v45  ;;  %v5691_v53 = vadd.f32 %v2525_v48, %v7029_v28  ;;  %v7033_v41 = vld [vmem:[#allocation43_spill] sm:$0xff]  ;;  %v7035_v7 = vld [vmem:[#allocation26_spill] sm:$0xff] }
 0x3d1   : > { %7016 = vst [vmem:[#allocation42_spill] sm:$0xff] %v5670_v20  ;;  %7018 = vst [vmem:[#allocation44_spill] sm:$0xff] %v5673_v8  ;;  %v5694_v30 = vadd.f32 %v2526_v26, %v7031_v34  ;;  %v5697_v22 = vadd.f32 %v2527_v38, %v7033_v41  ;;  %v5700_v24 = vadd.f32 %v2528_v33, %v7035_v7  ;;  %v7037_v23 = vld [vmem:[#allocation33_spill] sm:$0xff]  ;;  %v7043_v48 = vld [vmem:[#allocation47_spill] sm:$0xff] }
 0x3d2   : > { %7020 = vst [vmem:[#allocation27_spill] sm:$0xff] %v5676_v21  ;;  %7022 = vst [vmem:[#allocation54_spill] sm:$0xff] %v5679_v43  ;;  %v5703_v18 = vadd.f32 %v2473_v3, %v7037_v23  ;;  %v7039_v15 = vld [vmem:[#allocation29_spill] sm:$0xff]  ;;  %v5712_v28 = vadd.f32 %v2476_v52, %v7043_v48  ;;  %v7045_v26 = vld [vmem:[#allocation50_spill] sm:$0xff]  ;;  %v2556_v52 = vmax.f32 %v5664_v58, 0.0  ;;  %v2561_v48 = vmax.f32 %v5679_v43, 0.0 }
 0x3d3   : > { %7024 = vst [vmem:[#allocation40_spill] sm:$0xff] %v5682_v14  ;;  %7026 = vst [vmem:[#allocation25_spill] sm:$0xff] %v5685_v50  ;;  %v5706_v59 = vadd.f32 %v2474_v36, %v7039_v15  ;;  %v7041_v63 = vld [vmem:[#allocation45_spill] sm:$0xff]  ;;  %v5715_v34 = vadd.f32 %v2477_v6, %v7045_v26  ;;  %v7047_v38 = vld [vmem:[#allocation55_spill] sm:$0xff]  ;;  %v2553_v36 = vmax.f32 %v5655_v42, 0.0  ;;  %v2555_v15 = vmax.f32 %v5661_v10, 0.0 }
 0x3d4   : > { %7028 = vst [vmem:[#allocation41_spill] sm:$0xff] %v5688_v17  ;;  %7030 = vst [vmem:[#allocation21_spill] sm:$0xff] %v5691_v53  ;;  %v5709_v45 = vadd.f32 %v2475_v16, %v7041_v63  ;;  %v5718_v41 = vadd.f32 %v2478_v4, %v7047_v38  ;;  %v7049_v33 = vld [vmem:[#allocation56_spill] sm:$0xff]  ;;  %v7051_v3 = vld [vmem:[#allocation30_spill] sm:$0xff]  ;;  %v2554_v16 = vmax.f32 %v5658_v49, 0.0  ;;  %v2557_v6 = vmax.f32 %v5667_v60, 0.0 }
 0x3d5   : > { %7032 = vst [vmem:[#allocation28_spill] sm:$0xff] %v5694_v30  ;;  %7034 = vst [vmem:[#allocation24_spill] sm:$0xff] %v5697_v22  ;;  %v5721_v7 = vadd.f32 %v2479_v47, %v7049_v33  ;;  %v5724_v23 = vadd.f32 %v2480_v5, %v7051_v3  ;;  %v2558_v63 = vmax.f32 %v5670_v20, 0.0  ;;  %v2559_v4 = vmax.f32 %v5673_v8, 0.0  ;;  %v7056_v43 = vld [vmem:[#allocation19_spill] sm:$0xff]  ;;  %v7059_v20 = vld [vmem:[#allocation48_spill] sm:$0xff] }
 0x3d6   : > { %7036 = vst [vmem:[#allocation43_spill] sm:$0xff] %v5700_v24  ;;  %7038 = vst [vmem:[#allocation26_spill] sm:$0xff] %v5703_v18  ;;  %v2560_v47 = vmax.f32 %v5676_v21, 0.0  ;;  %v2562_v5 = vmax.f32 %v5682_v14, 0.0  ;;  %v2563_v26 = vmax.f32 %v5685_v50, 0.0  ;;  %v2564_v38 = vmax.f32 %v5688_v17, 0.0 }
 0x3d7   : > { %7040 = vst [vmem:[#allocation33_spill] sm:$0xff] %v5706_v59  ;;  %7042 = vst [vmem:[#allocation29_spill] sm:$0xff] %v5709_v45  ;;  %v2565_v33 = vmax.f32 %v5691_v53, 0.0  ;;  %v2566_v3 = vmax.f32 %v5694_v30, 0.0  ;;  %v7055_v59 = vld [vmem:[#allocation18_spill] sm:$0xff]  ;;  %v2572_v14 = vmul.f32 %v2556_v52, %v7056_v43  ;;  %v7057_v21 = vld [vmem:[#allocation23_spill] sm:$0xff]  ;;  %v2575_v53 = vmul.f32 %v2559_v4, %v7059_v20 }
 0x3d8   : > { %7044 = vst [vmem:[#allocation45_spill] sm:$0xff] %v5712_v28  ;;  %7046 = vst [vmem:[#allocation47_spill] sm:$0xff] %v5715_v34  ;;  %v7054_v28 = vld [vmem:[#allocation11_spill] sm:$0xff]  ;;  %v2571_v18 = vmul.f32 %v2555_v15, %v7055_v59  ;;  %v2573_v50 = vmul.f32 %v2557_v6, %v7057_v21  ;;  %v7061_v58 = vld [vmem:[#allocation16_spill] sm:$0xff] }
 0x3d9   : > { %7048 = vst [vmem:[#allocation50_spill] sm:$0xff] %v5718_v41  ;;  %7050 = vst [vmem:[#allocation55_spill] sm:$0xff] %v5721_v7  ;;  %v2568_v7 = vmax.f32 %v5700_v24, 0.0  ;;  %v7053_v41 = vld [vmem:[#allocation10_spill] sm:$0xff]  ;;  %v2570_v45 = vmul.f32 %v2554_v16, %v7054_v28  ;;  %v7058_v8 = vld [vmem:[#allocation31_spill] sm:$0xff] }
 0x3da   : > { %7052 = vst [vmem:[#allocation56_spill] sm:$0xff] %v5724_v23  ;;  %v2567_v23 = vmax.f32 %v5697_v22, 0.0  ;;  %v2569_v34 = vmul.f32 %v2553_v36, %v7053_v41  ;;  %v2574_v17 = vmul.f32 %v2558_v63, %v7058_v8  ;;  %v7060_v60 = vld [vmem:[#allocation51_spill] sm:$0xff]  ;;  %v2577_v22 = vmul.f32 %v2561_v48, %v7061_v58  ;;  %v7062_v10 = vld [vmem:[#allocation17_spill] sm:$0xff]  ;;  %v7063_v49 = vld [vmem:[#allocation22_spill] sm:$0xff] }
 0x3db   : > { %v2576_v30 = vmul.f32 %v2560_v47, %v7060_v60  ;;  %v2578_v24 = vmul.f32 %v2562_v5, %v7062_v10  ;;  %v2579_v36 = vmul.f32 %v2563_v26, %v7063_v49  ;;  %v7064_v41 = vld [vmem:[#allocation20_spill] sm:$0xff]  ;;  %v7065_v28 = vld [vmem:[#allocation46_spill] sm:$0xff]  ;;  %v7066_v59 = vld [vmem:[#allocation49_spill] sm:$0xff]  ;;  %v2584_v63 = vmul.f32 %v2568_v7, %v7007_v29 }
 0x3dc   : > { %v2580_v16 = vmul.f32 %v2564_v38, %v7064_v41  ;;  %v2581_v15 = vmul.f32 %v2565_v33, %v7065_v28  ;;  %v2582_v52 = vmul.f32 %v2566_v3, %v7066_v59  ;;  %v7067_v43 = vld [vmem:[#allocation52_spill] sm:$0xff]  ;;  %v2585_v8 = vadd.f32 %v2577_v22, %v2569_v34 }
 0x3dd   : > { %v2583_v6 = vmul.f32 %v2567_v23, %v7067_v43  ;;  %v2592_v4 = vadd.f32 %v2578_v24, %v2570_v45  ;;  %v2599_v20 = vadd.f32 %v2579_v36, %v2571_v18  ;;  %v2634_v10 = vadd.f32 %v2584_v63, %v2576_v30 }
 0x3de   : > { %v2606_v47 = vadd.f32 %v2580_v16, %v2572_v14  ;;  %v2613_v60 = vadd.f32 %v2581_v15, %v2573_v50  ;;  %v2586_v48 = vrot.slane %v2585_v8, 4  ;;  %v2620_v58 = vadd.f32 %v2582_v52, %v2574_v17 }
 0x3df   : > { %v2627_v5 = vadd.f32 %v2583_v6, %v2575_v53  ;;  %v2593_v26 = vrot.slane %v2592_v4, 4  ;;  %v2600_v49 = vrot.slane %v2599_v20, 4  ;;  %v2635_v59 = vrot.slane %v2634_v10, 4 }
 0x3e0   : > { %v2607_v38 = vrot.slane %v2606_v47, 4  ;;  %v2614_v41 = vrot.slane %v2613_v60, 4  ;;  %v2587_v33 = vadd.f32 %v2586_v48, %v2585_v8  ;;  %v2621_v28 = vrot.slane %v2620_v58, 4 }
 0x3e1   : > { %v2628_v3 = vrot.slane %v2627_v5, 4  ;;  %v2594_v23 = vadd.f32 %v2593_v26, %v2592_v4  ;;  %v2601_v43 = vadd.f32 %v2600_v49, %v2599_v20  ;;  %v2636_v50 = vadd.f32 %v2635_v59, %v2634_v10 }
 0x3e2   : > { %v2608_v7 = vadd.f32 %v2607_v38, %v2606_v47  ;;  %v2615_v22 = vadd.f32 %v2614_v41, %v2613_v60  ;;  %v2588_v24 = vrot.slane %v2587_v33, 2  ;;  %v2622_v18 = vadd.f32 %v2621_v28, %v2620_v58 }
 0x3e3   : > { %v2629_v14 = vadd.f32 %v2628_v3, %v2627_v5  ;;  %v2595_v45 = vrot.slane %v2594_v23, 2  ;;  %v2602_v17 = vrot.slane %v2601_v43, 2  ;;  %v2637_v15 = vrot.slane %v2636_v50, 2 }
 0x3e4   : > { %v2609_v53 = vrot.slane %v2608_v7, 2  ;;  %v2616_v30 = vrot.slane %v2615_v22, 2  ;;  %v2589_v34 = vadd.f32 %v2588_v24, %v2587_v33  ;;  %v2623_v36 = vrot.slane %v2622_v18, 2 }
 0x3e5   : > { %v2630_v16 = vrot.slane %v2629_v14, 2  ;;  %v2596_v8 = vadd.f32 %v2595_v45, %v2594_v23  ;;  %v2603_v52 = vadd.f32 %v2602_v17, %v2601_v43  ;;  %v2638_v60 = vadd.f32 %v2637_v15, %v2636_v50 }
 0x3e6   : > { %v2610_v6 = vadd.f32 %v2609_v53, %v2608_v7  ;;  %v2617_v63 = vadd.f32 %v2616_v30, %v2615_v22  ;;  %v2590_v4 = vrot.slane %v2589_v34, 1  ;;  %v2624_v49 = vadd.f32 %v2623_v36, %v2622_v18 }
 0x3e7   : > { %v2631_v20 = vadd.f32 %v2630_v16, %v2629_v14  ;;  %v2597_v41 = vrot.slane %v2596_v8, 1  ;;  %v2604_v58 = vrot.slane %v2603_v52, 1  ;;  %v2639_v5 = vrot.slane %v2638_v60, 1 }
 0x3e8   : > { %v2611_v28 = vrot.slane %v2610_v6, 1  ;;  %v2618_v10 = vrot.slane %v2617_v63, 1  ;;  %v2591_v59 = vadd.f32 %v2590_v4, %v2589_v34  ;;  %v2625_v47 = vrot.slane %v2624_v49, 1 }
 0x3e9   : > { %v2632_v48 = vrot.slane %v2631_v20, 1  ;;  %v2598_v26 = vadd.f32 %v2597_v41, %v2596_v8  ;;  %v2605_v38 = vadd.f32 %v2604_v58, %v2603_v52  ;;  %v2640_v7 = vadd.f32 %v2639_v5, %v2638_v60 }
 0x3ea   : > { %v2612_v33 = vadd.f32 %v2611_v28, %v2610_v6  ;;  %v2619_v3 = vadd.f32 %v2618_v10, %v2617_v63  ;;  %v2626_v23 = vadd.f32 %v2625_v47, %v2624_v49  ;;  %v2641_v22 = vadd.f32 %v2591_v59, %v6952_v25 }
 0x3eb   : > { %v2633_v43 = vadd.f32 %v2632_v48, %v2631_v20  ;;  %v2642_v24 = vadd.f32 %v2598_v26, %v7008_v1  ;;  %v2643_v18 = vadd.f32 %v2605_v38, %v6956_v32  ;;  %v2648_v53 = vadd.f32 %v2640_v7, %v5381_v61  ;;  %v7069_v7 = vld [vmem:[#allocation53_spill] sm:$0xff] }
 0x3ec   : > { %v2644_v14 = vadd.f32 %v2612_v33, %v6957_v19  ;;  %v2645_v50 = vadd.f32 %v2619_v3, %v5349_v9  ;;  %v2646_v45 = vadd.f32 %v2626_v23, %v5356_v31  ;;  %v2652_v30 = vrot.slane %v2641_v22, %v6897_v0  ;;  %v7068_v23 = vld [vmem:[#allocation38_spill] sm:$0xff] }
 0x3ed   : > { %v2647_v17 = vadd.f32 %v2633_v43, %v5375_v12  ;;  %v2656_v34 = vrot.slane %v2642_v24, %v6897_v0  ;;  %v2660_v36 = vrot.slane %v2643_v18, %v6897_v0  ;;  %v2680_v6 = vrot.slane %v2648_v53, %v6897_v0 }
 0x3ee   : > { %v2664_v16 = vrot.slane %v2644_v14, %v6897_v0  ;;  %v2668_v15 = vrot.slane %v2645_v50, %v6897_v0  ;;  %v2672_v8 = vrot.slane %v2646_v45, %v6897_v0  ;;  %v2681_v63 = vmul.f32 %v2652_v30, %v7009_v35 }
 0x3ef   : > { %v2676_v52 = vrot.slane %v2647_v17, %v6897_v0  ;;  %v2682_v4 = vmul.f32 %v2656_v34, %v6955_v39  ;;  %v2683_v49 = vmul.f32 %v2660_v36, %v6958_v46  ;;  %v2688_v28 = vmul.f32 %v2680_v6, %v6948_v55 }
 0x3f0   : > { %v2684_v20 = vmul.f32 %v2664_v16, %v6960_v57  ;;  %v2685_v60 = vmul.f32 %v2668_v15, %v6940_v62  ;;  %v2686_v41 = vmul.f32 %v2672_v8, %v6943_v56  ;;  %v2689_v10 = vmul.f32 %v2652_v30, %v4905_v54 }
 0x3f1   : > { %v2687_v58 = vmul.f32 %v2676_v52, %v6946_v40  ;;  %v2690_v59 = vmul.f32 %v2656_v34, %v4907_v11  ;;  %v2691_v47 = vmul.f32 %v2660_v36, %v4909_v51  ;;  %v2692_v48 = vmul.f32 %v2664_v16, %v6932_v44  ;;  %v7071_v34 = vld [vmem:[#allocation34_spill] sm:$0xff]  ;;  %v7073_v16 = vld [vmem:[#allocation32_spill] sm:$0xff] }
 0x3f2   : > { %v2693_v5 = vmul.f32 %v2668_v15, %v6941_v27  ;;  %v2694_v26 = vmul.f32 %v2672_v8, %v6944_v13  ;;  %v2695_v38 = vmul.f32 %v2676_v52, %v6947_v37  ;;  %v2696_v33 = vmul.f32 %v2680_v6, %v6949_v2  ;;  %v7075_v8 = vld [vmem:[#allocation42_spill] sm:$0xff]  ;;  %v7077_v52 = vld [vmem:[#allocation44_spill] sm:$0xff] }
 0x3f3   : > { %v5791_v3 = vadd.f32 %v2681_v63, %v5655_v42  ;;  %v5794_v43 = vadd.f32 %v2682_v4, %v7068_v23  ;;  %v5797_v30 = vadd.f32 %v2683_v49, %v7069_v7  ;;  %v5800_v36 = vadd.f32 %v2684_v20, %v7071_v34  ;;  %v7079_v42 = vld [vmem:[#allocation27_spill] sm:$0xff]  ;;  %v7081_v4 = vld [vmem:[#allocation54_spill] sm:$0xff]  ;;  %v7083_v49 = vld [vmem:[#allocation40_spill] sm:$0xff] }
 0x3f4   : > { %v5803_v15 = vadd.f32 %v2685_v60, %v7073_v16  ;;  %v5806_v13 = vadd.f32 %v2686_v41, %v7075_v8  ;;  %v5809_v6 = vadd.f32 %v2687_v58, %v7077_v52  ;;  %v5812_v63 = vadd.f32 %v2688_v28, %v7079_v42  ;;  %v7085_v20 = vld [vmem:[#allocation25_spill] sm:$0xff]  ;;  %v7091_v58 = vld [vmem:[#allocation28_spill] sm:$0xff] }
 0x3f5   : > { %7070 = vst [vmem:[#allocation30_spill] sm:$0xff] %v5797_v30  ;;  %7072 = vst [vmem:[#allocation23_spill] sm:$0xff] %v5800_v36  ;;  %v5815_v23 = vadd.f32 %v2689_v10, %v7081_v4  ;;  %v5818_v7 = vadd.f32 %v2690_v59, %v7083_v49  ;;  %v5821_v34 = vadd.f32 %v2691_v47, %v7085_v20  ;;  %v7087_v60 = vld [vmem:[#allocation41_spill] sm:$0xff]  ;;  %v7093_v28 = vld [vmem:[#allocation24_spill] sm:$0xff] }
 0x3f6   : > { %7074 = vst [vmem:[#allocation38_spill] sm:$0xff] %v5803_v15  ;;  %7076 = vst [vmem:[#allocation53_spill] sm:$0xff] %v5806_v13  ;;  %v5824_v16 = vadd.f32 %v2692_v48, %v7087_v60  ;;  %v7089_v41 = vld [vmem:[#allocation21_spill] sm:$0xff]  ;;  %v5830_v52 = vadd.f32 %v2694_v26, %v7091_v58  ;;  %v5833_v42 = vadd.f32 %v2695_v38, %v7093_v28  ;;  %v7095_v10 = vld [vmem:[#allocation43_spill] sm:$0xff] }
 0x3f7   : > { %7078 = vst [vmem:[#allocation34_spill] sm:$0xff] %v5809_v6  ;;  %7080 = vst [vmem:[#allocation32_spill] sm:$0xff] %v5812_v63  ;;  %v5827_v8 = vadd.f32 %v2693_v5, %v7089_v41  ;;  %v5836_v4 = vadd.f32 %v2696_v33, %v7095_v10  ;;  %v7097_v59 = vld [vmem:[#allocation26_spill] sm:$0xff]  ;;  %v7099_v47 = vld [vmem:[#allocation33_spill] sm:$0xff] }
 0x3f8   : > { %7082 = vst [vmem:[#allocation42_spill] sm:$0xff] %v5815_v23  ;;  %7084 = vst [vmem:[#allocation44_spill] sm:$0xff] %v5818_v7  ;;  %v5839_v49 = vadd.f32 %v2641_v22, %v7097_v59  ;;  %v5842_v20 = vadd.f32 %v2642_v24, %v7099_v47  ;;  %v7101_v48 = vld [vmem:[#allocation29_spill] sm:$0xff]  ;;  %v7105_v26 = vld [vmem:[#allocation47_spill] sm:$0xff]  ;;  %v2721_v24 = vmax.f32 %v5791_v3, 0.0  ;;  %v2723_v47 = vmax.f32 %v5797_v30, 0.0 }
 0x3f9   : > { %7086 = vst [vmem:[#allocation27_spill] sm:$0xff] %v5821_v34  ;;  %7088 = vst [vmem:[#allocation54_spill] sm:$0xff] %v5824_v16  ;;  %v5845_v60 = vadd.f32 %v2643_v18, %v7101_v48  ;;  %v7103_v5 = vld [vmem:[#allocation45_spill] sm:$0xff]  ;;  %v5851_v58 = vadd.f32 %v2645_v50, %v7105_v26  ;;  %v7107_v38 = vld [vmem:[#allocation50_spill] sm:$0xff]  ;;  %v2722_v18 = vmax.f32 %v5794_v43, 0.0  ;;  %v2725_v50 = vmax.f32 %v5803_v15, 0.0 }
 0x3fa   : > { %7090 = vst [vmem:[#allocation40_spill] sm:$0xff] %v5827_v8  ;;  %7092 = vst [vmem:[#allocation25_spill] sm:$0xff] %v5830_v52  ;;  %v5848_v41 = vadd.f32 %v2644_v14, %v7103_v5  ;;  %v5854_v28 = vadd.f32 %v2646_v45, %v7107_v38  ;;  %v7109_v33 = vld [vmem:[#allocation55_spill] sm:$0xff]  ;;  %v7111_v22 = vld [vmem:[#allocation56_spill] sm:$0xff]  ;;  %v2724_v14 = vmax.f32 %v5800_v36, 0.0  ;;  %v2726_v48 = vmax.f32 %v5806_v13, 0.0 }
 0x3fb   : > { %7094 = vst [vmem:[#allocation41_spill] sm:$0xff] %v5833_v42  ;;  %7096 = vst [vmem:[#allocation21_spill] sm:$0xff] %v5836_v4  ;;  %v5857_v10 = vadd.f32 %v2647_v17, %v7109_v33  ;;  %v5860_v59 = vadd.f32 %v2648_v53, %v7111_v22  ;;  %v2727_v45 = vmax.f32 %v5809_v6, 0.0  ;;  %v2728_v17 = vmax.f32 %v5812_v63, 0.0  ;;  %v7117_v63 = vld [vmem:[#allocation31_spill] sm:$0xff]  ;;  %v7118_v6 = vld [vmem:[#allocation48_spill] sm:$0xff] }
 0x3fc   : > { %7098 = vst [vmem:[#allocation28_spill] sm:$0xff] %v5839_v49  ;;  %7100 = vst [vmem:[#allocation24_spill] sm:$0xff] %v5842_v20  ;;  %v2729_v5 = vmax.f32 %v5815_v23, 0.0  ;;  %v2730_v53 = vmax.f32 %v5818_v7, 0.0  ;;  %v2731_v26 = vmax.f32 %v5821_v34, 0.0  ;;  %v2732_v38 = vmax.f32 %v5824_v16, 0.0 }
 0x3fd   : > { %7102 = vst [vmem:[#allocation43_spill] sm:$0xff] %v5845_v60  ;;  %7104 = vst [vmem:[#allocation26_spill] sm:$0xff] %v5848_v41  ;;  %v2733_v33 = vmax.f32 %v5827_v8, 0.0  ;;  %v2734_v22 = vmax.f32 %v5830_v52, 0.0  ;;  %v7114_v41 = vld [vmem:[#allocation11_spill] sm:$0xff]  ;;  %v7115_v20 = vld [vmem:[#allocation18_spill] sm:$0xff]  ;;  %v2741_v34 = vmul.f32 %v2725_v50, %v7057_v21  ;;  %v2742_v16 = vmul.f32 %v2726_v48, %v7117_v63 }
 0x3fe   : > { %7106 = vst [vmem:[#allocation33_spill] sm:$0xff] %v5851_v58  ;;  %7108 = vst [vmem:[#allocation29_spill] sm:$0xff] %v5854_v28  ;;  %v7113_v28 = vld [vmem:[#allocation10_spill] sm:$0xff]  ;;  %v2738_v60 = vmul.f32 %v2722_v18, %v7114_v41  ;;  %v2739_v49 = vmul.f32 %v2723_v47, %v7115_v20  ;;  %v7116_v23 = vld [vmem:[#allocation19_spill] sm:$0xff]  ;;  %v2743_v8 = vmul.f32 %v2727_v45, %v7118_v6 }
 0x3ff   : > { %7110 = vst [vmem:[#allocation45_spill] sm:$0xff] %v5857_v10  ;;  %7112 = vst [vmem:[#allocation47_spill] sm:$0xff] %v5860_v59  ;;  %v2735_v59 = vmax.f32 %v5833_v42, 0.0  ;;  %v2736_v10 = vmax.f32 %v5836_v4, 0.0  ;;  %v2737_v58 = vmul.f32 %v2721_v24, %v7113_v28  ;;  %v2740_v7 = vmul.f32 %v2724_v14, %v7116_v23  ;;  %v7119_v13 = vld [vmem:[#allocation51_spill] sm:$0xff]  ;;  %v7120_v15 = vld [vmem:[#allocation16_spill] sm:$0xff] }
 0x400   : > { %v2744_v52 = vmul.f32 %v2728_v17, %v7119_v13  ;;  %v2745_v42 = vmul.f32 %v2729_v5, %v7120_v15  ;;  %v7121_v36 = vld [vmem:[#allocation17_spill] sm:$0xff]  ;;  %v7122_v30 = vld [vmem:[#allocation22_spill] sm:$0xff]  ;;  %v7123_v28 = vld [vmem:[#allocation20_spill] sm:$0xff] }
 0x401   : > { %v2746_v4 = vmul.f32 %v2730_v53, %v7121_v36  ;;  %v2747_v24 = vmul.f32 %v2731_v26, %v7122_v30  ;;  %v2748_v18 = vmul.f32 %v2732_v38, %v7123_v28  ;;  %v7124_v41 = vld [vmem:[#allocation46_spill] sm:$0xff]  ;;  %v7125_v20 = vld [vmem:[#allocation49_spill] sm:$0xff]  ;;  %v7126_v23 = vld [vmem:[#allocation52_spill] sm:$0xff]  ;;  %v2752_v48 = vmul.f32 %v2736_v10, %v7007_v29 }
 0x402   : > { %v2749_v47 = vmul.f32 %v2733_v33, %v7124_v41  ;;  %v2750_v14 = vmul.f32 %v2734_v22, %v7125_v20  ;;  %v2751_v50 = vmul.f32 %v2735_v59, %v7126_v23  ;;  %v2753_v63 = vadd.f32 %v2745_v42, %v2737_v58 }
 0x403   : > { %v2760_v45 = vadd.f32 %v2746_v4, %v2738_v60  ;;  %v2767_v6 = vadd.f32 %v2747_v24, %v2739_v49  ;;  %v2774_v17 = vadd.f32 %v2748_v18, %v2740_v7  ;;  %v2802_v36 = vadd.f32 %v2752_v48, %v2744_v52 }
 0x404   : > { %v2781_v13 = vadd.f32 %v2749_v47, %v2741_v34  ;;  %v2754_v5 = vrot.slane %v2753_v63, 4  ;;  %v2788_v15 = vadd.f32 %v2750_v14, %v2742_v16  ;;  %v2795_v53 = vadd.f32 %v2751_v50, %v2743_v8 }
 0x405   : > { %v2761_v26 = vrot.slane %v2760_v45, 4  ;;  %v2768_v30 = vrot.slane %v2767_v6, 4  ;;  %v2775_v38 = vrot.slane %v2774_v17, 4  ;;  %v2803_v20 = vrot.slane %v2802_v36, 4 }
 0x406   : > { %v2782_v28 = vrot.slane %v2781_v13, 4  ;;  %v2755_v33 = vadd.f32 %v2754_v5, %v2753_v63  ;;  %v2789_v41 = vrot.slane %v2788_v15, 4  ;;  %v2796_v22 = vrot.slane %v2795_v53, 4 }
 0x407   : > { %v2762_v59 = vadd.f32 %v2761_v26, %v2760_v45  ;;  %v2769_v23 = vadd.f32 %v2768_v30, %v2767_v6  ;;  %v2776_v10 = vadd.f32 %v2775_v38, %v2774_v17  ;;  %v2804_v34 = vadd.f32 %v2803_v20, %v2802_v36 }
 0x408   : > { %v2783_v42 = vadd.f32 %v2782_v28, %v2781_v13  ;;  %v2756_v4 = vrot.slane %v2755_v33, 2  ;;  %v2790_v49 = vadd.f32 %v2789_v41, %v2788_v15  ;;  %v2797_v7 = vadd.f32 %v2796_v22, %v2795_v53 }
 0x409   : > { %v2763_v60 = vrot.slane %v2762_v59, 2  ;;  %v2770_v16 = vrot.slane %v2769_v23, 2  ;;  %v2777_v8 = vrot.slane %v2776_v10, 2  ;;  %v2805_v47 = vrot.slane %v2804_v34, 2 }
 0x40a   : > { %v2784_v52 = vrot.slane %v2783_v42, 2  ;;  %v2757_v58 = vadd.f32 %v2756_v4, %v2755_v33  ;;  %v2791_v24 = vrot.slane %v2790_v49, 2  ;;  %v2798_v18 = vrot.slane %v2797_v7, 2 }
 0x40b   : > { %v2764_v63 = vadd.f32 %v2763_v60, %v2762_v59  ;;  %v2771_v14 = vadd.f32 %v2770_v16, %v2769_v23  ;;  %v2778_v50 = vadd.f32 %v2777_v8, %v2776_v10  ;;  %v2806_v13 = vadd.f32 %v2805_v47, %v2804_v34 }
 0x40c   : > { %v2785_v48 = vadd.f32 %v2784_v52, %v2783_v42  ;;  %v2758_v45 = vrot.slane %v2757_v58, 1  ;;  %v2792_v30 = vadd.f32 %v2791_v24, %v2790_v49  ;;  %v2799_v6 = vadd.f32 %v2798_v18, %v2797_v7 }
 0x40d   : > { %v2765_v28 = vrot.slane %v2764_v63, 1  ;;  %v2772_v15 = vrot.slane %v2771_v14, 1  ;;  %v2779_v41 = vrot.slane %v2778_v50, 1  ;;  %v2807_v53 = vrot.slane %v2806_v13, 1 }
 0x40e   : > { %v2786_v36 = vrot.slane %v2785_v48, 1  ;;  %v2759_v20 = vadd.f32 %v2758_v45, %v2757_v58  ;;  %v2793_v17 = vrot.slane %v2792_v30, 1  ;;  %v2800_v5 = vrot.slane %v2799_v6, 1 }
 0x40f   : > { %v2766_v26 = vadd.f32 %v2765_v28, %v2764_v63  ;;  %v2773_v38 = vadd.f32 %v2772_v15, %v2771_v14  ;;  %v2780_v33 = vadd.f32 %v2779_v41, %v2778_v50  ;;  %v2808_v10 = vadd.f32 %v2807_v53, %v2806_v13 }
 0x410   : > { %v2787_v22 = vadd.f32 %v2786_v36, %v2785_v48  ;;  %v2794_v59 = vadd.f32 %v2793_v17, %v2792_v30  ;;  %v2801_v23 = vadd.f32 %v2800_v5, %v2799_v6  ;;  %v2809_v42 = vadd.f32 %v2759_v20, %v6952_v25 }
 0x411   : > { %v2810_v4 = vadd.f32 %v2766_v26, %v7008_v1  ;;  %v2811_v49 = vadd.f32 %v2773_v38, %v6956_v32  ;;  %v2812_v7 = vadd.f32 %v2780_v33, %v6957_v19  ;;  %v2816_v8 = vadd.f32 %v2808_v10, %v5381_v61  ;;  %v7127_v26 = vld [vmem:[#allocation39_spill] sm:$0xff]  ;;  %v7128_v10 = vld [vmem:[#allocation30_spill] sm:$0xff] }
 0x412   : > { %v2813_v34 = vadd.f32 %v2787_v22, %v5349_v9  ;;  %v2814_v60 = vadd.f32 %v2794_v59, %v5356_v31  ;;  %v2815_v16 = vadd.f32 %v2801_v23, %v5375_v12  ;;  %v2820_v52 = vrot.slane %v2809_v42, %v6897_v0 }
 0x413   : > { %v2824_v58 = vrot.slane %v2810_v4, %v6897_v0  ;;  %v2828_v24 = vrot.slane %v2811_v49, %v6897_v0  ;;  %v2832_v18 = vrot.slane %v2812_v7, %v6897_v0  ;;  %v2848_v50 = vrot.slane %v2816_v8, %v6897_v0 }
 0x414   : > { %v2836_v47 = vrot.slane %v2813_v34, %v6897_v0  ;;  %v2840_v63 = vrot.slane %v2814_v60, %v6897_v0  ;;  %v2844_v14 = vrot.slane %v2815_v16, %v6897_v0  ;;  %v2849_v48 = vmul.f32 %v2820_v52, %v7009_v35 }
 0x415   : > { %v2850_v45 = vmul.f32 %v2824_v58, %v6955_v39  ;;  %v2851_v30 = vmul.f32 %v2828_v24, %v6958_v46  ;;  %v2852_v6 = vmul.f32 %v2832_v18, %v6960_v57  ;;  %v2856_v41 = vmul.f32 %v2848_v50, %v6948_v55 }
 0x416   : > { %v2853_v13 = vmul.f32 %v2836_v47, %v6940_v62  ;;  %v2854_v28 = vmul.f32 %v2840_v63, %v6943_v56  ;;  %v2855_v15 = vmul.f32 %v2844_v14, %v6946_v40  ;;  %v2857_v36 = vmul.f32 %v2820_v52, %v4905_v54 }
 0x417   : > { %v2858_v20 = vmul.f32 %v2824_v58, %v4907_v11  ;;  %v2859_v17 = vmul.f32 %v2828_v24, %v4909_v51  ;;  %v2860_v5 = vmul.f32 %v2832_v18, %v6932_v44  ;;  %v2861_v53 = vmul.f32 %v2836_v47, %v6941_v27  ;;  %v7130_v58 = vld [vmem:[#allocation23_spill] sm:$0xff]  ;;  %v7132_v18 = vld [vmem:[#allocation38_spill] sm:$0xff] }
 0x418   : > { %v2862_v38 = vmul.f32 %v2840_v63, %v7127_v26  ;;  %v2863_v33 = vmul.f32 %v2844_v14, %v6947_v37  ;;  %v2864_v22 = vmul.f32 %v2848_v50, %v6949_v2  ;;  %v5927_v59 = vadd.f32 %v2849_v48, %v5791_v3  ;;  %v7134_v63 = vld [vmem:[#allocation53_spill] sm:$0xff]  ;;  %v7136_v14 = vld [vmem:[#allocation34_spill] sm:$0xff]  ;;  %v7138_v3 = vld [vmem:[#allocation32_spill] sm:$0xff] }
 0x419   : > { %v5930_v23 = vadd.f32 %v2850_v45, %v5794_v43  ;;  %v5933_v52 = vadd.f32 %v2851_v30, %v7128_v10  ;;  %v5936_v24 = vadd.f32 %v2852_v6, %v7130_v58  ;;  %v5939_v47 = vadd.f32 %v2853_v13, %v7132_v18  ;;  %v7140_v43 = vld [vmem:[#allocation42_spill] sm:$0xff]  ;;  %v7142_v30 = vld [vmem:[#allocation44_spill] sm:$0xff]  ;;  %v7144_v6 = vld [vmem:[#allocation27_spill] sm:$0xff] }
 0x41a   : > { %v5942_v26 = vadd.f32 %v2854_v28, %v7134_v63  ;;  %v5945_v50 = vadd.f32 %v2855_v15, %v7136_v14  ;;  %v5948_v48 = vadd.f32 %v2856_v41, %v7138_v3  ;;  %v5951_v45 = vadd.f32 %v2857_v36, %v7140_v43  ;;  %v7146_v13 = vld [vmem:[#allocation54_spill] sm:$0xff]  ;;  %v7148_v28 = vld [vmem:[#allocation40_spill] sm:$0xff]  ;;  %v7150_v15 = vld [vmem:[#allocation25_spill] sm:$0xff] }
 0x41b   : > { %7129 = vst [vmem:[#allocation50_spill] sm:$0xff] %v5933_v52  ;;  %7131 = vst [vmem:[#allocation55_spill] sm:$0xff] %v5936_v24  ;;  %v5954_v10 = vadd.f32 %v2858_v20, %v7142_v30  ;;  %v5957_v58 = vadd.f32 %v2859_v17, %v7144_v6  ;;  %v5960_v18 = vadd.f32 %v2860_v5, %v7146_v13  ;;  %v7152_v41 = vld [vmem:[#allocation41_spill] sm:$0xff]  ;;  %v7156_v20 = vld [vmem:[#allocation28_spill] sm:$0xff] }
 0x41c   : > { %7133 = vst [vmem:[#allocation56_spill] sm:$0xff] %v5939_v47  ;;  %7135 = vst [vmem:[#allocation30_spill] sm:$0xff] %v5942_v26  ;;  %v5963_v63 = vadd.f32 %v2861_v53, %v7148_v28  ;;  %v5966_v14 = vadd.f32 %v2862_v38, %v7150_v15  ;;  %v5969_v3 = vadd.f32 %v2863_v33, %v7152_v41  ;;  %v7154_v36 = vld [vmem:[#allocation21_spill] sm:$0xff]  ;;  %v7158_v17 = vld [vmem:[#allocation24_spill] sm:$0xff] }
 0x41d   : > { %7137 = vst [vmem:[#allocation23_spill] sm:$0xff] %v5945_v50  ;;  %7139 = vst [vmem:[#allocation38_spill] sm:$0xff] %v5948_v48  ;;  %v5972_v43 = vadd.f32 %v2864_v22, %v7154_v36  ;;  %v5975_v30 = vadd.f32 %v2809_v42, %v7156_v20  ;;  %v5978_v6 = vadd.f32 %v2810_v4, %v7158_v17  ;;  %v7160_v5 = vld [vmem:[#allocation43_spill] sm:$0xff]  ;;  %v7162_v53 = vld [vmem:[#allocation26_spill] sm:$0xff]  ;;  %v2889_v4 = vmax.f32 %v5927_v59, 0.0 }
 0x41e   : > { %7141 = vst [vmem:[#allocation53_spill] sm:$0xff] %v5951_v45  ;;  %7143 = vst [vmem:[#allocation34_spill] sm:$0xff] %v5954_v10  ;;  %v5981_v13 = vadd.f32 %v2811_v49, %v7160_v5  ;;  %v5984_v28 = vadd.f32 %v2812_v7, %v7162_v53  ;;  %v7164_v38 = vld [vmem:[#allocation33_spill] sm:$0xff]  ;;  %v7170_v42 = vld [vmem:[#allocation47_spill] sm:$0xff]  ;;  %v2890_v49 = vmax.f32 %v5930_v23, 0.0  ;;  %v2891_v17 = vmax.f32 %v5933_v52, 0.0 }
 0x41f   : > { %7145 = vst [vmem:[#allocation32_spill] sm:$0xff] %v5957_v58  ;;  %7147 = vst [vmem:[#allocation42_spill] sm:$0xff] %v5960_v18  ;;  %v5987_v15 = vadd.f32 %v2813_v34, %v7164_v38  ;;  %v7166_v33 = vld [vmem:[#allocation29_spill] sm:$0xff]  ;;  %v5996_v20 = vadd.f32 %v2816_v8, %v7170_v42  ;;  %v2892_v7 = vmax.f32 %v5936_v24, 0.0  ;;  %v2893_v34 = vmax.f32 %v5939_v47, 0.0  ;;  %v7179_v47 = vld [vmem:[#allocation16_spill] sm:$0xff] }
 0x420   : > { %7149 = vst [vmem:[#allocation44_spill] sm:$0xff] %v5963_v63  ;;  %7151 = vst [vmem:[#allocation27_spill] sm:$0xff] %v5966_v14  ;;  %v5990_v41 = vadd.f32 %v2814_v60, %v7166_v33  ;;  %v7168_v22 = vld [vmem:[#allocation45_spill] sm:$0xff]  ;;  %v2894_v5 = vmax.f32 %v5942_v26, 0.0  ;;  %v2895_v60 = vmax.f32 %v5945_v50, 0.0  ;;  %v2897_v53 = vmax.f32 %v5951_v45, 0.0 }
 0x421   : > { %7153 = vst [vmem:[#allocation54_spill] sm:$0xff] %v5969_v3  ;;  %7155 = vst [vmem:[#allocation40_spill] sm:$0xff] %v5972_v43  ;;  %v5993_v36 = vadd.f32 %v2815_v16, %v7168_v22  ;;  %v2896_v16 = vmax.f32 %v5948_v48, 0.0  ;;  %v2898_v8 = vmax.f32 %v5954_v10, 0.0  ;;  %v2899_v38 = vmax.f32 %v5957_v58, 0.0  ;;  %v7175_v45 = vld [vmem:[#allocation19_spill] sm:$0xff] }
 0x422   : > { %7157 = vst [vmem:[#allocation25_spill] sm:$0xff] %v5975_v30  ;;  %7159 = vst [vmem:[#allocation41_spill] sm:$0xff] %v5978_v6  ;;  %v2900_v33 = vmax.f32 %v5960_v18, 0.0  ;;  %v2901_v22 = vmax.f32 %v5963_v63, 0.0  ;;  %v2902_v42 = vmax.f32 %v5966_v14, 0.0  ;;  %v7174_v6 = vld [vmem:[#allocation18_spill] sm:$0xff]  ;;  %v2908_v10 = vmul.f32 %v2892_v7, %v7175_v45 }
 0x423   : > { %7161 = vst [vmem:[#allocation21_spill] sm:$0xff] %v5981_v13  ;;  %7163 = vst [vmem:[#allocation28_spill] sm:$0xff] %v5984_v28  ;;  %v7173_v28 = vld [vmem:[#allocation11_spill] sm:$0xff]  ;;  %v2907_v30 = vmul.f32 %v2891_v17, %v7174_v6  ;;  %v2909_v58 = vmul.f32 %v2893_v34, %v7057_v21  ;;  %v7177_v50 = vld [vmem:[#allocation48_spill] sm:$0xff] }
 0x424   : > { %7165 = vst [vmem:[#allocation24_spill] sm:$0xff] %v5987_v15  ;;  %7167 = vst [vmem:[#allocation43_spill] sm:$0xff] %v5990_v41  ;;  %v7172_v41 = vld [vmem:[#allocation10_spill] sm:$0xff]  ;;  %v2906_v13 = vmul.f32 %v2890_v49, %v7173_v28  ;;  %v7176_v48 = vld [vmem:[#allocation31_spill] sm:$0xff]  ;;  %v2911_v63 = vmul.f32 %v2895_v60, %v7177_v50 }
 0x425   : > { %7169 = vst [vmem:[#allocation26_spill] sm:$0xff] %v5993_v36  ;;  %7171 = vst [vmem:[#allocation33_spill] sm:$0xff] %v5996_v20  ;;  %v2903_v20 = vmax.f32 %v5969_v3, 0.0  ;;  %v2904_v36 = vmax.f32 %v5972_v43, 0.0  ;;  %v2905_v15 = vmul.f32 %v2889_v4, %v7172_v41  ;;  %v2910_v18 = vmul.f32 %v2894_v5, %v7176_v48  ;;  %v7178_v26 = vld [vmem:[#allocation51_spill] sm:$0xff]  ;;  %v7180_v24 = vld [vmem:[#allocation17_spill] sm:$0xff] }
 0x426   : > { %v2912_v14 = vmul.f32 %v2896_v16, %v7178_v26  ;;  %v2913_v3 = vmul.f32 %v2897_v53, %v7179_v47  ;;  %v2914_v43 = vmul.f32 %v2898_v8, %v7180_v24  ;;  %v7181_v52 = vld [vmem:[#allocation22_spill] sm:$0xff]  ;;  %v7182_v41 = vld [vmem:[#allocation20_spill] sm:$0xff]  ;;  %v7184_v6 = vld [vmem:[#allocation49_spill] sm:$0xff] }
 0x427   : > { %v2915_v4 = vmul.f32 %v2899_v38, %v7181_v52  ;;  %v2916_v49 = vmul.f32 %v2900_v33, %v7182_v41  ;;  %v7183_v28 = vld [vmem:[#allocation46_spill] sm:$0xff]  ;;  %v2918_v7 = vmul.f32 %v2902_v42, %v7184_v6  ;;  %v7185_v45 = vld [vmem:[#allocation52_spill] sm:$0xff]  ;;  %v2920_v5 = vmul.f32 %v2904_v36, %v7007_v29 }
 0x428   : > { %v2917_v17 = vmul.f32 %v2901_v22, %v7183_v28  ;;  %v2919_v34 = vmul.f32 %v2903_v20, %v7185_v45  ;;  %v2921_v48 = vadd.f32 %v2913_v3, %v2905_v15  ;;  %v2928_v60 = vadd.f32 %v2914_v43, %v2906_v13 }
 0x429   : > { %v2935_v50 = vadd.f32 %v2915_v4, %v2907_v30  ;;  %v2942_v16 = vadd.f32 %v2916_v49, %v2908_v10  ;;  %v2956_v47 = vadd.f32 %v2918_v7, %v2910_v18  ;;  %v2970_v24 = vadd.f32 %v2920_v5, %v2912_v14 }
 0x42a   : > { %v2949_v26 = vadd.f32 %v2917_v17, %v2909_v58  ;;  %v2922_v53 = vrot.slane %v2921_v48, 4  ;;  %v2963_v8 = vadd.f32 %v2919_v34, %v2911_v63  ;;  %v2929_v38 = vrot.slane %v2928_v60, 4 }
 0x42b   : > { %v2936_v52 = vrot.slane %v2935_v50, 4  ;;  %v2943_v33 = vrot.slane %v2942_v16, 4  ;;  %v2957_v28 = vrot.slane %v2956_v47, 4  ;;  %v2971_v6 = vrot.slane %v2970_v24, 4 }
 0x42c   : > { %v2950_v41 = vrot.slane %v2949_v26, 4  ;;  %v2923_v22 = vadd.f32 %v2922_v53, %v2921_v48  ;;  %v2964_v42 = vrot.slane %v2963_v8, 4  ;;  %v2930_v20 = vadd.f32 %v2929_v38, %v2928_v60 }
 0x42d   : > { %v2937_v45 = vadd.f32 %v2936_v52, %v2935_v50  ;;  %v2944_v36 = vadd.f32 %v2943_v33, %v2942_v16  ;;  %v2958_v30 = vadd.f32 %v2957_v28, %v2956_v47  ;;  %v2972_v58 = vadd.f32 %v2971_v6, %v2970_v24 }
 0x42e   : > { %v2951_v3 = vadd.f32 %v2950_v41, %v2949_v26  ;;  %v2924_v43 = vrot.slane %v2923_v22, 2  ;;  %v2965_v10 = vadd.f32 %v2964_v42, %v2963_v8  ;;  %v2931_v13 = vrot.slane %v2930_v20, 2 }
 0x42f   : > { %v2938_v18 = vrot.slane %v2937_v45, 2  ;;  %v2945_v63 = vrot.slane %v2944_v36, 2  ;;  %v2959_v4 = vrot.slane %v2958_v30, 2  ;;  %v2973_v17 = vrot.slane %v2972_v58, 2 }
 0x430   : > { %v2952_v14 = vrot.slane %v2951_v3, 2  ;;  %v2925_v15 = vadd.f32 %v2924_v43, %v2923_v22  ;;  %v2966_v49 = vrot.slane %v2965_v10, 2  ;;  %v2932_v48 = vadd.f32 %v2931_v13, %v2930_v20 }
 0x431   : > { %v2939_v7 = vadd.f32 %v2938_v18, %v2937_v45  ;;  %v2946_v34 = vadd.f32 %v2945_v63, %v2944_v36  ;;  %v2960_v52 = vadd.f32 %v2959_v4, %v2958_v30  ;;  %v2974_v26 = vadd.f32 %v2973_v17, %v2972_v58 }
 0x432   : > { %v2953_v5 = vadd.f32 %v2952_v14, %v2951_v3  ;;  %v2926_v60 = vrot.slane %v2925_v15, 1  ;;  %v2967_v50 = vadd.f32 %v2966_v49, %v2965_v10  ;;  %v2933_v41 = vrot.slane %v2932_v48, 1 }
 0x433   : > { %v2940_v47 = vrot.slane %v2939_v7, 1  ;;  %v2947_v28 = vrot.slane %v2946_v34, 1  ;;  %v2961_v16 = vrot.slane %v2960_v52, 1  ;;  %v2975_v8 = vrot.slane %v2974_v26, 1 }
 0x434   : > { %v2954_v24 = vrot.slane %v2953_v5, 1  ;;  %v2927_v6 = vadd.f32 %v2926_v60, %v2925_v15  ;;  %v2968_v53 = vrot.slane %v2967_v50, 1  ;;  %v2934_v38 = vadd.f32 %v2933_v41, %v2932_v48 }
 0x435   : > { %v2941_v33 = vadd.f32 %v2940_v47, %v2939_v7  ;;  %v2948_v22 = vadd.f32 %v2947_v28, %v2946_v34  ;;  %v2962_v20 = vadd.f32 %v2961_v16, %v2960_v52  ;;  %v2976_v36 = vadd.f32 %v2975_v8, %v2974_v26 }
 0x436   : > { %v2955_v42 = vadd.f32 %v2954_v24, %v2953_v5  ;;  %v2969_v45 = vadd.f32 %v2968_v53, %v2967_v50  ;;  %v2977_v3 = vadd.f32 %v2927_v6, %v6952_v25  ;;  %v2978_v43 = vadd.f32 %v2934_v38, %v7008_v1  ;;  %v7186_v38 = vld [vmem:[#allocation39_spill] sm:$0xff] }
 0x437   : > { %v2979_v30 = vadd.f32 %v2941_v33, %v6956_v32  ;;  %v2980_v10 = vadd.f32 %v2948_v22, %v6957_v19  ;;  %v2982_v13 = vadd.f32 %v2962_v20, %v5356_v31  ;;  %v2984_v63 = vadd.f32 %v2976_v36, %v5381_v61  ;;  %v7187_v36 = vld [vmem:[#allocation50_spill] sm:$0xff] }
 0x438   : > { %v2981_v58 = vadd.f32 %v2955_v42, %v5349_v9  ;;  %v2983_v18 = vadd.f32 %v2969_v45, %v5375_v12  ;;  %v2988_v14 = vrot.slane %v2977_v3, %v6897_v0  ;;  %v2992_v15 = vrot.slane %v2978_v43, %v6897_v0 }
 0x439   : > { %v2996_v4 = vrot.slane %v2979_v30, %v6897_v0  ;;  %v3000_v49 = vrot.slane %v2980_v10, %v6897_v0  ;;  %v3008_v48 = vrot.slane %v2982_v13, %v6897_v0  ;;  %v3016_v34 = vrot.slane %v2984_v63, %v6897_v0 }
 0x43a   : > { %v3004_v17 = vrot.slane %v2981_v58, %v6897_v0  ;;  %v3012_v7 = vrot.slane %v2983_v18, %v6897_v0  ;;  %v3017_v5 = vmul.f32 %v2988_v14, %v7009_v35  ;;  %v3018_v60 = vmul.f32 %v2992_v15, %v6955_v39 }
 0x43b   : > { %v3019_v52 = vmul.f32 %v2996_v4, %v6958_v46  ;;  %v3020_v50 = vmul.f32 %v3000_v49, %v6960_v57  ;;  %v3022_v41 = vmul.f32 %v3008_v48, %v6943_v56  ;;  %v3024_v28 = vmul.f32 %v3016_v34, %v6948_v55 }
 0x43c   : > { %v3021_v26 = vmul.f32 %v3004_v17, %v6940_v62  ;;  %v3023_v47 = vmul.f32 %v3012_v7, %v6946_v40  ;;  %v3025_v24 = vmul.f32 %v2988_v14, %v4905_v54  ;;  %v3026_v6 = vmul.f32 %v2992_v15, %v4907_v11  ;;  %v7189_v15 = vld [vmem:[#allocation55_spill] sm:$0xff] }
 0x43d   : > { %v3027_v16 = vmul.f32 %v2996_v4, %v4909_v51  ;;  %v3028_v53 = vmul.f32 %v3000_v49, %v6932_v44  ;;  %v3029_v8 = vmul.f32 %v3004_v17, %v6941_v27  ;;  %v3030_v33 = vmul.f32 %v3008_v48, %v7186_v38  ;;  %v7191_v49 = vld [vmem:[#allocation56_spill] sm:$0xff]  ;;  %v7193_v48 = vld [vmem:[#allocation30_spill] sm:$0xff] }
 0x43e   : > { %v3031_v22 = vmul.f32 %v3012_v7, %v6947_v37  ;;  %v3032_v42 = vmul.f32 %v3016_v34, %v6949_v2  ;;  %v6063_v20 = vadd.f32 %v3017_v5, %v5927_v59  ;;  %v6066_v45 = vadd.f32 %v3018_v60, %v5930_v23  ;;  %v7195_v7 = vld [vmem:[#allocation23_spill] sm:$0xff]  ;;  %v7197_v59 = vld [vmem:[#allocation38_spill] sm:$0xff]  ;;  %v7199_v23 = vld [vmem:[#allocation53_spill] sm:$0xff] }
 0x43f   : > { %v6069_v14 = vadd.f32 %v3019_v52, %v7187_v36  ;;  %v6072_v4 = vadd.f32 %v3020_v50, %v7189_v15  ;;  %v6075_v17 = vadd.f32 %v3021_v26, %v7191_v49  ;;  %v6078_v38 = vadd.f32 %v3022_v41, %v7193_v48  ;;  %v7201_v52 = vld [vmem:[#allocation34_spill] sm:$0xff]  ;;  %v7203_v50 = vld [vmem:[#allocation32_spill] sm:$0xff] }
 0x440   : > { %v6081_v34 = vadd.f32 %v3023_v47, %v7195_v7  ;;  %v6084_v5 = vadd.f32 %v3024_v28, %v7197_v59  ;;  %v6087_v60 = vadd.f32 %v3025_v24, %v7199_v23  ;;  %v6090_v36 = vadd.f32 %v3026_v6, %v7201_v52  ;;  %v7205_v26 = vld [vmem:[#allocation42_spill] sm:$0xff]  ;;  %v7207_v41 = vld [vmem:[#allocation44_spill] sm:$0xff]  ;;  %v7209_v47 = vld [vmem:[#allocation27_spill] sm:$0xff] }
 0x441   : > { %7188 = vst [vmem:[#allocation29_spill] sm:$0xff] %v6069_v14  ;;  %7190 = vst [vmem:[#allocation45_spill] sm:$0xff] %v6072_v4  ;;  %v6093_v15 = vadd.f32 %v3027_v16, %v7203_v50  ;;  %v6096_v49 = vadd.f32 %v3028_v53, %v7205_v26  ;;  %v6099_v48 = vadd.f32 %v3029_v8, %v7207_v41  ;;  %v7211_v28 = vld [vmem:[#allocation54_spill] sm:$0xff]  ;;  %v7213_v24 = vld [vmem:[#allocation40_spill] sm:$0xff] }
 0x442   : > { %7192 = vst [vmem:[#allocation47_spill] sm:$0xff] %v6075_v17  ;;  %7194 = vst [vmem:[#allocation50_spill] sm:$0xff] %v6078_v38  ;;  %v6102_v7 = vadd.f32 %v3030_v33, %v7209_v47  ;;  %v6105_v59 = vadd.f32 %v3031_v22, %v7211_v28  ;;  %v6108_v23 = vadd.f32 %v3032_v42, %v7213_v24  ;;  %v7215_v6 = vld [vmem:[#allocation25_spill] sm:$0xff]  ;;  %v7221_v8 = vld [vmem:[#allocation28_spill] sm:$0xff] }
 0x443   : > { %7196 = vst [vmem:[#allocation55_spill] sm:$0xff] %v6081_v34  ;;  %7198 = vst [vmem:[#allocation56_spill] sm:$0xff] %v6084_v5  ;;  %v6111_v52 = vadd.f32 %v2977_v3, %v7215_v6  ;;  %v7217_v16 = vld [vmem:[#allocation41_spill] sm:$0xff]  ;;  %v6120_v41 = vadd.f32 %v2980_v10, %v7221_v8  ;;  %v7223_v33 = vld [vmem:[#allocation24_spill] sm:$0xff]  ;;  %v3060_v10 = vmax.f32 %v6072_v4, 0.0  ;;  %v3065_v8 = vmax.f32 %v6087_v60, 0.0 }
 0x444   : > { %7200 = vst [vmem:[#allocation30_spill] sm:$0xff] %v6087_v60  ;;  %7202 = vst [vmem:[#allocation23_spill] sm:$0xff] %v6090_v36  ;;  %v6114_v50 = vadd.f32 %v2978_v43, %v7217_v16  ;;  %v7219_v53 = vld [vmem:[#allocation21_spill] sm:$0xff]  ;;  %v6123_v47 = vadd.f32 %v2981_v58, %v7223_v33  ;;  %v7225_v22 = vld [vmem:[#allocation43_spill] sm:$0xff]  ;;  %v3057_v43 = vmax.f32 %v6063_v20, 0.0  ;;  %v3059_v16 = vmax.f32 %v6069_v14, 0.0 }
 0x445   : > { %7204 = vst [vmem:[#allocation38_spill] sm:$0xff] %v6093_v15  ;;  %7206 = vst [vmem:[#allocation53_spill] sm:$0xff] %v6096_v49  ;;  %v6117_v26 = vadd.f32 %v2979_v30, %v7219_v53  ;;  %v6126_v28 = vadd.f32 %v2982_v13, %v7225_v22  ;;  %v7227_v42 = vld [vmem:[#allocation26_spill] sm:$0xff]  ;;  %v7229_v3 = vld [vmem:[#allocation33_spill] sm:$0xff]  ;;  %v3058_v30 = vmax.f32 %v6066_v45, 0.0  ;;  %v3061_v58 = vmax.f32 %v6075_v17, 0.0 }
 0x446   : > { %7208 = vst [vmem:[#allocation34_spill] sm:$0xff] %v6099_v48  ;;  %7210 = vst [vmem:[#allocation32_spill] sm:$0xff] %v6102_v7  ;;  %v6129_v24 = vadd.f32 %v2983_v18, %v7227_v42  ;;  %v6132_v6 = vadd.f32 %v2984_v63, %v7229_v3  ;;  %v3062_v53 = vmax.f32 %v6078_v38, 0.0  ;;  %v3063_v13 = vmax.f32 %v6081_v34, 0.0  ;;  %v7234_v60 = vld [vmem:[#allocation19_spill] sm:$0xff]  ;;  %v7236_v34 = vld [vmem:[#allocation48_spill] sm:$0xff] }
 0x447   : > { %7212 = vst [vmem:[#allocation42_spill] sm:$0xff] %v6105_v59  ;;  %7214 = vst [vmem:[#allocation44_spill] sm:$0xff] %v6108_v23  ;;  %v3064_v18 = vmax.f32 %v6084_v5, 0.0  ;;  %v3066_v63 = vmax.f32 %v6090_v36, 0.0  ;;  %v3067_v33 = vmax.f32 %v6093_v15, 0.0  ;;  %v3068_v22 = vmax.f32 %v6096_v49, 0.0 }
 0x448   : > { %7216 = vst [vmem:[#allocation27_spill] sm:$0xff] %v6111_v52  ;;  %7218 = vst [vmem:[#allocation54_spill] sm:$0xff] %v6114_v50  ;;  %v3069_v42 = vmax.f32 %v6099_v48, 0.0  ;;  %v3070_v3 = vmax.f32 %v6102_v7, 0.0  ;;  %v7233_v50 = vld [vmem:[#allocation18_spill] sm:$0xff]  ;;  %v3076_v36 = vmul.f32 %v3060_v10, %v7234_v60  ;;  %v3077_v15 = vmul.f32 %v3061_v58, %v7057_v21  ;;  %v7235_v5 = vld [vmem:[#allocation31_spill] sm:$0xff] }
 0x449   : > { %7220 = vst [vmem:[#allocation40_spill] sm:$0xff] %v6117_v26  ;;  %7222 = vst [vmem:[#allocation25_spill] sm:$0xff] %v6120_v41  ;;  %v7232_v41 = vld [vmem:[#allocation11_spill] sm:$0xff]  ;;  %v3075_v52 = vmul.f32 %v3059_v16, %v7233_v50  ;;  %v3078_v49 = vmul.f32 %v3062_v53, %v7235_v5  ;;  %v3079_v48 = vmul.f32 %v3063_v13, %v7236_v34  ;;  %v7238_v17 = vld [vmem:[#allocation16_spill] sm:$0xff] }
 0x44a   : > { %7224 = vst [vmem:[#allocation41_spill] sm:$0xff] %v6123_v47  ;;  %7226 = vst [vmem:[#allocation21_spill] sm:$0xff] %v6126_v28  ;;  %v7231_v28 = vld [vmem:[#allocation10_spill] sm:$0xff]  ;;  %v3074_v26 = vmul.f32 %v3058_v30, %v7232_v41  ;;  %v7237_v38 = vld [vmem:[#allocation51_spill] sm:$0xff] }
 0x44b   : > { %7228 = vst [vmem:[#allocation28_spill] sm:$0xff] %v6129_v24  ;;  %7230 = vst [vmem:[#allocation24_spill] sm:$0xff] %v6132_v6  ;;  %v3071_v6 = vmax.f32 %v6105_v59, 0.0  ;;  %v3072_v24 = vmax.f32 %v6108_v23, 0.0  ;;  %v3073_v47 = vmul.f32 %v3057_v43, %v7231_v28  ;;  %v3080_v7 = vmul.f32 %v3064_v18, %v7237_v38  ;;  %v7239_v4 = vld [vmem:[#allocation17_spill] sm:$0xff]  ;;  %v7240_v14 = vld [vmem:[#allocation22_spill] sm:$0xff] }
 0x44c   : > { %v3081_v59 = vmul.f32 %v3065_v8, %v7238_v17  ;;  %v3082_v23 = vmul.f32 %v3066_v63, %v7239_v4  ;;  %v3083_v43 = vmul.f32 %v3067_v33, %v7240_v14  ;;  %v7241_v28 = vld [vmem:[#allocation20_spill] sm:$0xff]  ;;  %v7242_v41 = vld [vmem:[#allocation46_spill] sm:$0xff]  ;;  %v7243_v50 = vld [vmem:[#allocation49_spill] sm:$0xff] }
 0x44d   : > { %v3084_v30 = vmul.f32 %v3068_v22, %v7241_v28  ;;  %v3085_v16 = vmul.f32 %v3069_v42, %v7242_v41  ;;  %v3086_v10 = vmul.f32 %v3070_v3, %v7243_v50  ;;  %v7244_v60 = vld [vmem:[#allocation52_spill] sm:$0xff]  ;;  %v3088_v53 = vmul.f32 %v3072_v24, %v7007_v29 }
 0x44e   : > { %v3087_v58 = vmul.f32 %v3071_v6, %v7244_v60  ;;  %v3089_v5 = vadd.f32 %v3081_v59, %v3073_v47  ;;  %v3096_v13 = vadd.f32 %v3082_v23, %v3074_v26  ;;  %v3103_v34 = vadd.f32 %v3083_v43, %v3075_v52 }
 0x44f   : > { %v3110_v18 = vadd.f32 %v3084_v30, %v3076_v36  ;;  %v3117_v38 = vadd.f32 %v3085_v16, %v3077_v15  ;;  %v3124_v17 = vadd.f32 %v3086_v10, %v3078_v49  ;;  %v3138_v4 = vadd.f32 %v3088_v53, %v3080_v7 }
 0x450   : > { %v3090_v8 = vrot.slane %v3089_v5, 4  ;;  %v3131_v63 = vadd.f32 %v3087_v58, %v3079_v48  ;;  %v3097_v33 = vrot.slane %v3096_v13, 4  ;;  %v3104_v14 = vrot.slane %v3103_v34, 4 }
 0x451   : > { %v3111_v22 = vrot.slane %v3110_v18, 4  ;;  %v3118_v28 = vrot.slane %v3117_v38, 4  ;;  %v3125_v41 = vrot.slane %v3124_v17, 4  ;;  %v3139_v50 = vrot.slane %v3138_v4, 4 }
 0x452   : > { %v3091_v42 = vadd.f32 %v3090_v8, %v3089_v5  ;;  %v3132_v3 = vrot.slane %v3131_v63, 4  ;;  %v3098_v6 = vadd.f32 %v3097_v33, %v3096_v13  ;;  %v3105_v60 = vadd.f32 %v3104_v14, %v3103_v34 }
 0x453   : > { %v3112_v24 = vadd.f32 %v3111_v22, %v3110_v18  ;;  %v3119_v59 = vadd.f32 %v3118_v28, %v3117_v38  ;;  %v3126_v52 = vadd.f32 %v3125_v41, %v3124_v17  ;;  %v3140_v15 = vadd.f32 %v3139_v50, %v3138_v4 }
 0x454   : > { %v3092_v23 = vrot.slane %v3091_v42, 2  ;;  %v3133_v36 = vadd.f32 %v3132_v3, %v3131_v63  ;;  %v3099_v26 = vrot.slane %v3098_v6, 2  ;;  %v3106_v49 = vrot.slane %v3105_v60, 2 }
 0x455   : > { %v3113_v48 = vrot.slane %v3112_v24, 2  ;;  %v3120_v7 = vrot.slane %v3119_v59, 2  ;;  %v3127_v43 = vrot.slane %v3126_v52, 2  ;;  %v3141_v16 = vrot.slane %v3140_v15, 2 }
 0x456   : > { %v3093_v47 = vadd.f32 %v3092_v23, %v3091_v42  ;;  %v3134_v30 = vrot.slane %v3133_v36, 2  ;;  %v3100_v5 = vadd.f32 %v3099_v26, %v3098_v6  ;;  %v3107_v10 = vadd.f32 %v3106_v49, %v3105_v60 }
 0x457   : > { %v3114_v58 = vadd.f32 %v3113_v48, %v3112_v24  ;;  %v3121_v53 = vadd.f32 %v3120_v7, %v3119_v59  ;;  %v3128_v14 = vadd.f32 %v3127_v43, %v3126_v52  ;;  %v3142_v38 = vadd.f32 %v3141_v16, %v3140_v15 }
 0x458   : > { %v3094_v13 = vrot.slane %v3093_v47, 1  ;;  %v3135_v34 = vadd.f32 %v3134_v30, %v3133_v36  ;;  %v3101_v28 = vrot.slane %v3100_v5, 1  ;;  %v3108_v17 = vrot.slane %v3107_v10, 1 }
 0x459   : > { %v3115_v41 = vrot.slane %v3114_v58, 1  ;;  %v3122_v4 = vrot.slane %v3121_v53, 1  ;;  %v3129_v18 = vrot.slane %v3128_v14, 1  ;;  %v3143_v63 = vrot.slane %v3142_v38, 1 }
 0x45a   : > { %v3095_v50 = vadd.f32 %v3094_v13, %v3093_v47  ;;  %v3136_v8 = vrot.slane %v3135_v34, 1  ;;  %v3102_v33 = vadd.f32 %v3101_v28, %v3100_v5  ;;  %v3109_v22 = vadd.f32 %v3108_v17, %v3107_v10 }
 0x45b   : > { %v3116_v42 = vadd.f32 %v3115_v41, %v3114_v58  ;;  %v3123_v3 = vadd.f32 %v3122_v4, %v3121_v53  ;;  %v3130_v6 = vadd.f32 %v3129_v18, %v3128_v14  ;;  %v3144_v24 = vadd.f32 %v3143_v63, %v3142_v38 }
 0x45c   : > { %v3137_v60 = vadd.f32 %v3136_v8, %v3135_v34  ;;  %v3145_v59 = vadd.f32 %v3095_v50, %v6952_v25  ;;  %v3146_v23 = vadd.f32 %v3102_v33, %v7008_v1  ;;  %v3147_v52 = vadd.f32 %v3109_v22, %v6956_v32  ;;  %v7245_v33 = vld [vmem:[#allocation39_spill] sm:$0xff] }
 0x45d   : > { %v3148_v36 = vadd.f32 %v3116_v42, %v6957_v19  ;;  %v3149_v15 = vadd.f32 %v3123_v3, %v5349_v9  ;;  %v3150_v26 = vadd.f32 %v3130_v6, %v5356_v31  ;;  %v3152_v48 = vadd.f32 %v3144_v24, %v5381_v61  ;;  %v7246_v24 = vld [vmem:[#allocation29_spill] sm:$0xff] }
 0x45e   : > { %v3151_v49 = vadd.f32 %v3137_v60, %v5375_v12  ;;  %v3156_v7 = vrot.slane %v3145_v59, %v6897_v0  ;;  %v3160_v47 = vrot.slane %v3146_v23, %v6897_v0  ;;  %v3164_v43 = vrot.slane %v3147_v52, %v6897_v0 }
 0x45f   : > { %v3168_v30 = vrot.slane %v3148_v36, %v6897_v0  ;;  %v3172_v16 = vrot.slane %v3149_v15, %v6897_v0  ;;  %v3176_v5 = vrot.slane %v3150_v26, %v6897_v0  ;;  %v3184_v58 = vrot.slane %v3152_v48, %v6897_v0 }
 0x460   : > { %v3180_v10 = vrot.slane %v3151_v49, %v6897_v0  ;;  %v3185_v53 = vmul.f32 %v3156_v7, %v7009_v35  ;;  %v3186_v13 = vmul.f32 %v3160_v47, %v6955_v39  ;;  %v3187_v14 = vmul.f32 %v3164_v43, %v6958_v46 }
 0x461   : > { %v3188_v34 = vmul.f32 %v3168_v30, %v6960_v57  ;;  %v3189_v38 = vmul.f32 %v3172_v16, %v6940_v62  ;;  %v3190_v28 = vmul.f32 %v3176_v5, %v6943_v56  ;;  %v3192_v41 = vmul.f32 %v3184_v58, %v6948_v55 }
 0x462   : > { %v3191_v17 = vmul.f32 %v3180_v10, %v6946_v40  ;;  %v3193_v4 = vmul.f32 %v3156_v7, %v4905_v54  ;;  %v3194_v50 = vmul.f32 %v3160_v47, %v4907_v11  ;;  %v3195_v18 = vmul.f32 %v3164_v43, %v4909_v51  ;;  %v7248_v47 = vld [vmem:[#allocation45_spill] sm:$0xff] }
 0x463   : > { %v3196_v8 = vmul.f32 %v3168_v30, %v6932_v44  ;;  %v3197_v63 = vmul.f32 %v3172_v16, %v6941_v27  ;;  %v3198_v22 = vmul.f32 %v3176_v5, %v7245_v33  ;;  %v3199_v42 = vmul.f32 %v3180_v10, %v6947_v37  ;;  %v7250_v30 = vld [vmem:[#allocation47_spill] sm:$0xff]  ;;  %v7252_v5 = vld [vmem:[#allocation50_spill] sm:$0xff] }
 0x464   : > { %v3200_v3 = vmul.f32 %v3184_v58, %v6949_v2  ;;  %v6199_v6 = vadd.f32 %v3185_v53, %v6063_v20  ;;  %v6202_v60 = vadd.f32 %v3186_v13, %v6066_v45  ;;  %v6205_v7 = vadd.f32 %v3187_v14, %v7246_v24  ;;  %v7254_v10 = vld [vmem:[#allocation55_spill] sm:$0xff]  ;;  %v7256_v20 = vld [vmem:[#allocation56_spill] sm:$0xff]  ;;  %v7258_v45 = vld [vmem:[#allocation30_spill] sm:$0xff] }
 0x465   : > { %v6208_v43 = vadd.f32 %v3188_v34, %v7248_v47  ;;  %v6211_v16 = vadd.f32 %v3189_v38, %v7250_v30  ;;  %v6214_v33 = vadd.f32 %v3190_v28, %v7252_v5  ;;  %v6217_v58 = vadd.f32 %v3191_v17, %v7254_v10  ;;  %v7260_v14 = vld [vmem:[#allocation23_spill] sm:$0xff]  ;;  %v7262_v34 = vld [vmem:[#allocation38_spill] sm:$0xff]  ;;  %v7264_v38 = vld [vmem:[#allocation53_spill] sm:$0xff] }
 0x466   : > { %7247 = vst [vmem:[#allocation43_spill] sm:$0xff] %v6205_v7  ;;  %v6220_v53 = vadd.f32 %v3192_v41, %v7256_v20  ;;  %v6223_v13 = vadd.f32 %v3193_v4, %v7258_v45  ;;  %v6226_v24 = vadd.f32 %v3194_v50, %v7260_v14  ;;  %v6229_v47 = vadd.f32 %v3195_v18, %v7262_v34  ;;  %v7266_v28 = vld [vmem:[#allocation34_spill] sm:$0xff]  ;;  %v7268_v17 = vld [vmem:[#allocation32_spill] sm:$0xff]  ;;  %v7274_v50 = vld [vmem:[#allocation27_spill] sm:$0xff] }
 0x467   : > { %7249 = vst [vmem:[#allocation26_spill] sm:$0xff] %v6208_v43  ;;  %7251 = vst [vmem:[#allocation33_spill] sm:$0xff] %v6211_v16  ;;  %v6232_v30 = vadd.f32 %v3196_v8, %v7264_v38  ;;  %v6235_v5 = vadd.f32 %v3197_v63, %v7266_v28  ;;  %v6238_v10 = vadd.f32 %v3198_v22, %v7268_v17  ;;  %v7270_v41 = vld [vmem:[#allocation42_spill] sm:$0xff]  ;;  %v7272_v4 = vld [vmem:[#allocation44_spill] sm:$0xff] }
 0x468   : > { %7253 = vst [vmem:[#allocation29_spill] sm:$0xff] %v6214_v33  ;;  %7255 = vst [vmem:[#allocation45_spill] sm:$0xff] %v6217_v58  ;;  %v6241_v20 = vadd.f32 %v3199_v42, %v7270_v41  ;;  %v6244_v45 = vadd.f32 %v3200_v3, %v7272_v4  ;;  %v6247_v14 = vadd.f32 %v3145_v59, %v7274_v50  ;;  %v7276_v18 = vld [vmem:[#allocation54_spill] sm:$0xff]  ;;  %v7278_v8 = vld [vmem:[#allocation40_spill] sm:$0xff] }
 0x469   : > { %7257 = vst [vmem:[#allocation47_spill] sm:$0xff] %v6220_v53  ;;  %7259 = vst [vmem:[#allocation50_spill] sm:$0xff] %v6223_v13  ;;  %v6250_v34 = vadd.f32 %v3146_v23, %v7276_v18  ;;  %v6253_v38 = vadd.f32 %v3147_v52, %v7278_v8  ;;  %v7280_v63 = vld [vmem:[#allocation25_spill] sm:$0xff]  ;;  %v7286_v3 = vld [vmem:[#allocation28_spill] sm:$0xff]  ;;  %v3225_v23 = vmax.f32 %v6199_v6, 0.0  ;;  %v3226_v52 = vmax.f32 %v6202_v60, 0.0 }
 0x46a   : > { %7261 = vst [vmem:[#allocation55_spill] sm:$0xff] %v6226_v24  ;;  %7263 = vst [vmem:[#allocation56_spill] sm:$0xff] %v6229_v47  ;;  %v6256_v28 = vadd.f32 %v3148_v36, %v7280_v63  ;;  %v7282_v22 = vld [vmem:[#allocation41_spill] sm:$0xff]  ;;  %v6265_v4 = vadd.f32 %v3151_v49, %v7286_v3  ;;  %v7288_v59 = vld [vmem:[#allocation24_spill] sm:$0xff]  ;;  %v3227_v18 = vmax.f32 %v6205_v7, 0.0  ;;  %v3228_v36 = vmax.f32 %v6208_v43, 0.0 }
 0x46b   : > { %7265 = vst [vmem:[#allocation30_spill] sm:$0xff] %v6232_v30  ;;  %7267 = vst [vmem:[#allocation23_spill] sm:$0xff] %v6235_v5  ;;  %v6259_v17 = vadd.f32 %v3149_v15, %v7282_v22  ;;  %v7284_v42 = vld [vmem:[#allocation21_spill] sm:$0xff]  ;;  %v6268_v50 = vadd.f32 %v3152_v48, %v7288_v59  ;;  %v3229_v15 = vmax.f32 %v6211_v16, 0.0  ;;  %v3230_v8 = vmax.f32 %v6214_v33, 0.0  ;;  %v7296_v33 = vld [vmem:[#allocation51_spill] sm:$0xff] }
 0x46c   : > { %7269 = vst [vmem:[#allocation38_spill] sm:$0xff] %v6238_v10  ;;  %7271 = vst [vmem:[#allocation53_spill] sm:$0xff] %v6241_v20  ;;  %v6262_v41 = vadd.f32 %v3150_v26, %v7284_v42  ;;  %v3231_v26 = vmax.f32 %v6217_v58, 0.0  ;;  %v3232_v49 = vmax.f32 %v6220_v53, 0.0  ;;  %v3233_v63 = vmax.f32 %v6223_v13, 0.0  ;;  %v7293_v13 = vld [vmem:[#allocation19_spill] sm:$0xff] }
 0x46d   : > { %7273 = vst [vmem:[#allocation34_spill] sm:$0xff] %v6244_v45  ;;  %7275 = vst [vmem:[#allocation32_spill] sm:$0xff] %v6247_v14  ;;  %v3234_v48 = vmax.f32 %v6226_v24, 0.0  ;;  %v3235_v22 = vmax.f32 %v6229_v47, 0.0  ;;  %v3236_v42 = vmax.f32 %v6232_v30, 0.0  ;;  %v3237_v3 = vmax.f32 %v6235_v5, 0.0 }
 0x46e   : > { %7277 = vst [vmem:[#allocation42_spill] sm:$0xff] %v6250_v34  ;;  %7279 = vst [vmem:[#allocation44_spill] sm:$0xff] %v6253_v38  ;;  %v3238_v59 = vmax.f32 %v6238_v10, 0.0  ;;  %v7292_v34 = vld [vmem:[#allocation18_spill] sm:$0xff]  ;;  %v3244_v24 = vmul.f32 %v3228_v36, %v7293_v13  ;;  %v3245_v47 = vmul.f32 %v3229_v15, %v7057_v21  ;;  %v7294_v53 = vld [vmem:[#allocation31_spill] sm:$0xff]  ;;  %v3248_v10 = vmul.f32 %v3232_v49, %v7296_v33 }
 0x46f   : > { %7281 = vst [vmem:[#allocation27_spill] sm:$0xff] %v6256_v28  ;;  %7283 = vst [vmem:[#allocation54_spill] sm:$0xff] %v6259_v17  ;;  %v7291_v28 = vld [vmem:[#allocation11_spill] sm:$0xff]  ;;  %v3243_v14 = vmul.f32 %v3227_v18, %v7292_v34  ;;  %v3246_v30 = vmul.f32 %v3230_v8, %v7294_v53  ;;  %v7295_v58 = vld [vmem:[#allocation48_spill] sm:$0xff] }
 0x470   : > { %7285 = vst [vmem:[#allocation40_spill] sm:$0xff] %v6262_v41  ;;  %7287 = vst [vmem:[#allocation25_spill] sm:$0xff] %v6265_v4  ;;  %v3240_v4 = vmax.f32 %v6244_v45, 0.0  ;;  %v7290_v41 = vld [vmem:[#allocation10_spill] sm:$0xff]  ;;  %v3242_v38 = vmul.f32 %v3226_v52, %v7291_v28  ;;  %v3247_v5 = vmul.f32 %v3231_v26, %v7295_v58  ;;  %v7297_v16 = vld [vmem:[#allocation16_spill] sm:$0xff] }
 0x471   : > { %7289 = vst [vmem:[#allocation41_spill] sm:$0xff] %v6268_v50  ;;  %v3239_v50 = vmax.f32 %v6241_v20, 0.0  ;;  %v3241_v17 = vmul.f32 %v3225_v23, %v7290_v41  ;;  %v3249_v20 = vmul.f32 %v3233_v63, %v7297_v16  ;;  %v7298_v43 = vld [vmem:[#allocation17_spill] sm:$0xff]  ;;  %v7299_v7 = vld [vmem:[#allocation22_spill] sm:$0xff]  ;;  %v7300_v41 = vld [vmem:[#allocation20_spill] sm:$0xff] }
 0x472   : > { %v3250_v45 = vmul.f32 %v3234_v48, %v7298_v43  ;;  %v3251_v23 = vmul.f32 %v3235_v22, %v7299_v7  ;;  %v3252_v52 = vmul.f32 %v3236_v42, %v7300_v41  ;;  %v7301_v28 = vld [vmem:[#allocation46_spill] sm:$0xff]  ;;  %v7302_v34 = vld [vmem:[#allocation49_spill] sm:$0xff]  ;;  %v7303_v13 = vld [vmem:[#allocation52_spill] sm:$0xff]  ;;  %v3256_v8 = vmul.f32 %v3240_v4, %v7007_v29 }
 0x473   : > { %v3253_v18 = vmul.f32 %v3237_v3, %v7301_v28  ;;  %v3254_v36 = vmul.f32 %v3238_v59, %v7302_v34  ;;  %v3255_v15 = vmul.f32 %v3239_v50, %v7303_v13  ;;  %v3257_v53 = vadd.f32 %v3249_v20, %v3241_v17 }
 0x474   : > { %v3264_v26 = vadd.f32 %v3250_v45, %v3242_v38  ;;  %v3271_v58 = vadd.f32 %v3251_v23, %v3243_v14  ;;  %v3278_v49 = vadd.f32 %v3252_v52, %v3244_v24  ;;  %v3306_v43 = vadd.f32 %v3256_v8, %v3248_v10 }
 0x475   : > { %v3285_v33 = vadd.f32 %v3253_v18, %v3245_v47  ;;  %v3258_v63 = vrot.slane %v3257_v53, 4  ;;  %v3292_v16 = vadd.f32 %v3254_v36, %v3246_v30  ;;  %v3299_v48 = vadd.f32 %v3255_v15, %v3247_v5 }
 0x476   : > { %v3265_v22 = vrot.slane %v3264_v26, 4  ;;  %v3272_v7 = vrot.slane %v3271_v58, 4  ;;  %v3279_v42 = vrot.slane %v3278_v49, 4  ;;  %v3307_v34 = vrot.slane %v3306_v43, 4 }
 0x477   : > { %v3286_v41 = vrot.slane %v3285_v33, 4  ;;  %v3259_v3 = vadd.f32 %v3258_v63, %v3257_v53  ;;  %v3293_v28 = vrot.slane %v3292_v16, 4  ;;  %v3300_v59 = vrot.slane %v3299_v48, 4 }
 0x478   : > { %v3266_v50 = vadd.f32 %v3265_v22, %v3264_v26  ;;  %v3273_v13 = vadd.f32 %v3272_v7, %v3271_v58  ;;  %v3280_v4 = vadd.f32 %v3279_v42, %v3278_v49  ;;  %v3308_v47 = vadd.f32 %v3307_v34, %v3306_v43 }
 0x479   : > { %v3287_v20 = vadd.f32 %v3286_v41, %v3285_v33  ;;  %v3260_v45 = vrot.slane %v3259_v3, 2  ;;  %v3294_v14 = vadd.f32 %v3293_v28, %v3292_v16  ;;  %v3301_v24 = vadd.f32 %v3300_v59, %v3299_v48 }
 0x47a   : > { %v3267_v38 = vrot.slane %v3266_v50, 2  ;;  %v3274_v30 = vrot.slane %v3273_v13, 2  ;;  %v3281_v5 = vrot.slane %v3280_v4, 2  ;;  %v3309_v18 = vrot.slane %v3308_v47, 2 }
 0x47b   : > { %v3288_v10 = vrot.slane %v3287_v20, 2  ;;  %v3261_v17 = vadd.f32 %v3260_v45, %v3259_v3  ;;  %v3295_v23 = vrot.slane %v3294_v14, 2  ;;  %v3302_v52 = vrot.slane %v3301_v24, 2 }
 0x47c   : > { %v3268_v53 = vadd.f32 %v3267_v38, %v3266_v50  ;;  %v3275_v36 = vadd.f32 %v3274_v30, %v3273_v13  ;;  %v3282_v15 = vadd.f32 %v3281_v5, %v3280_v4  ;;  %v3310_v33 = vadd.f32 %v3309_v18, %v3308_v47 }
 0x47d   : > { %v3289_v8 = vadd.f32 %v3288_v10, %v3287_v20  ;;  %v3262_v26 = vrot.slane %v3261_v17, 1  ;;  %v3296_v7 = vadd.f32 %v3295_v23, %v3294_v14  ;;  %v3303_v58 = vadd.f32 %v3302_v52, %v3301_v24 }
 0x47e   : > { %v3269_v41 = vrot.slane %v3268_v53, 1  ;;  %v3276_v16 = vrot.slane %v3275_v36, 1  ;;  %v3283_v28 = vrot.slane %v3282_v15, 1  ;;  %v3311_v48 = vrot.slane %v3310_v33, 1 }
 0x47f   : > { %v3290_v43 = vrot.slane %v3289_v8, 1  ;;  %v3263_v34 = vadd.f32 %v3262_v26, %v3261_v17  ;;  %v3297_v49 = vrot.slane %v3296_v7, 1  ;;  %v3304_v63 = vrot.slane %v3303_v58, 1 }
 0x480   : > { %v3270_v22 = vadd.f32 %v3269_v41, %v3268_v53  ;;  %v3277_v42 = vadd.f32 %v3276_v16, %v3275_v36  ;;  %v3284_v3 = vadd.f32 %v3283_v28, %v3282_v15  ;;  %v3312_v4 = vadd.f32 %v3311_v48, %v3310_v33 }
 0x481   : > { %v3291_v59 = vadd.f32 %v3290_v43, %v3289_v8  ;;  %v3298_v50 = vadd.f32 %v3297_v49, %v3296_v7  ;;  %v3305_v13 = vadd.f32 %v3304_v63, %v3303_v58  ;;  %v3313_v20 = vadd.f32 %v3263_v34, %v6952_v25 }
 0x482   : > { %v3314_v45 = vadd.f32 %v3270_v22, %v7008_v1  ;;  %v3315_v14 = vadd.f32 %v3277_v42, %v6956_v32  ;;  %v3316_v24 = vadd.f32 %v3284_v3, %v6957_v19  ;;  %v3320_v5 = vadd.f32 %v3312_v4, %v5381_v61  ;;  %v7304_v22 = vld [vmem:[#allocation39_spill] sm:$0xff] }
 0x483   : > { %v3317_v47 = vadd.f32 %v3291_v59, %v5349_v9  ;;  %v3318_v38 = vadd.f32 %v3298_v50, %v5356_v31  ;;  %v3319_v30 = vadd.f32 %v3305_v13, %v5375_v12  ;;  %v3324_v10 = vrot.slane %v3313_v20, %v6897_v0  ;;  %v7305_v4 = vld [vmem:[#allocation43_spill] sm:$0xff] }
 0x484   : > { %v3328_v17 = vrot.slane %v3314_v45, %v6897_v0  ;;  %v3332_v23 = vrot.slane %v3315_v14, %v6897_v0  ;;  %v3336_v52 = vrot.slane %v3316_v24, %v6897_v0  ;;  %v3352_v15 = vrot.slane %v3320_v5, %v6897_v0 }
 0x485   : > { %v3340_v18 = vrot.slane %v3317_v47, %v6897_v0  ;;  %v3344_v53 = vrot.slane %v3318_v38, %v6897_v0  ;;  %v3348_v36 = vrot.slane %v3319_v30, %v6897_v0  ;;  %v3353_v8 = vmul.f32 %v3324_v10, %v7009_v35 }
 0x486   : > { %v3354_v26 = vmul.f32 %v3328_v17, %v6955_v39  ;;  %v3355_v7 = vmul.f32 %v3332_v23, %v6958_v46  ;;  %v3356_v58 = vmul.f32 %v3336_v52, %v6960_v57  ;;  %v3360_v28 = vmul.f32 %v3352_v15, %v6948_v55 }
 0x487   : > { %v3357_v33 = vmul.f32 %v3340_v18, %v6940_v62  ;;  %v3358_v41 = vmul.f32 %v3344_v53, %v6943_v56  ;;  %v3359_v16 = vmul.f32 %v3348_v36, %v6946_v40  ;;  %v3361_v43 = vmul.f32 %v3324_v10, %v4905_v54 }
 0x488   : > { %v3362_v34 = vmul.f32 %v3328_v17, %v4907_v11  ;;  %v3363_v49 = vmul.f32 %v3332_v23, %v4909_v51  ;;  %v3364_v63 = vmul.f32 %v3336_v52, %v6932_v44  ;;  %v3365_v48 = vmul.f32 %v3340_v18, %v6941_v27  ;;  %v7307_v17 = vld [vmem:[#allocation26_spill] sm:$0xff]  ;;  %v7309_v52 = vld [vmem:[#allocation33_spill] sm:$0xff] }
 0x489   : > { %v3366_v42 = vmul.f32 %v3344_v53, %v7304_v22  ;;  %v3367_v3 = vmul.f32 %v3348_v36, %v6947_v37  ;;  %v3368_v59 = vmul.f32 %v3352_v15, %v6949_v2  ;;  %v6335_v50 = vadd.f32 %v3353_v8, %v6199_v6  ;;  %v7311_v53 = vld [vmem:[#allocation29_spill] sm:$0xff]  ;;  %v7315_v6 = vld [vmem:[#allocation47_spill] sm:$0xff] }
 0x48a   : > { %v6338_v13 = vadd.f32 %v3354_v26, %v6202_v60  ;;  %v6341_v10 = vadd.f32 %v3355_v7, %v7305_v4  ;;  %v6344_v23 = vadd.f32 %v3356_v58, %v7307_v17  ;;  %v6347_v18 = vadd.f32 %v3357_v33, %v7309_v52  ;;  %v7313_v36 = vld [vmem:[#allocation45_spill] sm:$0xff]  ;;  %v7317_v60 = vld [vmem:[#allocation50_spill] sm:$0xff]  ;;  %v7319_v7 = vld [vmem:[#allocation55_spill] sm:$0xff] }
 0x48b   : > { %v6350_v22 = vadd.f32 %v3358_v41, %v7311_v53  ;;  %v6353_v15 = vadd.f32 %v3359_v16, %v7313_v36  ;;  %v6356_v8 = vadd.f32 %v3360_v28, %v7315_v6  ;;  %v6359_v26 = vadd.f32 %v3361_v43, %v7317_v60  ;;  %v7321_v58 = vld [vmem:[#allocation56_spill] sm:$0xff]  ;;  %v7323_v33 = vld [vmem:[#allocation30_spill] sm:$0xff]  ;;  %v7325_v41 = vld [vmem:[#allocation23_spill] sm:$0xff] }
 0x48c   : > { %7306 = vst [vmem:[#allocation21_spill] sm:$0xff] %v6341_v10  ;;  %7308 = vst [vmem:[#allocation28_spill] sm:$0xff] %v6344_v23  ;;  %v6362_v4 = vadd.f32 %v3362_v34, %v7319_v7  ;;  %v6365_v17 = vadd.f32 %v3363_v49, %v7321_v58  ;;  %v6368_v52 = vadd.f32 %v3364_v63, %v7323_v33  ;;  %v7327_v16 = vld [vmem:[#allocation38_spill] sm:$0xff]  ;;  %v7329_v28 = vld [vmem:[#allocation53_spill] sm:$0xff] }
 0x48d   : > { %7310 = vst [vmem:[#allocation24_spill] sm:$0xff] %v6347_v18  ;;  %7312 = vst [vmem:[#allocation43_spill] sm:$0xff] %v6350_v22  ;;  %v6371_v53 = vadd.f32 %v3365_v48, %v7325_v41  ;;  %v6374_v36 = vadd.f32 %v3366_v42, %v7327_v16  ;;  %v6377_v6 = vadd.f32 %v3367_v3, %v7329_v28  ;;  %v7331_v43 = vld [vmem:[#allocation34_spill] sm:$0xff]  ;;  %v7333_v34 = vld [vmem:[#allocation32_spill] sm:$0xff] }
 0x48e   : > { %7314 = vst [vmem:[#allocation26_spill] sm:$0xff] %v6353_v15  ;;  %7316 = vst [vmem:[#allocation33_spill] sm:$0xff] %v6356_v8  ;;  %v6380_v60 = vadd.f32 %v3368_v59, %v7331_v43  ;;  %v6383_v7 = vadd.f32 %v3313_v20, %v7333_v34  ;;  %v7335_v49 = vld [vmem:[#allocation42_spill] sm:$0xff]  ;;  %v7337_v63 = vld [vmem:[#allocation44_spill] sm:$0xff] }
 0x48f   : > { %7318 = vst [vmem:[#allocation29_spill] sm:$0xff] %v6359_v26  ;;  %7320 = vst [vmem:[#allocation45_spill] sm:$0xff] %v6362_v4  ;;  %v6386_v58 = vadd.f32 %v3314_v45, %v7335_v49  ;;  %v6389_v33 = vadd.f32 %v3315_v14, %v7337_v63  ;;  %v7339_v48 = vld [vmem:[#allocation27_spill] sm:$0xff]  ;;  %v7341_v42 = vld [vmem:[#allocation54_spill] sm:$0xff]  ;;  %v3393_v45 = vmax.f32 %v6335_v50, 0.0  ;;  %v3394_v14 = vmax.f32 %v6338_v13, 0.0 }
 0x490   : > { %7322 = vst [vmem:[#allocation47_spill] sm:$0xff] %v6365_v17  ;;  %7324 = vst [vmem:[#allocation50_spill] sm:$0xff] %v6368_v52  ;;  %v6392_v41 = vadd.f32 %v3316_v24, %v7339_v48  ;;  %v6395_v16 = vadd.f32 %v3317_v47, %v7341_v42  ;;  %v7343_v3 = vld [vmem:[#allocation40_spill] sm:$0xff]  ;;  %v7345_v59 = vld [vmem:[#allocation25_spill] sm:$0xff]  ;;  %v3395_v49 = vmax.f32 %v6341_v10, 0.0  ;;  %v3396_v24 = vmax.f32 %v6344_v23, 0.0 }
 0x491   : > { %7326 = vst [vmem:[#allocation55_spill] sm:$0xff] %v6371_v53  ;;  %7328 = vst [vmem:[#allocation56_spill] sm:$0xff] %v6374_v36  ;;  %v6398_v28 = vadd.f32 %v3318_v38, %v7343_v3  ;;  %v6401_v43 = vadd.f32 %v3319_v30, %v7345_v59  ;;  %v7347_v20 = vld [vmem:[#allocation41_spill] sm:$0xff]  ;;  %v3397_v47 = vmax.f32 %v6347_v18, 0.0  ;;  %v3398_v63 = vmax.f32 %v6350_v22, 0.0  ;;  %v7355_v22 = vld [vmem:[#allocation51_spill] sm:$0xff] }
 0x492   : > { %7330 = vst [vmem:[#allocation30_spill] sm:$0xff] %v6377_v6  ;;  %7332 = vst [vmem:[#allocation23_spill] sm:$0xff] %v6380_v60  ;;  %v6404_v34 = vadd.f32 %v3320_v5, %v7347_v20  ;;  %v3399_v38 = vmax.f32 %v6353_v15, 0.0  ;;  %v3400_v30 = vmax.f32 %v6356_v8, 0.0  ;;  %v3401_v48 = vmax.f32 %v6359_v26, 0.0  ;;  %v7352_v26 = vld [vmem:[#allocation19_spill] sm:$0xff] }
 0x493   : > { %7334 = vst [vmem:[#allocation38_spill] sm:$0xff] %v6383_v7  ;;  %7336 = vst [vmem:[#allocation53_spill] sm:$0xff] %v6386_v58  ;;  %v3402_v5 = vmax.f32 %v6362_v4, 0.0  ;;  %v3403_v42 = vmax.f32 %v6365_v17, 0.0  ;;  %v3404_v3 = vmax.f32 %v6368_v52, 0.0  ;;  %v3405_v59 = vmax.f32 %v6371_v53, 0.0 }
 0x494   : > { %7338 = vst [vmem:[#allocation34_spill] sm:$0xff] %v6389_v33  ;;  %7340 = vst [vmem:[#allocation32_spill] sm:$0xff] %v6392_v41  ;;  %v3406_v20 = vmax.f32 %v6374_v36, 0.0  ;;  %v7350_v41 = vld [vmem:[#allocation11_spill] sm:$0xff]  ;;  %v7351_v58 = vld [vmem:[#allocation18_spill] sm:$0xff]  ;;  %v3412_v4 = vmul.f32 %v3396_v24, %v7352_v26  ;;  %v3413_v17 = vmul.f32 %v3397_v47, %v7057_v21  ;;  %v3416_v36 = vmul.f32 %v3400_v30, %v7355_v22 }
 0x495   : > { %7342 = vst [vmem:[#allocation42_spill] sm:$0xff] %v6395_v16  ;;  %7344 = vst [vmem:[#allocation44_spill] sm:$0xff] %v6398_v28  ;;  %v7349_v28 = vld [vmem:[#allocation10_spill] sm:$0xff]  ;;  %v3410_v33 = vmul.f32 %v3394_v14, %v7350_v41  ;;  %v3411_v7 = vmul.f32 %v3395_v49, %v7351_v58  ;;  %v7353_v8 = vld [vmem:[#allocation31_spill] sm:$0xff] }
 0x496   : > { %7346 = vst [vmem:[#allocation27_spill] sm:$0xff] %v6401_v43  ;;  %7348 = vst [vmem:[#allocation54_spill] sm:$0xff] %v6404_v34  ;;  %v3407_v34 = vmax.f32 %v6377_v6, 0.0  ;;  %v3408_v43 = vmax.f32 %v6380_v60, 0.0  ;;  %v3409_v16 = vmul.f32 %v3393_v45, %v7349_v28  ;;  %v3414_v52 = vmul.f32 %v3398_v63, %v7353_v8  ;;  %v7354_v15 = vld [vmem:[#allocation48_spill] sm:$0xff]  ;;  %v7357_v23 = vld [vmem:[#allocation17_spill] sm:$0xff] }
 0x497   : > { %v3415_v53 = vmul.f32 %v3399_v38, %v7354_v15  ;;  %v7356_v18 = vld [vmem:[#allocation16_spill] sm:$0xff]  ;;  %v3418_v60 = vmul.f32 %v3402_v5, %v7357_v23  ;;  %v7358_v10 = vld [vmem:[#allocation22_spill] sm:$0xff]  ;;  %v7361_v58 = vld [vmem:[#allocation49_spill] sm:$0xff] }
 0x498   : > { %v3417_v6 = vmul.f32 %v3401_v48, %v7356_v18  ;;  %v3419_v45 = vmul.f32 %v3403_v42, %v7358_v10  ;;  %v7359_v28 = vld [vmem:[#allocation20_spill] sm:$0xff]  ;;  %v7360_v41 = vld [vmem:[#allocation46_spill] sm:$0xff]  ;;  %v3422_v24 = vmul.f32 %v3406_v20, %v7361_v58  ;;  %v3424_v63 = vmul.f32 %v3408_v43, %v7007_v29 }
 0x499   : > { %v3420_v14 = vmul.f32 %v3404_v3, %v7359_v28  ;;  %v3421_v49 = vmul.f32 %v3405_v59, %v7360_v41  ;;  %v7362_v26 = vld [vmem:[#allocation52_spill] sm:$0xff]  ;;  %v3432_v38 = vadd.f32 %v3418_v60, %v3410_v33 }
 0x49a   : > { %v3423_v47 = vmul.f32 %v3407_v34, %v7362_v26  ;;  %v3425_v8 = vadd.f32 %v3417_v6, %v3409_v16  ;;  %v3439_v15 = vadd.f32 %v3419_v45, %v3411_v7  ;;  %v3460_v18 = vadd.f32 %v3422_v24, %v3414_v52 }
 0x49b   : > { %v3446_v30 = vadd.f32 %v3420_v14, %v3412_v4  ;;  %v3453_v22 = vadd.f32 %v3421_v49, %v3413_v17  ;;  %v3474_v23 = vadd.f32 %v3424_v63, %v3416_v36  ;;  %v3433_v42 = vrot.slane %v3432_v38, 4 }
 0x49c   : > { %v3426_v48 = vrot.slane %v3425_v8, 4  ;;  %v3467_v5 = vadd.f32 %v3423_v47, %v3415_v53  ;;  %v3440_v10 = vrot.slane %v3439_v15, 4  ;;  %v3461_v41 = vrot.slane %v3460_v18, 4 }
 0x49d   : > { %v3447_v3 = vrot.slane %v3446_v30, 4  ;;  %v3454_v28 = vrot.slane %v3453_v22, 4  ;;  %v3475_v58 = vrot.slane %v3474_v23, 4  ;;  %v3434_v34 = vadd.f32 %v3433_v42, %v3432_v38 }
 0x49e   : > { %v3427_v59 = vadd.f32 %v3426_v48, %v3425_v8  ;;  %v3468_v20 = vrot.slane %v3467_v5, 4  ;;  %v3441_v26 = vadd.f32 %v3440_v10, %v3439_v15  ;;  %v3462_v7 = vadd.f32 %v3461_v41, %v3460_v18 }
 0x49f   : > { %v3448_v43 = vadd.f32 %v3447_v3, %v3446_v30  ;;  %v3455_v6 = vadd.f32 %v3454_v28, %v3453_v22  ;;  %v3476_v17 = vadd.f32 %v3475_v58, %v3474_v23  ;;  %v3435_v33 = vrot.slane %v3434_v34, 2 }
 0x4a0   : > { %v3428_v60 = vrot.slane %v3427_v59, 2  ;;  %v3469_v4 = vadd.f32 %v3468_v20, %v3467_v5  ;;  %v3442_v52 = vrot.slane %v3441_v26, 2  ;;  %v3463_v45 = vrot.slane %v3462_v7, 2 }
 0x4a1   : > { %v3449_v53 = vrot.slane %v3448_v43, 2  ;;  %v3456_v36 = vrot.slane %v3455_v6, 2  ;;  %v3477_v49 = vrot.slane %v3476_v17, 2  ;;  %v3436_v8 = vadd.f32 %v3435_v33, %v3434_v34 }
 0x4a2   : > { %v3429_v16 = vadd.f32 %v3428_v60, %v3427_v59  ;;  %v3470_v14 = vrot.slane %v3469_v4, 2  ;;  %v3443_v24 = vadd.f32 %v3442_v52, %v3441_v26  ;;  %v3464_v10 = vadd.f32 %v3463_v45, %v3462_v7 }
 0x4a3   : > { %v3450_v47 = vadd.f32 %v3449_v53, %v3448_v43  ;;  %v3457_v63 = vadd.f32 %v3456_v36, %v3455_v6  ;;  %v3478_v22 = vadd.f32 %v3477_v49, %v3476_v17  ;;  %v3437_v28 = vrot.slane %v3436_v8, 1 }
 0x4a4   : > { %v3430_v38 = vrot.slane %v3429_v16, 1  ;;  %v3471_v15 = vadd.f32 %v3470_v14, %v3469_v4  ;;  %v3444_v18 = vrot.slane %v3443_v24, 1  ;;  %v3465_v30 = vrot.slane %v3464_v10, 1 }
 0x4a5   : > { %v3451_v41 = vrot.slane %v3450_v47, 1  ;;  %v3458_v23 = vrot.slane %v3457_v63, 1  ;;  %v3479_v5 = vrot.slane %v3478_v22, 1  ;;  %v3438_v42 = vadd.f32 %v3437_v28, %v3436_v8 }
 0x4a6   : > { %v3431_v58 = vadd.f32 %v3430_v38, %v3429_v16  ;;  %v3472_v48 = vrot.slane %v3471_v15, 1  ;;  %v3445_v3 = vadd.f32 %v3444_v18, %v3443_v24  ;;  %v3466_v34 = vadd.f32 %v3465_v30, %v3464_v10  ;;  %v7364_v30 = vld [vmem:[#allocation21_spill] sm:$0xff] }
 0x4a7   : > { %v3452_v59 = vadd.f32 %v3451_v41, %v3450_v47  ;;  %v3459_v20 = vadd.f32 %v3458_v23, %v3457_v63  ;;  %v3480_v43 = vadd.f32 %v3479_v5, %v3478_v22  ;;  %v3482_v60 = vadd.f32 %v3438_v42, %v7008_v1  ;;  %v7366_v5 = vld [vmem:[#allocation24_spill] sm:$0xff]  ;;  %v7367_v42 = vld [vmem:[#allocation43_spill] sm:$0xff] }
 0x4a8   : > { %v3473_v26 = vadd.f32 %v3472_v48, %v3471_v15  ;;  %v3481_v6 = vadd.f32 %v3431_v58, %v6952_v25  ;;  %v3483_v7 = vadd.f32 %v3445_v3, %v6956_v32  ;;  %v3486_v33 = vadd.f32 %v3466_v34, %v5356_v31  ;;  %v7363_v58 = vld [vmem:[#allocation39_spill] sm:$0xff]  ;;  %v7365_v48 = vld [vmem:[#allocation28_spill] sm:$0xff]  ;;  %v7368_v3 = vld [vmem:[#allocation26_spill] sm:$0xff] }
 0x4a9   : > { %v3484_v4 = vadd.f32 %v3452_v59, %v6957_v19  ;;  %v3485_v17 = vadd.f32 %v3459_v20, %v5349_v9  ;;  %v3488_v53 = vadd.f32 %v3480_v43, %v5381_v61  ;;  %v3496_v16 = vrot.slane %v3482_v60, %v6897_v0  ;;  %v7369_v59 = vld [vmem:[#allocation33_spill] sm:$0xff]  ;;  %v7372_v43 = vld [vmem:[#allocation47_spill] sm:$0xff] }
 0x4aa   : > { %v3487_v52 = vadd.f32 %v3473_v26, %v5375_v12  ;;  %v3492_v36 = vrot.slane %v3481_v6, %v6897_v0  ;;  %v3500_v45 = vrot.slane %v3483_v7, %v6897_v0  ;;  %v3512_v8 = vrot.slane %v3486_v33, %v6897_v0  ;;  %v7370_v34 = vld [vmem:[#allocation29_spill] sm:$0xff] }
 0x4ab   : > { %v3504_v14 = vrot.slane %v3484_v4, %v6897_v0  ;;  %v3508_v49 = vrot.slane %v3485_v17, %v6897_v0  ;;  %v3520_v47 = vrot.slane %v3488_v53, %v6897_v0  ;;  %v3522_v38 = vmul.f32 %v3496_v16, %v6955_v39  ;;  %v7371_v26 = vld [vmem:[#allocation45_spill] sm:$0xff] }
 0x4ac   : > { %v3516_v24 = vrot.slane %v3487_v52, %v6897_v0  ;;  %v3521_v63 = vmul.f32 %v3492_v36, %v7009_v35  ;;  %v3523_v10 = vmul.f32 %v3500_v45, %v6958_v46  ;;  %v3526_v28 = vmul.f32 %v3512_v8, %v6943_v56 }
 0x4ad   : > { %v3524_v15 = vmul.f32 %v3504_v14, %v6960_v57  ;;  %v3525_v22 = vmul.f32 %v3508_v49, %v6940_v62  ;;  %v3528_v41 = vmul.f32 %v3520_v47, %v6948_v55  ;;  %v3529_v23 = vmul.f32 %v3492_v36, %v4905_v54  ;;  %v7373_v36 = vld [vmem:[#allocation50_spill] sm:$0xff] }
 0x4ae   : > { %v3527_v18 = vmul.f32 %v3516_v24, %v6946_v40  ;;  %v3530_v0 = vmul.f32 %v3496_v16, %v4907_v11  ;;  %v3531_v35 = vmul.f32 %v3500_v45, %v4909_v51  ;;  %v3532_v39 = vmul.f32 %v3504_v14, %v6932_v44  ;;  %v7374_v16 = vld [vmem:[#allocation55_spill] sm:$0xff]  ;;  %v7375_v14 = vld [vmem:[#allocation56_spill] sm:$0xff] }
 0x4af   : > { %v3533_v46 = vmul.f32 %v3508_v49, %v6941_v27  ;;  %v3534_v57 = vmul.f32 %v3512_v8, %v7363_v58  ;;  %v3535_v62 = vmul.f32 %v3516_v24, %v6947_v37  ;;  %v3536_v56 = vmul.f32 %v3520_v47, %v6949_v2  ;;  %v7376_v8 = vld [vmem:[#allocation30_spill] sm:$0xff]  ;;  %v7377_v47 = vld [vmem:[#allocation23_spill] sm:$0xff] }
 0x4b0   : > { %v3537_v40 = vadd.f32 %v3521_v63, %v6335_v50  ;;  %v3538_v55 = vadd.f32 %v3522_v38, %v6338_v13  ;;  %v3539_v54 = vadd.f32 %v3523_v10, %v7364_v30  ;;  %v3540_v11 = vadd.f32 %v3524_v15, %v7365_v48  ;;  %v7378_v38 = vld [vmem:[#allocation38_spill] sm:$0xff]  ;;  %v7379_v15 = vld [vmem:[#allocation53_spill] sm:$0xff]  ;;  %v7384_v58 = vld [vmem:[#allocation27_spill] sm:$0xff] }
 0x4b1   : > { %v3541_v51 = vadd.f32 %v3525_v22, %v7366_v5  ;;  %v3542_v44 = vadd.f32 %v3526_v28, %v7367_v42  ;;  %v3543_v27 = vadd.f32 %v3527_v18, %v7368_v3  ;;  %v3544_v20 = vadd.f32 %v3528_v41, %v7369_v59  ;;  %v7380_v28 = vld [vmem:[#allocation34_spill] sm:$0xff]  ;;  %v7381_v41 = vld [vmem:[#allocation32_spill] sm:$0xff] }
 0x4b2   : > { %v3545_v37 = vadd.f32 %v3529_v23, %v7370_v34  ;;  %v3546_v2 = vadd.f32 %v3530_v0, %v7371_v26  ;;  %v3547_v50 = vadd.f32 %v3531_v35, %v7372_v43  ;;  %v3548_v13 = vadd.f32 %v3532_v39, %v7373_v36  ;;  %v7382_v0 = vld [vmem:[#allocation42_spill] sm:$0xff]  ;;  %v7383_v39 = vld [vmem:[#allocation44_spill] sm:$0xff] }
 0x4b3   : > { %v3549_v45 = vadd.f32 %v3533_v46, %v7374_v16  ;;  %v3550_v49 = vadd.f32 %v3534_v57, %v7375_v14  ;;  %v3551_v24 = vadd.f32 %v3535_v62, %v7376_v8  ;;  %v3552_v63 = vadd.f32 %v3536_v56, %v7377_v47  ;;  %v7386_v36 = vld [vmem:[#allocation10_spill] sm:$0xff] }
 0x4b4   : > { %v6487_v10 = vadd.f32 %v3481_v6, %v7378_v38  ;;  %v6490_v22 = vadd.f32 %v3482_v60, %v7379_v15  ;;  %v6493_v18 = vadd.f32 %v3483_v7, %v7380_v28  ;;  %v6496_v23 = vadd.f32 %v3484_v4, %v7381_v41  ;;  %v7385_v6 = vld [vmem:[#allocation54_spill] sm:$0xff]  ;;  %v7398_v41 = vld [vmem:[#allocation49_spill] sm:$0xff] }
 0x4b5   : > { %v6499_v35 = vadd.f32 %v3485_v17, %v7382_v0  ;;  %v6502_v46 = vadd.f32 %v3486_v33, %v7383_v39  ;;  %v6505_v57 = vadd.f32 %v3487_v52, %v7384_v58  ;;  %v6508_v62 = vadd.f32 %v3488_v53, %v7385_v6  ;;  %v7387_v53 = vld [vmem:[#allocation11_spill] sm:$0xff]  ;;  %v7397_v15 = vld [vmem:[#allocation46_spill] sm:$0xff]  ;;  %v7399_v39 = vld [vmem:[#allocation52_spill] sm:$0xff] }
 0x4b6   : > { %v3561_v60 = vmax.f32 %v3537_v40, 0.0  ;;  %v3562_v56 = vmax.f32 %v3538_v55, 0.0  ;;  %v3563_v30 = vmax.f32 %v3539_v54, 0.0  ;;  %v3564_v7 = vmax.f32 %v3540_v11, 0.0  ;;  %v7388_v40 = vld [vmem:[#allocation18_spill] sm:$0xff]  ;;  %v7389_v54 = vld [vmem:[#allocation19_spill] sm:$0xff] }
 0x4b7   : > { %v3565_v48 = vmax.f32 %v3541_v51, 0.0  ;;  %v3566_v5 = vmax.f32 %v3542_v44, 0.0  ;;  %v3567_v4 = vmax.f32 %v3543_v27, 0.0  ;;  %v3568_v42 = vmax.f32 %v3544_v20, 0.0  ;;  %v7390_v44 = vld [vmem:[#allocation31_spill] sm:$0xff]  ;;  %v7391_v20 = vld [vmem:[#allocation48_spill] sm:$0xff] }
 0x4b8   : > { %v3569_v3 = vmax.f32 %v3545_v37, 0.0  ;;  %v3570_v17 = vmax.f32 %v3546_v2, 0.0  ;;  %v3571_v59 = vmax.f32 %v3547_v50, 0.0  ;;  %v3572_v34 = vmax.f32 %v3548_v13, 0.0  ;;  %v7392_v2 = vld [vmem:[#allocation51_spill] sm:$0xff]  ;;  %v7393_v13 = vld [vmem:[#allocation16_spill] sm:$0xff] }
 0x4b9   : > { %v3573_v33 = vmax.f32 %v3549_v45, 0.0  ;;  %v3574_v26 = vmax.f32 %v3550_v49, 0.0  ;;  %v3575_v43 = vmax.f32 %v3551_v24, 0.0  ;;  %v3576_v52 = vmax.f32 %v3552_v63, 0.0  ;;  %v7394_v49 = vld [vmem:[#allocation17_spill] sm:$0xff]  ;;  %v7395_v24 = vld [vmem:[#allocation22_spill] sm:$0xff] }
 0x4ba   : > { %v3577_v16 = vmul.f32 %v3561_v60, %v7386_v36  ;;  %v3578_v14 = vmul.f32 %v3562_v56, %v7387_v53  ;;  %v3579_v55 = vmul.f32 %v3563_v30, %v7388_v40  ;;  %v3580_v11 = vmul.f32 %v3564_v7, %v7389_v54  ;;  %v7396_v63 = vld [vmem:[#allocation20_spill] sm:$0xff] }
 0x4bb   : > { %v3581_v51 = vmul.f32 %v3565_v48, %v7057_v21  ;;  %v3582_v27 = vmul.f32 %v3566_v5, %v7390_v44  ;;  %v3583_v37 = vmul.f32 %v3567_v4, %v7391_v20  ;;  %v3584_v50 = vmul.f32 %v3568_v42, %v7392_v2 }
 0x4bc   : > { %v3585_v45 = vmul.f32 %v3569_v3, %v7393_v13  ;;  %v3586_v8 = vmul.f32 %v3570_v17, %v7394_v49  ;;  %v3587_v47 = vmul.f32 %v3571_v59, %v7395_v24  ;;  %v3588_v38 = vmul.f32 %v3572_v34, %v7396_v63 }
 0x4bd   : > { %v3589_v28 = vmul.f32 %v3573_v33, %v7397_v15  ;;  %v3590_v0 = vmul.f32 %v3574_v26, %v7398_v41  ;;  %v3591_v21 = vmul.f32 %v3575_v43, %v7399_v39  ;;  %v3592_v58 = vmul.f32 %v3576_v52, %v7007_v29 }
 0x4be   : > { %v3593_v6 = vadd.f32 %v3585_v45, %v3577_v16  ;;  %v3600_v60 = vadd.f32 %v3586_v8, %v3578_v14  ;;  %v3607_v56 = vadd.f32 %v3587_v47, %v3579_v55  ;;  %v3614_v30 = vadd.f32 %v3588_v38, %v3580_v11 }
 0x4bf   : > { %v3621_v7 = vadd.f32 %v3589_v28, %v3581_v51  ;;  %v3628_v5 = vadd.f32 %v3590_v0, %v3582_v27  ;;  %v3635_v4 = vadd.f32 %v3591_v21, %v3583_v37  ;;  %v3642_v42 = vadd.f32 %v3592_v58, %v3584_v50 }
 0x4c0   : > { %v3594_v48 = vrot.slane %v3593_v6, 4  ;;  %v3601_v3 = vrot.slane %v3600_v60, 4  ;;  %v3608_v17 = vrot.slane %v3607_v56, 4  ;;  %v3615_v59 = vrot.slane %v3614_v30, 4 }
 0x4c1   : > { %v3622_v34 = vrot.slane %v3621_v7, 4  ;;  %v3629_v36 = vrot.slane %v3628_v5, 4  ;;  %v3636_v26 = vrot.slane %v3635_v4, 4  ;;  %v3643_v53 = vrot.slane %v3642_v42, 4 }
 0x4c2   : > { %v3595_v33 = vadd.f32 %v3594_v48, %v3593_v6  ;;  %v3602_v43 = vadd.f32 %v3601_v3, %v3600_v60  ;;  %v3609_v40 = vadd.f32 %v3608_v17, %v3607_v56  ;;  %v3616_v29 = vadd.f32 %v3615_v59, %v3614_v30 }
 0x4c3   : > { %v3623_v52 = vadd.f32 %v3622_v34, %v3621_v7  ;;  %v3630_v14 = vadd.f32 %v3629_v36, %v3628_v5  ;;  %v3637_v55 = vadd.f32 %v3636_v26, %v3635_v4  ;;  %v3644_v54 = vadd.f32 %v3643_v53, %v3642_v42 }
 0x4c4   : > { %v3596_v16 = vrot.slane %v3595_v33, 2  ;;  %v3603_v11 = vrot.slane %v3602_v43, 2  ;;  %v3610_v51 = vrot.slane %v3609_v40, 2  ;;  %v3617_v44 = vrot.slane %v3616_v29, 2 }
 0x4c5   : > { %v3624_v27 = vrot.slane %v3623_v52, 2  ;;  %v3631_v37 = vrot.slane %v3630_v14, 2  ;;  %v3638_v2 = vrot.slane %v3637_v55, 2  ;;  %v3645_v50 = vrot.slane %v3644_v54, 2 }
 0x4c6   : > { %v3597_v20 = vadd.f32 %v3596_v16, %v3595_v33  ;;  %v3604_v13 = vadd.f32 %v3603_v11, %v3602_v43  ;;  %v3611_v45 = vadd.f32 %v3610_v51, %v3609_v40  ;;  %v3618_v49 = vadd.f32 %v3617_v44, %v3616_v29  ;;  %v7401_v51 = vld [vmem:[#allocation12_spill] sm:$0xff] }
 0x4c7   : > { %v3625_v8 = vadd.f32 %v3624_v27, %v3623_v52  ;;  %v3632_v47 = vadd.f32 %v3631_v37, %v3630_v14  ;;  %v3639_v63 = vadd.f32 %v3638_v2, %v3637_v55  ;;  %v3646_v38 = vadd.f32 %v3645_v50, %v3644_v54  ;;  %v7402_v27 = vld [vmem:[#allocation13_spill] sm:$0xff]  ;;  %v7403_v37 = vld [vmem:[#allocation14_spill] sm:$0xff] }
 0x4c8   : > { %v3598_v24 = vrot.slane %v3597_v20, 1  ;;  %v3605_v15 = vrot.slane %v3604_v13, 1  ;;  %v3612_v28 = vrot.slane %v3611_v45, 1  ;;  %v3619_v41 = vrot.slane %v3618_v49, 1 }
 0x4c9   : > { %v3626_v0 = vrot.slane %v3625_v8, 1  ;;  %v3633_v21 = vrot.slane %v3632_v47, 1  ;;  %v3640_v58 = vrot.slane %v3639_v63, 1  ;;  %v3647_v6 = vrot.slane %v3646_v38, 1 }
 0x4ca   : > { %v3599_v39 = vadd.f32 %v3598_v24, %v3597_v20  ;;  %v3606_v60 = vadd.f32 %v3605_v15, %v3604_v13  ;;  %v3613_v56 = vadd.f32 %v3612_v28, %v3611_v45  ;;  %v3620_v30 = vadd.f32 %v3619_v41, %v3618_v49  ;;  %v7405_v45 = vld [vmem:[#allocation35_spill] sm:$0xff] }
 0x4cb   : > { %v3627_v7 = vadd.f32 %v3626_v0, %v3625_v8  ;;  %v3634_v48 = vadd.f32 %v3633_v21, %v3632_v47  ;;  %v3641_v5 = vadd.f32 %v3640_v58, %v3639_v63  ;;  %v3648_v4 = vadd.f32 %v3647_v6, %v3646_v38  ;;  %v7406_v8 = vld [vmem:[#allocation36_spill] sm:$0xff]  ;;  %v7407_v47 = vld [vmem:[#allocation37_spill] sm:$0xff] }
 0x4cc   : > { %v3649_v42 = vadd.f32 %v3599_v39, %v6952_v25  ;;  %v3650_v3 = vadd.f32 %v3606_v60, %v7008_v1  ;;  %v3651_v17 = vadd.f32 %v3613_v56, %v6956_v32  ;;  %v3652_v59 = vadd.f32 %v3620_v30, %v6957_v19 }
 0x4cd   : > { %v3653_v34 = vadd.f32 %v3627_v7, %v5349_v9  ;;  %v3654_v33 = vadd.f32 %v3634_v48, %v5356_v31  ;;  %v3655_v36 = vadd.f32 %v3641_v5, %v5375_v12  ;;  %v3656_v26 = vadd.f32 %v3648_v4, %v5381_v61 }
 0x4ce   : > { %v3657_v53 = vadd.f32 %v3649_v42, %v6487_v10  ;;  %v3658_v25 = vadd.f32 %v3650_v3, %v6490_v22  ;;  %v3659_v1 = vadd.f32 %v3651_v17, %v6493_v18  ;;  %v3660_v32 = vadd.f32 %v3652_v59, %v6496_v23  ;;  %v7400_v18 = vld [vmem:[#allocation15_spill] sm:$0xff] }
 0x4cf   : > { %v3661_v19 = vadd.f32 %v3653_v34, %v6499_v35  ;;  %v3662_v9 = vadd.f32 %v3654_v33, %v6502_v46  ;;  %v3663_v31 = vadd.f32 %v3655_v36, %v6505_v57  ;;  %v3664_v12 = vadd.f32 %v3656_v26, %v6508_v62 }
 0x4d0   : > { %v3673_v61 = vcombine.low %v3657_v53, %v3658_v25  ;;  %v3674_v43 = vcombine.low %v3659_v1, %v3660_v32  ;;  %v4181_v40 = vmov 1966171168   ;;  %v3729_v50 = vstv %s264_s15  ;;  %s4099_s15 = scalar_lea.vmem %s4098_s14, 256 }
 0x4d1   : > { %v3678_v10 = vunpack.c.l.s4 %v4181_v40  ;;  %v3675_v29 = vcombine.low %v3661_v19, %v3662_v9  ;;  %v3676_v22 = vcombine.low %v3663_v31, %v3664_v12  ;;  %v3731_v13 = vstv %s266_s17  ;;  %p4101_p7 = scmp.lt.s32.totalorder %s4099_s15, %s4093_s7 }
 0x4d2   : > { %v3734_v38 = vstv %s268_s25  ;;  %v3737_v39 = vstv %s270_s13 }
 0x4d3   : > { %v3679_v52 = vunpack.c.0.s8 %v3678_v10  ;;  %p4102_p8 = por %p4101_p7, %p4100_p6 }
 0x4d5   : > { %v3682_v23 = vsub.s32 %v3679_v52, %v7400_v18  ;;  %p4103_p10 = pnand %p4102_p8, %p4096_p5 }
 0x4d7   : > { %v3683_v35 = vrot.slane %v3673_v61, %v3682_v23  ;;  %v3690_v46 = vrot.slane %v3674_v43, %v3682_v23  ;;  %v3697_v16 = vrot.slane %v3675_v29, %v3682_v23  ;;  %v3704_v57 = vrot.slane %v3676_v22, %v3682_v23 }
 0x4d9   : > { %v3705_v62 = vcombine.low %v3683_v35, %v3690_v46  ;;  %v3706_v14 = vcombine.low %v3697_v16, %v3704_v57 }
 0x4db   : > { %v3713_v55 = vrot.slane %v3705_v62, %v3682_v23  ;;  %v3720_v54 = vrot.slane %v3706_v14, %v3682_v23 }
 0x4dd   : > { %v3721_v11 = vcombine.low %v3713_v55, %v3720_v54 }
 0x4df   : > { %v3723_v44 = vmul.f32 %v3721_v11, %v7401_v51  ;;  %v3725_v20 = vmul.f32 %v3721_v11, %v7402_v27  ;;  %v3727_v2 = vmul.f32 %v3721_v11, %v7403_v37 }
 0x4e1   : > { %v3724_v49 = vadd.f32 %v3723_v44, %v7405_v45  ;;  %v3726_v24 = vadd.f32 %v3725_v20, %v7406_v8  ;;  %v3728_v63 = vadd.f32 %v3727_v2, %v7407_v47 }
 0x4e3   : > { %v3730_v15 = vmul.f32 %v3729_v50, %v3724_v49  ;;  %v3732_v28 = vmul.f32 %v3731_v13, %v3726_v24  ;;  %3739 = vst [vmem:[%s228_s16] ss:$4 sm:$0xff] %v3724_v49  ;;  %3930 = vst [vmem:[%s228_s16 + $0x1] ss:$4 sm:$0xff] %v3726_v24  ;;  %v3735_v0 = vmul.f32 %v3734_v38, %v3728_v63 }
 0x4e4   : > { %3931 = vst [vmem:[%s228_s16 + $0x2] ss:$4 sm:$0xff] %v3728_v63 }
 0x4e5   : > { %v3733_v41 = vadd.f32 %v3732_v28, %v3730_v15 }
 0x4e7   : > { %v3736_v21 = vadd.f32 %v3735_v0, %v3733_v41 }
 0x4e9   : > { %v3738_v58 = vadd.f32 %v3737_v39, %v3736_v21 }
 0x4eb   : > { %3744 = vst [vmem:[%s209_s22] sm:$0xff] %v3738_v58 }
 0x4ec   : > { %4106 = shalt.err (!%p4103_p10)
}
 0x4ed   : > { %s4107_s9 = scalar_lea.hbm %s6563_s28, 128  ;;  %s4111_s26 = scalar_lea.hbm %s6614_s4, 256 }
 0x4ee   : > { %p4108_p11 = scmp.ne.s32.totalorder %s6563_s28, %s4107_s9  ;;  %p4112_p1 = scmp.lt.u32.totalorder %s6563_s28, %s6614_s4 }
 0x4ef   : > { %p4113_p2 = scmp.lt.u32.totalorder %s4111_s26, %s4107_s9  ;;  %p4115_p4 = scmp.lt.u32.totalorder %s4107_s9, %s6563_s28 }
 0x4f0   : > { %p4109_p12 = pnand %p4108_p11, %p4251_p9 }
 0x4f1   : > { %p4114_p3 = por %p4113_p2, %p4112_p1 }
 0x4f2   : > { %p4110_p0 = pneg %p4109_p12 }
 0x4f3   : > { %p4116_p5 = por %p4115_p4, %p4114_p3 }
 0x4f5   : > { %p4117_p6 = pnand %p4116_p5, %p4110_p0 }
 0x4f7   : > { %4120 = shalt.err (!%p4117_p6)
}
 0x4f8   : > { %3992 = dma.vmem_to_hbm [thread:$0]  (%p4251_p9), %s6565_s19, 128, %s6563_s28, %s3755_s30  }
 0x4f9 PF: > { %p3998_p7 = scmp.ge.s32.totalorder %s4173_s24, 2  ;;  %s3799_s1 = sand.u32 1, %s4153_s20  }
 0x4fa   : > { %s3800_s23 = scalar_lea.sflag [#allocation5], %s3799_s1 }
 0x4fb   : > { %p3995_p8 = pnand %p3998_p7, %p4258_p13 }
 0x4fd   : > { %4148 = dma.done.wait (!%p3995_p8), %s3800_s23, 128  }
 0x4fe   : > { %4150 = vsyncadd (!%p3995_p8), %s3800_s23, 4294967168  ;;  %s24_s24 = sadd.s32 1, %s4173_s24   ;;  %s7408_s22 = sld [smem:[#allocation8_spill]] }
 0x4ff   : > { %p21_p10 = scmp.ge.s32.totalorder %s24_s24, 4   ;;  %s7409_s23 = sld [smem:[#allocation9_spill]] }
 0x500   : > { %s7410_s20 = smov %s4157_s21  ;;  %s7411_s21 = smov %s4161_s0 }
 0x501   : > { %s7412_s0 = smov %s4264_s6  ;;  %23 = sbr.rel (!%p21_p10) target bundleno = 19 (0x13), region = 80 }
 0x508   :  { %3805 = vsyncpa [#allocation5], 1 }
 0x509   :  { %3807 = vsyncpa [#allocation5 + $0x1], 1 }

</bundles_post_ra>
